<compile_context>
chip_gen: v7x
topology: tpu7x:2x2x1
jax: 0.10.0
libtpu: 0.0.40
codegen_flags: <defaults>
</compile_context>

<pallas_src>
import math

import jax
import jax.numpy as jnp
import numpy as np
from jax.experimental import pallas as pl
from jax.experimental.pallas import tpu as pltpu

KH = KW = 3
K = KH * KW          # kernel taps
PAD = 1
STRIDE = 1
DIL = 1

# Operand dtype for the deformable-conv matmul slab / weights. bf16 halves HBM
# and VMEM bytes on this bandwidth-bound path; accumulation stays f32 via
# preferred_element_type. Coordinate / bilinear-weight math stays f32.
MATMUL_DTYPE = jnp.bfloat16


# ------------------------------ small helpers ------------------------------ #

def _vmem_capacity_bytes():
    """Physical VMEM per core (128 MiB on v5e/v6e, 64 MiB on v7x)."""
    try:
        return int(pltpu.get_tpu_info().vmem_capacity_bytes)
    except Exception:
        return 64 * 1024 * 1024   # conservative fallback (v7x-sized)


def _pick_hw_tile(hw, in_bytes_per_px, out_bytes_per_px, fixed_bytes, budget):
    """Largest hw tile (multiple of 128 dividing hw) whose double-buffered
    working set fits in `budget`; falls back to the smallest legal tile."""
    cands = [t for t in range(128, hw + 1, 128) if hw % t == 0]
    if not cands:
        return hw                # hw < 128 or no 128-divisor: one full block
    fit = [t for t in cands
           if 2 * t * (in_bytes_per_px + out_bytes_per_px) + fixed_bytes <= budget]
    return max(fit) if fit else min(cands)


def _pick_row_tile(H, W, target_pixels=2048):
    """Row-tile height for the offset conv: divides H, tile has a multiple of
    8 pixels (so (TH, W, C)->(TH*W, C) is layout-trivial and the output block
    second-to-last dim is sublane aligned), ~target_pixels per tile."""
    cands = [th for th in range(1, H + 1)
             if H % th == 0 and th * W <= target_pixels and (th * W) % 8 == 0]
    return max(cands) if cands else H


# ----------------------------- Pallas kernels ------------------------------ #

def _deform_matmul_ck_kernel(interp_ref, w_ref, o_ref):
    # interp_ref: (1, C*K, T)  w_ref: (C, C*K)  o_ref: (1, C, T); lanes = T.
    o_ref[0] = jnp.dot(w_ref[...], interp_ref[0],
                       preferred_element_type=jnp.float32).astype(o_ref.dtype)


def _deform_matmul_kc_kernel(interp_ref, w_ref, o_ref):
    # interp_ref: (1, T, K*C)  w_ref: (K*C, C)  o_ref: (1, T, C); lanes = C (>=128).
    o_ref[0] = jnp.dot(interp_ref[0], w_ref[...],
                       preferred_element_type=jnp.float32).astype(o_ref.dtype)


# ------------------------------ offset conv -------------------------------- #

def offset_conv_pallas(x_nhwc, offset_w, offset_b, vmem_cap):
    """3x3 same conv producing the offset field. [N,H,W,C] -> [N,H,W,2K] (f32).

    Row-tiled shift-and-matmul: grid (N, row-tiles); per tile the 9 shifted
    windows of the VMEM-resident padded image are matmul'ed against per-tap
    (C, 18) weights and accumulated into the output block (bias folded into
    the init). The 9x im2col slab is never materialized in HBM.
    """
    N, H, W, C = x_nhwc.shape
    Co = offset_w.shape[0]                      # 2*K = 18
    hw = H * W
    Hp, Wp = H + 2 * PAD, W + 2 * PAD

    # Offsets feed the f32 bilinear coordinate math -> keep this conv in f32.
    xp = jnp.pad(x_nhwc, ((0, 0), (PAD, PAD), (PAD, PAD), (0, 0))).astype(jnp.float32)
    # Per-tap [C, Co] weight matrices, kk = i*KW + j.
    w_taps = jnp.transpose(offset_w, (2, 3, 1, 0)).reshape(K, C, Co).astype(jnp.float32)
    bm = offset_b.reshape(1, Co).astype(jnp.float32)

    TH = _pick_row_tile(H, W)
    R = H // TH
    T = TH * W                                  # output pixels per tile

    def kernel(xp_ref, w_ref, b_ref, o_ref):
        r = pl.program_id(1)
        base = pl.multiple_of(r * TH, TH)       # padded-row base of this tile
        # Bias init, then 9 shift-and-matmul taps accumulated into the
        # VMEM-resident output block (bounded size, no register spills).
        o_ref[0] = jnp.broadcast_to(b_ref[...], (T, Co)).astype(jnp.float32)
        # NOTE: the (TH, W, C) -> (TH*W, C) reshape is layout-trivial because
        # TH*W % 8 == 0 by construction of _pick_row_tile.
        for kk in range(K):                     # unrolled: 9 shifted matmuls
            i, j = kk // KW, kk % KW
            xs = xp_ref[0, pl.ds(base + i, TH), j:j + W, :].reshape(T, C)
            o_ref[0] += jnp.dot(xs, w_ref[kk], preferred_element_type=jnp.float32)

    flops = 2 * N * hw * K * C * Co
    bytes_accessed = N * Hp * Wp * C * 4 + K * C * Co * 4 + N * hw * Co * 4
    need = 2 * Hp * Wp * C * 4 + 2 * T * Co * 4 + 2 * K * C * Co * 4 + (2 << 20)
    vmem_limit = int(min(max(need, 16 << 20), vmem_cap * 3 // 4))

    out = pl.pallas_call(
        kernel,
        out_shape=jax.ShapeDtypeStruct((N, hw, Co), jnp.float32),
        grid=(N, R),
        in_specs=[
            # Full padded image per batch element: constant block index along r
            # -> DMA'd once per n and kept resident across the row tiles.
            pl.BlockSpec((1, Hp, Wp, C), lambda n, r: (n, 0, 0, 0)),
            pl.BlockSpec((K, C, Co), lambda n, r: (0, 0, 0)),
            pl.BlockSpec((1, Co), lambda n, r: (0, 0)),
        ],
        # Output stays NHWC-ordered (Co minor): that is the layout the bilinear
        # coordinate math consumes, so a lane-dense (Co, hw) layout would just
        # move the cost into an XLA transpose of the same (tiny) tensor.
        out_specs=pl.BlockSpec((1, T, Co), lambda n, r: (n, r, 0)),
        compiler_params=pltpu.CompilerParams(
            dimension_semantics=("parallel", "parallel"),
            vmem_limit_bytes=vmem_limit),
        cost_estimate=pl.CostEstimate(flops=flops, transcendentals=0,
                                      bytes_accessed=bytes_accessed),
    )(xp, w_taps, bm)
    return out.reshape(N, H, W, Co)             # f32: consumed by f32 coord math


# --------------------------- bilinear sampling ------------------------------ #

def _bilinear_sample_terms(x_nhwc, offsets_nhwc):
    """torchvision DeformConv2d bilinear sampling terms (zero outside image).

    Returns 4 corner value tensors [N,H,W,K,C] and 4 corner weight tensors
    [N,H,W,K]. Coordinate math is kept in f32.
    """
    N, H, W, C = x_nhwc.shape
    off = offsets_nhwc.reshape(N, H, W, K, 2)
    off_y = off[..., 0]   # channel 2*k   -> y offset (torchvision convention)
    off_x = off[..., 1]   # channel 2*k+1 -> x offset
    ki = (jnp.arange(K) // KW).astype(jnp.float32)
    kj = (jnp.arange(K) % KW).astype(jnp.float32)
    base_y = (jnp.arange(H, dtype=jnp.float32) * STRIDE - PAD)[:, None, None] + ki[None, None, :] * DIL
    base_x = (jnp.arange(W, dtype=jnp.float32) * STRIDE - PAD)[None, :, None] + kj[None, None, :] * DIL
    py = base_y[None, :, :, :] + off_y            # [N,H,W,K]
    px = base_x[None, :, :, :] + off_x            # [N,H,W,K]

    valid = (py > -1) & (py < H) & (px > -1) & (px < W)
    y0f = jnp.floor(py)
    x0f = jnp.floor(px)
    ly = py - y0f
    lx = px - x0f
    hy = 1.0 - ly
    hx = 1.0 - lx
    y0 = y0f.astype(jnp.int32)
    x0 = x0f.astype(jnp.int32)
    y1 = y0 + 1
    x1 = x0 + 1

    f32 = lambda m: m.astype(jnp.float32)
    m00 = f32(valid & (y0 >= 0) & (x0 >= 0))
    m01 = f32(valid & (y0 >= 0) & (x1 <= W - 1))
    m10 = f32(valid & (y1 <= H - 1) & (x0 >= 0))
    m11 = f32(valid & (y1 <= H - 1) & (x1 <= W - 1))
    w00 = hy * hx * m00
    w01 = hy * lx * m01
    w10 = ly * hx * m10
    w11 = ly * lx * m11

    y0c = jnp.clip(y0, 0, H - 1)
    y1c = jnp.clip(y1, 0, H - 1)
    x0c = jnp.clip(x0, 0, W - 1)
    x1c = jnp.clip(x1, 0, W - 1)
    nidx = jnp.arange(N)[:, None, None, None]
    v00 = x_nhwc[nidx, y0c, x0c]   # [N,H,W,K,C]
    v01 = x_nhwc[nidx, y0c, x1c]
    v10 = x_nhwc[nidx, y1c, x0c]
    v11 = x_nhwc[nidx, y1c, x1c]
    return (v00, v01, v10, v11), (w00, w01, w10, w11)


# ------------------------------- deform conv -------------------------------- #

def deform_conv_pallas(x_nhwc, offsets_nhwc, deform_w, groups, vmem_cap, hw_tile=None):
    N, H, W, C = x_nhwc.shape
    G = groups
    cg = C // G               # input channels per group
    cog = C // G              # output channels per group (out_channels == in_channels)
    hw = H * W
    CK = C * K
    out_dtype = x_nhwc.dtype
    in_bytes = np.dtype(MATMUL_DTYPE).itemsize
    out_bytes = np.dtype(out_dtype).itemsize

    # Bilinear gather + 4-corner combine in JAX (XLA fuses the weighting into
    # the gather), producing ONE interp slab. Cast to bf16 *before* any
    # reshape/transpose so the HBM slab is written once at half width.
    (v00, v01, v10, v11), (w00, w01, w10, w11) = _bilinear_sample_terms(x_nhwc, offsets_nhwc)
    interp = (w00[..., None] * v00 + w01[..., None] * v01
              + w10[..., None] * v10 + w11[..., None] * v11)          # [N,H,W,K,C] f32
    interp = interp.astype(MATMUL_DTYPE)

    w_g = deform_w.reshape(G, cog, cg, K)
    eye = jnp.eye(G, dtype=deform_w.dtype)

    # VMEM budget per generation: 64 MiB limit on v5e/v6e (128 MiB physical),
    # 32 MiB on v7x (64 MiB physical); tile size derived from that budget.
    vmem_limit = int(min(max(vmem_cap // 2, 32 << 20), 64 << 20))
    budget = vmem_limit - (6 << 20)

    flops = 2 * N * hw * CK * C
    bytes_accessed = N * hw * CK * in_bytes + C * CK * in_bytes + N * hw * C * out_bytes
    ce = pl.CostEstimate(flops=flops, transcendentals=0, bytes_accessed=bytes_accessed)

    T = hw_tile if hw_tile is not None else _pick_hw_tile(
        hw, CK * in_bytes, C * out_bytes, 2 * C * CK * in_bytes, budget)
    assert hw % T == 0, "hw tile must divide H*W"

    if C % 128 == 0:
        # No-transpose path: interp stays in natural [N, HW, K*C] order (free
        # reshape); the tiny weight carries the block-diagonal / column
        # permutation; (T, C) output is lane-dense since C % 128 == 0.
        interp_t = interp.reshape(N, hw, CK)                      # col = k*C + ci
        wt = jnp.transpose(w_g, (3, 0, 2, 1))                     # [K, G, cg, cog]
        w2 = jnp.einsum("kgco,gh->kgcho", wt, eye).reshape(CK, C).astype(MATMUL_DTYPE)
        out = pl.pallas_call(
            _deform_matmul_kc_kernel,
            out_shape=jax.ShapeDtypeStruct((N, hw, C), out_dtype),
            grid=(N, hw // T),
            in_specs=[
                pl.BlockSpec((1, T, CK), lambda n, t: (n, t, 0)),
                # Invariant weight: constant block index -> DMA'd once and kept
                # resident across the whole grid (pl.Buffered(1) would also
                # drop its second buffer copy; left default for robustness).
                pl.BlockSpec((CK, C), lambda n, t: (0, 0)),
            ],
            out_specs=pl.BlockSpec((1, T, C), lambda n, t: (n, t, 0)),
            compiler_params=pltpu.CompilerParams(
                dimension_semantics=("parallel", "parallel"),
                vmem_limit_bytes=vmem_limit),
            cost_estimate=ce,
        )(interp_t, w2)
        # Only the 1x-sized output gets transposed back to NCHW (not the 9x slab).
        return jnp.transpose(out.reshape(N, H, W, C), (0, 3, 1, 2))

    # C < 128: a (T, C) output would be lane-sparse (masked stores), so keep the
    # lane-dense (C, hw-tile) layout; the slab is already bf16 so the transpose
    # moves half the bytes it used to.
    interp_t = jnp.transpose(interp, (0, 4, 3, 1, 2)).reshape(N, CK, hw)   # row = ci*K + k
    w_g2 = w_g.reshape(G, cog, cg * K)
    wbd = jnp.einsum("goc,gh->gohc", w_g2, eye).reshape(C, CK).astype(MATMUL_DTYPE)
    out = pl.pallas_call(
        _deform_matmul_ck_kernel,
        out_shape=jax.ShapeDtypeStruct((N, C, hw), out_dtype),
        grid=(N, hw // T),
        in_specs=[
            pl.BlockSpec((1, CK, T), lambda n, t: (n, 0, t)),
            pl.BlockSpec((C, CK), lambda n, t: (0, 0)),
        ],
        out_specs=pl.BlockSpec((1, C, T), lambda n, t: (n, 0, t)),
        compiler_params=pltpu.CompilerParams(
            dimension_semantics=("parallel", "parallel"),
            vmem_limit_bytes=vmem_limit),
        cost_estimate=ce,
    )(interp_t, wbd)
    return out.reshape(N, C, H, W)       # already NCHW-ordered: reshape only


def deform_conv3d_forward(x_nchw, params, groups):
    """Full forward of the PyTorch DeformConv3d module. x: NCHW -> out: NCHW."""
    vmem_cap = _vmem_capacity_bytes()
    x_nhwc = jnp.transpose(x_nchw, (0, 2, 3, 1))
    offsets_nhwc = offset_conv_pallas(x_nhwc, params["offset_w"], params["offset_b"], vmem_cap)
    # torchvision DeformConv2d is built with bias=False -> no deform-conv bias.
    return deform_conv_pallas(x_nhwc, offsets_nhwc, params["deform_w"], groups, vmem_cap)


# ------------------------------ pure-JAX reference -------------------------- #

def reference_forward(x_nchw, params, groups):
    offsets = jax.lax.conv_general_dilated(
        x_nchw, params["offset_w"], window_strides=(1, 1),
        padding=((PAD, PAD), (PAD, PAD)),
        dimension_numbers=("NCHW", "OIHW", "NCHW"),
        precision=jax.lax.Precision.HIGHEST)
    offsets = offsets + params["offset_b"][None, :, None, None]
    x_nhwc = jnp.transpose(x_nchw, (0, 2, 3, 1))
    offsets_nhwc = jnp.transpose(offsets, (0, 2, 3, 1))
    (v00, v01, v10, v11), (w00, w01, w10, w11) = _bilinear_sample_terms(x_nhwc, offsets_nhwc)
    interp = (w00[..., None] * v00 + w01[..., None] * v01
              + w10[..., None] * v10 + w11[..., None] * v11)       # [N,H,W,K,C]
    N, H, W, _, C = interp.shape
    cg = C // groups
    interp_r = interp.reshape(N, H, W, K, groups, cg)
    wd_r = params["deform_w"].reshape(groups, C // groups, cg, K)
    out = jnp.einsum("nhwkgc,gock->ngohw", interp_r, wd_r,
                     precision=jax.lax.Precision.HIGHEST)
    return out.reshape(N, C, H, W)


# ----------------------------------- main ----------------------------------- #

if __name__ == "__main__":
    root_key = jax.random.PRNGKey(0)

    def run_case(N, C, H, W, groups, case_id):
        key = jax.random.fold_in(root_key, case_id)
        k1, k2, k3, k4 = jax.random.split(key, 4)
        # Deterministic init mimicking PyTorch defaults (uniform +- 1/sqrt(fan_in)).
        b_off = 1.0 / math.sqrt(C * KH * KW)
        b_d = 1.0 / math.sqrt((C // groups) * KH * KW)
        params = {
            "offset_w": jax.random.uniform(k1, (2 * K, C, KH, KW), jnp.float32, -b_off, b_off),
            "offset_b": jax.random.uniform(k2, (2 * K,), jnp.float32, -b_off, b_off),
            "deform_w": jax.random.uniform(k3, (C, C // groups, KH, KW), jnp.float32, -b_d, b_d),
        }
        x = jax.random.normal(k4, (N, C, H, W), jnp.float32)

        out = jax.jit(deform_conv3d_forward, static_argnums=2)(x, params, groups)
        out = jax.block_until_ready(out)
        ref = jax.block_until_ready(reference_forward(x, params, groups))

        assert out.shape == (N, C, H, W) and out.dtype == x.dtype
        # bf16 matmul operands (f32 accumulation) vs f32 HIGHEST reference.
        if not np.allclose(np.asarray(out), np.asarray(ref), atol=2e-2, rtol=2e-2):
            max_err = float(np.max(np.abs(np.asarray(out) - np.asarray(ref))))
            raise AssertionError(f"mismatch vs reference (C={C}): max abs err = {max_err}")

    # Primary small case (C < 128 -> lane-dense (C, hw-tile) kernel layout).
    run_case(2, 4, 16, 16, groups=2, case_id=0)
    # C % 128 == 0 case exercising the no-transpose [hw, K*C] @ [K*C, C] path.
    run_case(1, 128, 16, 16, groups=4, case_id=1)

    print("KERNEL_OK")
</pallas_src>

<mosaic_0001>
module attributes {stable_mosaic.version = 11 : i64} {
  func.func @kernel(%arg0: i32, %arg1: i32, %arg2: memref<1x18x18x4xf32, #tpu.memory_space<vmem>>, %arg3: memref<9x4x18xf32, #tpu.memory_space<vmem>>, %arg4: memref<1x18xf32, #tpu.memory_space<vmem>>, %arg5: memref<1x256x18xf32, #tpu.memory_space<vmem>>) attributes {dimension_semantics = [#tpu.dimension_semantics<parallel>, #tpu.dimension_semantics<parallel>], iteration_bounds = array<i64: 2, 1>, scalar_prefetch = 0 : i64, scratch_operands = 0 : i64, tpu.core_type = #tpu.core_type<tc>, window_params = [{transform_indices = @transform_0, window_bounds = array<i64: 1, 18, 18, 4>}, {pipeline_mode = #tpu.pipeline_mode<synchronous>, transform_indices = @transform_1, window_bounds = array<i64: 9, 4, 18>}, {pipeline_mode = #tpu.pipeline_mode<synchronous>, transform_indices = @transform_2, window_bounds = array<i64: 1, 18>}, {transform_indices = @transform_3, window_bounds = array<i64: 1, 256, 18>}]} {
    %c16_i32 = arith.constant 16 : i32
    %0 = arith.muli %arg1, %c16_i32 : i32
    %1 = tpu.assume_multiple %0, 16 : i32
    %c0 = arith.constant 0 : index
    %c0_0 = arith.constant 0 : index
    %2 = vector.load %arg4[%c0, %c0_0] : memref<1x18xf32, #tpu.memory_space<vmem>>, vector<1x18xf32>
    %3 = vector.shape_cast %2 : vector<1x18xf32> to vector<1x18xf32>
    %4 = vector.broadcast %3 : vector<1x18xf32> to vector<256x18xf32>
    %c0_1 = arith.constant 0 : index
    %c0_2 = arith.constant 0 : index
    %c0_3 = arith.constant 0 : index
    %5 = vector.load %arg5[%c0_1, %c0_2, %c0_3] : memref<1x256x18xf32, #tpu.memory_space<vmem>>, vector<1x256x18xf32>
    %6 = vector.shape_cast %5 : vector<1x256x18xf32> to vector<256x18xf32>
    %7 = vector.shape_cast %4 : vector<256x18xf32> to vector<1x256x18xf32>
    tpu.vector_store %arg5[%c0_1, %c0_2, %c0_3], %7 {strides = array<i32>} : memref<1x256x18xf32, #tpu.memory_space<vmem>>, vector<1x256x18xf32>,
    %c0_i32 = arith.constant 0 : i32
    %8 = arith.addi %1, %c0_i32 : i32
    %c0_4 = arith.constant 0 : index
    %9 = arith.index_cast %8 : i32 to index
    %c0_5 = arith.constant 0 : index
    %c0_6 = arith.constant 0 : index
    %10 = vector.load %arg2[%c0_4, %9, %c0_5, %c0_6] : memref<1x18x18x4xf32, #tpu.memory_space<vmem>>, vector<1x16x16x4xf32>
    %11 = vector.shape_cast %10 : vector<1x16x16x4xf32> to vector<16x16x4xf32>
    %12 = vector.shape_cast %11 : vector<16x16x4xf32> to vector<256x4xf32>
    %c0_7 = arith.constant 0 : index
    %c0_8 = arith.constant 0 : index
    %c0_9 = arith.constant 0 : index
    %13 = vector.load %arg5[%c0_7, %c0_8, %c0_9] : memref<1x256x18xf32, #tpu.memory_space<vmem>>, vector<1x256x18xf32>
    %14 = vector.shape_cast %13 : vector<1x256x18xf32> to vector<256x18xf32>
    %c0_10 = arith.constant 0 : index
    %c0_11 = arith.constant 0 : index
    %c0_12 = arith.constant 0 : index
    %15 = vector.load %arg3[%c0_10, %c0_11, %c0_12] : memref<9x4x18xf32, #tpu.memory_space<vmem>>, vector<1x4x18xf32>
    %16 = vector.shape_cast %15 : vector<1x4x18xf32> to vector<4x18xf32>
    %cst = arith.constant dense<0.000000e+00> : vector<256x18xf32>
    %17 = tpu.matmul %12, %16, %cst {dimension_numbers = #tpu.dot_dimension_numbers<[1], [0], [0], [1], [0, 0, 1, 1], [], []>} : vector<256x4xf32>, vector<4x18xf32>, vector<256x18xf32> -> vector<256x18xf32>
    %18 = arith.addf %14, %17 : vector<256x18xf32>
    %c0_13 = arith.constant 0 : index
    %c0_14 = arith.constant 0 : index
    %c0_15 = arith.constant 0 : index
    %19 = vector.load %arg5[%c0_13, %c0_14, %c0_15] : memref<1x256x18xf32, #tpu.memory_space<vmem>>, vector<1x256x18xf32>
    %20 = vector.shape_cast %19 : vector<1x256x18xf32> to vector<256x18xf32>
    %21 = vector.shape_cast %18 : vector<256x18xf32> to vector<1x256x18xf32>
    tpu.vector_store %arg5[%c0_13, %c0_14, %c0_15], %21 {strides = array<i32>} : memref<1x256x18xf32, #tpu.memory_space<vmem>>, vector<1x256x18xf32>,
    %c0_i32_16 = arith.constant 0 : i32
    %22 = arith.addi %1, %c0_i32_16 : i32
    %c0_17 = arith.constant 0 : index
    %23 = arith.index_cast %22 : i32 to index
    %c1 = arith.constant 1 : index
    %c0_18 = arith.constant 0 : index
    %24 = vector.load %arg2[%c0_17, %23, %c1, %c0_18] : memref<1x18x18x4xf32, #tpu.memory_space<vmem>>, vector<1x16x16x4xf32>
    %25 = vector.shape_cast %24 : vector<1x16x16x4xf32> to vector<16x16x4xf32>
    %26 = vector.shape_cast %25 : vector<16x16x4xf32> to vector<256x4xf32>
    %c0_19 = arith.constant 0 : index
    %c0_20 = arith.constant 0 : index
    %c0_21 = arith.constant 0 : index
    %27 = vector.load %arg5[%c0_19, %c0_20, %c0_21] : memref<1x256x18xf32, #tpu.memory_space<vmem>>, vector<1x256x18xf32>
    %28 = vector.shape_cast %27 : vector<1x256x18xf32> to vector<256x18xf32>
    %c1_22 = arith.constant 1 : index
    %c0_23 = arith.constant 0 : index
    %c0_24 = arith.constant 0 : index
    %29 = vector.load %arg3[%c1_22, %c0_23, %c0_24] : memref<9x4x18xf32, #tpu.memory_space<vmem>>, vector<1x4x18xf32>
    %30 = vector.shape_cast %29 : vector<1x4x18xf32> to vector<4x18xf32>
    %cst_25 = arith.constant dense<0.000000e+00> : vector<256x18xf32>
    %31 = tpu.matmul %26, %30, %cst_25 {dimension_numbers = #tpu.dot_dimension_numbers<[1], [0], [0], [1], [0, 0, 1, 1], [], []>} : vector<256x4xf32>, vector<4x18xf32>, vector<256x18xf32> -> vector<256x18xf32>
    %32 = arith.addf %28, %31 : vector<256x18xf32>
    %c0_26 = arith.constant 0 : index
    %c0_27 = arith.constant 0 : index
    %c0_28 = arith.constant 0 : index
    %33 = vector.load %arg5[%c0_26, %c0_27, %c0_28] : memref<1x256x18xf32, #tpu.memory_space<vmem>>, vector<1x256x18xf32>
    %34 = vector.shape_cast %33 : vector<1x256x18xf32> to vector<256x18xf32>
    %35 = vector.shape_cast %32 : vector<256x18xf32> to vector<1x256x18xf32>
    tpu.vector_store %arg5[%c0_26, %c0_27, %c0_28], %35 {strides = array<i32>} : memref<1x256x18xf32, #tpu.memory_space<vmem>>, vector<1x256x18xf32>,
    %c0_i32_29 = arith.constant 0 : i32
    %36 = arith.addi %1, %c0_i32_29 : i32
    %c0_30 = arith.constant 0 : index
    %37 = arith.index_cast %36 : i32 to index
    %c2 = arith.constant 2 : index
    %c0_31 = arith.constant 0 : index
    %38 = vector.load %arg2[%c0_30, %37, %c2, %c0_31] : memref<1x18x18x4xf32, #tpu.memory_space<vmem>>, vector<1x16x16x4xf32>
    %39 = vector.shape_cast %38 : vector<1x16x16x4xf32> to vector<16x16x4xf32>
    %40 = vector.shape_cast %39 : vector<16x16x4xf32> to vector<256x4xf32>
    %c0_32 = arith.constant 0 : index
    %c0_33 = arith.constant 0 : index
    %c0_34 = arith.constant 0 : index
    %41 = vector.load %arg5[%c0_32, %c0_33, %c0_34] : memref<1x256x18xf32, #tpu.memory_space<vmem>>, vector<1x256x18xf32>
    %42 = vector.shape_cast %41 : vector<1x256x18xf32> to vector<256x18xf32>
    %c2_35 = arith.constant 2 : index
    %c0_36 = arith.constant 0 : index
    %c0_37 = arith.constant 0 : index
    %43 = vector.load %arg3[%c2_35, %c0_36, %c0_37] : memref<9x4x18xf32, #tpu.memory_space<vmem>>, vector<1x4x18xf32>
    %44 = vector.shape_cast %43 : vector<1x4x18xf32> to vector<4x18xf32>
    %cst_38 = arith.constant dense<0.000000e+00> : vector<256x18xf32>
    %45 = tpu.matmul %40, %44, %cst_38 {dimension_numbers = #tpu.dot_dimension_numbers<[1], [0], [0], [1], [0, 0, 1, 1], [], []>} : vector<256x4xf32>, vector<4x18xf32>, vector<256x18xf32> -> vector<256x18xf32>
    %46 = arith.addf %42, %45 : vector<256x18xf32>
    %c0_39 = arith.constant 0 : index
    %c0_40 = arith.constant 0 : index
    %c0_41 = arith.constant 0 : index
    %47 = vector.load %arg5[%c0_39, %c0_40, %c0_41] : memref<1x256x18xf32, #tpu.memory_space<vmem>>, vector<1x256x18xf32>
    %48 = vector.shape_cast %47 : vector<1x256x18xf32> to vector<256x18xf32>
    %49 = vector.shape_cast %46 : vector<256x18xf32> to vector<1x256x18xf32>
    tpu.vector_store %arg5[%c0_39, %c0_40, %c0_41], %49 {strides = array<i32>} : memref<1x256x18xf32, #tpu.memory_space<vmem>>, vector<1x256x18xf32>,
    %c1_i32 = arith.constant 1 : i32
    %50 = arith.addi %1, %c1_i32 : i32
    %c0_42 = arith.constant 0 : index
    %51 = arith.index_cast %50 : i32 to index
    %c0_43 = arith.constant 0 : index
    %c0_44 = arith.constant 0 : index
    %52 = vector.load %arg2[%c0_42, %51, %c0_43, %c0_44] : memref<1x18x18x4xf32, #tpu.memory_space<vmem>>, vector<1x16x16x4xf32>
    %53 = vector.shape_cast %52 : vector<1x16x16x4xf32> to vector<16x16x4xf32>
    %54 = vector.shape_cast %53 : vector<16x16x4xf32> to vector<256x4xf32>
    %c0_45 = arith.constant 0 : index
    %c0_46 = arith.constant 0 : index
    %c0_47 = arith.constant 0 : index
    %55 = vector.load %arg5[%c0_45, %c0_46, %c0_47] : memref<1x256x18xf32, #tpu.memory_space<vmem>>, vector<1x256x18xf32>
    %56 = vector.shape_cast %55 : vector<1x256x18xf32> to vector<256x18xf32>
    %c3 = arith.constant 3 : index
    %c0_48 = arith.constant 0 : index
    %c0_49 = arith.constant 0 : index
    %57 = vector.load %arg3[%c3, %c0_48, %c0_49] : memref<9x4x18xf32, #tpu.memory_space<vmem>>, vector<1x4x18xf32>
    %58 = vector.shape_cast %57 : vector<1x4x18xf32> to vector<4x18xf32>
    %cst_50 = arith.constant dense<0.000000e+00> : vector<256x18xf32>
    %59 = tpu.matmul %54, %58, %cst_50 {dimension_numbers = #tpu.dot_dimension_numbers<[1], [0], [0], [1], [0, 0, 1, 1], [], []>} : vector<256x4xf32>, vector<4x18xf32>, vector<256x18xf32> -> vector<256x18xf32>
    %60 = arith.addf %56, %59 : vector<256x18xf32>
    %c0_51 = arith.constant 0 : index
    %c0_52 = arith.constant 0 : index
    %c0_53 = arith.constant 0 : index
    %61 = vector.load %arg5[%c0_51, %c0_52, %c0_53] : memref<1x256x18xf32, #tpu.memory_space<vmem>>, vector<1x256x18xf32>
    %62 = vector.shape_cast %61 : vector<1x256x18xf32> to vector<256x18xf32>
    %63 = vector.shape_cast %60 : vector<256x18xf32> to vector<1x256x18xf32>
    tpu.vector_store %arg5[%c0_51, %c0_52, %c0_53], %63 {strides = array<i32>} : memref<1x256x18xf32, #tpu.memory_space<vmem>>, vector<1x256x18xf32>,
    %c1_i32_54 = arith.constant 1 : i32
    %64 = arith.addi %1, %c1_i32_54 : i32
    %c0_55 = arith.constant 0 : index
    %65 = arith.index_cast %64 : i32 to index
    %c1_56 = arith.constant 1 : index
    %c0_57 = arith.constant 0 : index
    %66 = vector.load %arg2[%c0_55, %65, %c1_56, %c0_57] : memref<1x18x18x4xf32, #tpu.memory_space<vmem>>, vector<1x16x16x4xf32>
    %67 = vector.shape_cast %66 : vector<1x16x16x4xf32> to vector<16x16x4xf32>
    %68 = vector.shape_cast %67 : vector<16x16x4xf32> to vector<256x4xf32>
    %c0_58 = arith.constant 0 : index
    %c0_59 = arith.constant 0 : index
    %c0_60 = arith.constant 0 : index
    %69 = vector.load %arg5[%c0_58, %c0_59, %c0_60] : memref<1x256x18xf32, #tpu.memory_space<vmem>>, vector<1x256x18xf32>
    %70 = vector.shape_cast %69 : vector<1x256x18xf32> to vector<256x18xf32>
    %c4 = arith.constant 4 : index
    %c0_61 = arith.constant 0 : index
    %c0_62 = arith.constant 0 : index
    %71 = vector.load %arg3[%c4, %c0_61, %c0_62] : memref<9x4x18xf32, #tpu.memory_space<vmem>>, vector<1x4x18xf32>
    %72 = vector.shape_cast %71 : vector<1x4x18xf32> to vector<4x18xf32>
    %cst_63 = arith.constant dense<0.000000e+00> : vector<256x18xf32>
    %73 = tpu.matmul %68, %72, %cst_63 {dimension_numbers = #tpu.dot_dimension_numbers<[1], [0], [0], [1], [0, 0, 1, 1], [], []>} : vector<256x4xf32>, vector<4x18xf32>, vector<256x18xf32> -> vector<256x18xf32>
    %74 = arith.addf %70, %73 : vector<256x18xf32>
    %c0_64 = arith.constant 0 : index
    %c0_65 = arith.constant 0 : index
    %c0_66 = arith.constant 0 : index
    %75 = vector.load %arg5[%c0_64, %c0_65, %c0_66] : memref<1x256x18xf32, #tpu.memory_space<vmem>>, vector<1x256x18xf32>
    %76 = vector.shape_cast %75 : vector<1x256x18xf32> to vector<256x18xf32>
    %77 = vector.shape_cast %74 : vector<256x18xf32> to vector<1x256x18xf32>
    tpu.vector_store %arg5[%c0_64, %c0_65, %c0_66], %77 {strides = array<i32>} : memref<1x256x18xf32, #tpu.memory_space<vmem>>, vector<1x256x18xf32>,
    %c1_i32_67 = arith.constant 1 : i32
    %78 = arith.addi %1, %c1_i32_67 : i32
    %c0_68 = arith.constant 0 : index
    %79 = arith.index_cast %78 : i32 to index
    %c2_69 = arith.constant 2 : index
    %c0_70 = arith.constant 0 : index
    %80 = vector.load %arg2[%c0_68, %79, %c2_69, %c0_70] : memref<1x18x18x4xf32, #tpu.memory_space<vmem>>, vector<1x16x16x4xf32>
    %81 = vector.shape_cast %80 : vector<1x16x16x4xf32> to vector<16x16x4xf32>
    %82 = vector.shape_cast %81 : vector<16x16x4xf32> to vector<256x4xf32>
    %c0_71 = arith.constant 0 : index
    %c0_72 = arith.constant 0 : index
    %c0_73 = arith.constant 0 : index
    %83 = vector.load %arg5[%c0_71, %c0_72, %c0_73] : memref<1x256x18xf32, #tpu.memory_space<vmem>>, vector<1x256x18xf32>
    %84 = vector.shape_cast %83 : vector<1x256x18xf32> to vector<256x18xf32>
    %c5 = arith.constant 5 : index
    %c0_74 = arith.constant 0 : index
    %c0_75 = arith.constant 0 : index
    %85 = vector.load %arg3[%c5, %c0_74, %c0_75] : memref<9x4x18xf32, #tpu.memory_space<vmem>>, vector<1x4x18xf32>
    %86 = vector.shape_cast %85 : vector<1x4x18xf32> to vector<4x18xf32>
    %cst_76 = arith.constant dense<0.000000e+00> : vector<256x18xf32>
    %87 = tpu.matmul %82, %86, %cst_76 {dimension_numbers = #tpu.dot_dimension_numbers<[1], [0], [0], [1], [0, 0, 1, 1], [], []>} : vector<256x4xf32>, vector<4x18xf32>, vector<256x18xf32> -> vector<256x18xf32>
    %88 = arith.addf %84, %87 : vector<256x18xf32>
    %c0_77 = arith.constant 0 : index
    %c0_78 = arith.constant 0 : index
    %c0_79 = arith.constant 0 : index
    %89 = vector.load %arg5[%c0_77, %c0_78, %c0_79] : memref<1x256x18xf32, #tpu.memory_space<vmem>>, vector<1x256x18xf32>
    %90 = vector.shape_cast %89 : vector<1x256x18xf32> to vector<256x18xf32>
    %91 = vector.shape_cast %88 : vector<256x18xf32> to vector<1x256x18xf32>
    tpu.vector_store %arg5[%c0_77, %c0_78, %c0_79], %91 {strides = array<i32>} : memref<1x256x18xf32, #tpu.memory_space<vmem>>, vector<1x256x18xf32>,
    %c2_i32 = arith.constant 2 : i32
    %92 = arith.addi %1, %c2_i32 : i32
    %c0_80 = arith.constant 0 : index
    %93 = arith.index_cast %92 : i32 to index
    %c0_81 = arith.constant 0 : index
    %c0_82 = arith.constant 0 : index
    %94 = vector.load %arg2[%c0_80, %93, %c0_81, %c0_82] : memref<1x18x18x4xf32, #tpu.memory_space<vmem>>, vector<1x16x16x4xf32>
    %95 = vector.shape_cast %94 : vector<1x16x16x4xf32> to vector<16x16x4xf32>
    %96 = vector.shape_cast %95 : vector<16x16x4xf32> to vector<256x4xf32>
    %c0_83 = arith.constant 0 : index
    %c0_84 = arith.constant 0 : index
    %c0_85 = arith.constant 0 : index
    %97 = vector.load %arg5[%c0_83, %c0_84, %c0_85] : memref<1x256x18xf32, #tpu.memory_space<vmem>>, vector<1x256x18xf32>
    %98 = vector.shape_cast %97 : vector<1x256x18xf32> to vector<256x18xf32>
    %c6 = arith.constant 6 : index
    %c0_86 = arith.constant 0 : index
    %c0_87 = arith.constant 0 : index
    %99 = vector.load %arg3[%c6, %c0_86, %c0_87] : memref<9x4x18xf32, #tpu.memory_space<vmem>>, vector<1x4x18xf32>
    %100 = vector.shape_cast %99 : vector<1x4x18xf32> to vector<4x18xf32>
    %cst_88 = arith.constant dense<0.000000e+00> : vector<256x18xf32>
    %101 = tpu.matmul %96, %100, %cst_88 {dimension_numbers = #tpu.dot_dimension_numbers<[1], [0], [0], [1], [0, 0, 1, 1], [], []>} : vector<256x4xf32>, vector<4x18xf32>, vector<256x18xf32> -> vector<256x18xf32>
    %102 = arith.addf %98, %101 : vector<256x18xf32>
    %c0_89 = arith.constant 0 : index
    %c0_90 = arith.constant 0 : index
    %c0_91 = arith.constant 0 : index
    %103 = vector.load %arg5[%c0_89, %c0_90, %c0_91] : memref<1x256x18xf32, #tpu.memory_space<vmem>>, vector<1x256x18xf32>
    %104 = vector.shape_cast %103 : vector<1x256x18xf32> to vector<256x18xf32>
    %105 = vector.shape_cast %102 : vector<256x18xf32> to vector<1x256x18xf32>
    tpu.vector_store %arg5[%c0_89, %c0_90, %c0_91], %105 {strides = array<i32>} : memref<1x256x18xf32, #tpu.memory_space<vmem>>, vector<1x256x18xf32>,
    %c2_i32_92 = arith.constant 2 : i32
    %106 = arith.addi %1, %c2_i32_92 : i32
    %c0_93 = arith.constant 0 : index
    %107 = arith.index_cast %106 : i32 to index
    %c1_94 = arith.constant 1 : index
    %c0_95 = arith.constant 0 : index
    %108 = vector.load %arg2[%c0_93, %107, %c1_94, %c0_95] : memref<1x18x18x4xf32, #tpu.memory_space<vmem>>, vector<1x16x16x4xf32>
    %109 = vector.shape_cast %108 : vector<1x16x16x4xf32> to vector<16x16x4xf32>
    %110 = vector.shape_cast %109 : vector<16x16x4xf32> to vector<256x4xf32>
    %c0_96 = arith.constant 0 : index
    %c0_97 = arith.constant 0 : index
    %c0_98 = arith.constant 0 : index
    %111 = vector.load %arg5[%c0_96, %c0_97, %c0_98] : memref<1x256x18xf32, #tpu.memory_space<vmem>>, vector<1x256x18xf32>
    %112 = vector.shape_cast %111 : vector<1x256x18xf32> to vector<256x18xf32>
    %c7 = arith.constant 7 : index
    %c0_99 = arith.constant 0 : index
    %c0_100 = arith.constant 0 : index
    %113 = vector.load %arg3[%c7, %c0_99, %c0_100] : memref<9x4x18xf32, #tpu.memory_space<vmem>>, vector<1x4x18xf32>
    %114 = vector.shape_cast %113 : vector<1x4x18xf32> to vector<4x18xf32>
    %cst_101 = arith.constant dense<0.000000e+00> : vector<256x18xf32>
    %115 = tpu.matmul %110, %114, %cst_101 {dimension_numbers = #tpu.dot_dimension_numbers<[1], [0], [0], [1], [0, 0, 1, 1], [], []>} : vector<256x4xf32>, vector<4x18xf32>, vector<256x18xf32> -> vector<256x18xf32>
    %116 = arith.addf %112, %115 : vector<256x18xf32>
    %c0_102 = arith.constant 0 : index
    %c0_103 = arith.constant 0 : index
    %c0_104 = arith.constant 0 : index
    %117 = vector.load %arg5[%c0_102, %c0_103, %c0_104] : memref<1x256x18xf32, #tpu.memory_space<vmem>>, vector<1x256x18xf32>
    %118 = vector.shape_cast %117 : vector<1x256x18xf32> to vector<256x18xf32>
    %119 = vector.shape_cast %116 : vector<256x18xf32> to vector<1x256x18xf32>
    tpu.vector_store %arg5[%c0_102, %c0_103, %c0_104], %119 {strides = array<i32>} : memref<1x256x18xf32, #tpu.memory_space<vmem>>, vector<1x256x18xf32>,
    %c2_i32_105 = arith.constant 2 : i32
    %120 = arith.addi %1, %c2_i32_105 : i32
    %c0_106 = arith.constant 0 : index
    %121 = arith.index_cast %120 : i32 to index
    %c2_107 = arith.constant 2 : index
    %c0_108 = arith.constant 0 : index
    %122 = vector.load %arg2[%c0_106, %121, %c2_107, %c0_108] : memref<1x18x18x4xf32, #tpu.memory_space<vmem>>, vector<1x16x16x4xf32>
    %123 = vector.shape_cast %122 : vector<1x16x16x4xf32> to vector<16x16x4xf32>
    %124 = vector.shape_cast %123 : vector<16x16x4xf32> to vector<256x4xf32>
    %c0_109 = arith.constant 0 : index
    %c0_110 = arith.constant 0 : index
    %c0_111 = arith.constant 0 : index
    %125 = vector.load %arg5[%c0_109, %c0_110, %c0_111] : memref<1x256x18xf32, #tpu.memory_space<vmem>>, vector<1x256x18xf32>
    %126 = vector.shape_cast %125 : vector<1x256x18xf32> to vector<256x18xf32>
    %c8 = arith.constant 8 : index
    %c0_112 = arith.constant 0 : index
    %c0_113 = arith.constant 0 : index
    %127 = vector.load %arg3[%c8, %c0_112, %c0_113] : memref<9x4x18xf32, #tpu.memory_space<vmem>>, vector<1x4x18xf32>
    %128 = vector.shape_cast %127 : vector<1x4x18xf32> to vector<4x18xf32>
    %cst_114 = arith.constant dense<0.000000e+00> : vector<256x18xf32>
    %129 = tpu.matmul %124, %128, %cst_114 {dimension_numbers = #tpu.dot_dimension_numbers<[1], [0], [0], [1], [0, 0, 1, 1], [], []>} : vector<256x4xf32>, vector<4x18xf32>, vector<256x18xf32> -> vector<256x18xf32>
    %130 = arith.addf %126, %129 : vector<256x18xf32>
    %c0_115 = arith.constant 0 : index
    %c0_116 = arith.constant 0 : index
    %c0_117 = arith.constant 0 : index
    %131 = vector.load %arg5[%c0_115, %c0_116, %c0_117] : memref<1x256x18xf32, #tpu.memory_space<vmem>>, vector<1x256x18xf32>
    %132 = vector.shape_cast %131 : vector<1x256x18xf32> to vector<256x18xf32>
    %133 = vector.shape_cast %130 : vector<256x18xf32> to vector<1x256x18xf32>
    tpu.vector_store %arg5[%c0_115, %c0_116, %c0_117], %133 {strides = array<i32>} : memref<1x256x18xf32, #tpu.memory_space<vmem>>, vector<1x256x18xf32>,
    return
  }
  func.func @transform_0(%arg0: i32, %arg1: i32) -> (i32, i32, i32, i32) {
    %c0_i32 = arith.constant 0 : i32
    %c0_i32_0 = arith.constant 0 : i32
    %c0_i32_1 = arith.constant 0 : i32
    %c0_i32_2 = arith.constant 0 : i32
    return %arg0, %c0_i32, %c0_i32_0, %c0_i32_1 : i32, i32, i32, i32
  }
  func.func @transform_1(%arg0: i32, %arg1: i32) -> (i32, i32, i32) {
    %c0_i32 = arith.constant 0 : i32
    %c0_i32_0 = arith.constant 0 : i32
    %c0_i32_1 = arith.constant 0 : i32
    %c0_i32_2 = arith.constant 0 : i32
    return %c0_i32, %c0_i32_0, %c0_i32_1 : i32, i32, i32
  }
  func.func @transform_2(%arg0: i32, %arg1: i32) -> (i32, i32) {
    %c0_i32 = arith.constant 0 : i32
    %c0_i32_0 = arith.constant 0 : i32
    %c0_i32_1 = arith.constant 0 : i32
    return %c0_i32, %c0_i32_0 : i32, i32
  }
  func.func @transform_3(%arg0: i32, %arg1: i32) -> (i32, i32, i32) {
    %c0_i32 = arith.constant 0 : i32
    %c0_i32_0 = arith.constant 0 : i32
    return %arg0, %arg1, %c0_i32 : i32, i32, i32
  }
}

module attributes {stable_mosaic.version = 11 : i64} {
  func.func @_deform_matmul_ck_kernel(%arg0: i32, %arg1: i32, %arg2: memref<1x36x256xbf16, #tpu.memory_space<vmem>>, %arg3: memref<4x36xbf16, #tpu.memory_space<vmem>>, %arg4: memref<1x4x256xf32, #tpu.memory_space<vmem>>) attributes {dimension_semantics = [#tpu.dimension_semantics<parallel>, #tpu.dimension_semantics<parallel>], iteration_bounds = array<i64: 2, 1>, scalar_prefetch = 0 : i64, scratch_operands = 0 : i64, tpu.core_type = #tpu.core_type<tc>, window_params = [{transform_indices = @transform_0, window_bounds = array<i64: 1, 36, 256>}, {pipeline_mode = #tpu.pipeline_mode<synchronous>, transform_indices = @transform_1, window_bounds = array<i64: 4, 36>}, {transform_indices = @transform_2, window_bounds = array<i64: 1, 4, 256>}]} {
    %c0 = arith.constant 0 : index
    %c0_0 = arith.constant 0 : index
    %0 = vector.load %arg3[%c0, %c0_0] : memref<4x36xbf16, #tpu.memory_space<vmem>>, vector<4x36xbf16>
    %c0_1 = arith.constant 0 : index
    %c0_2 = arith.constant 0 : index
    %c0_3 = arith.constant 0 : index
    %1 = vector.load %arg2[%c0_1, %c0_2, %c0_3] : memref<1x36x256xbf16, #tpu.memory_space<vmem>>, vector<1x36x256xbf16>
    %2 = vector.shape_cast %1 : vector<1x36x256xbf16> to vector<36x256xbf16>
    %cst = arith.constant dense<0.000000e+00> : vector<4x256xf32>
    %3 = tpu.matmul %0, %2, %cst {dimension_numbers = #tpu.dot_dimension_numbers<[1], [0], [0], [1], [0, 0, 1, 1], [], []>} : vector<4x36xbf16>, vector<36x256xbf16>, vector<4x256xf32> -> vector<4x256xf32>
    %c0_4 = arith.constant 0 : index
    %c0_5 = arith.constant 0 : index
    %c0_6 = arith.constant 0 : index
    %4 = vector.load %arg4[%c0_4, %c0_5, %c0_6] : memref<1x4x256xf32, #tpu.memory_space<vmem>>, vector<1x4x256xf32>
    %5 = vector.shape_cast %4 : vector<1x4x256xf32> to vector<4x256xf32>
    %6 = vector.shape_cast %3 : vector<4x256xf32> to vector<1x4x256xf32>
    tpu.vector_store %arg4[%c0_4, %c0_5, %c0_6], %6 {strides = array<i32>} : memref<1x4x256xf32, #tpu.memory_space<vmem>>, vector<1x4x256xf32>,
    return
  }
  func.func @transform_0(%arg0: i32, %arg1: i32) -> (i32, i32, i32) {
    %c0_i32 = arith.constant 0 : i32
    %c0_i32_0 = arith.constant 0 : i32
    return %arg0, %c0_i32, %arg1 : i32, i32, i32
  }
  func.func @transform_1(%arg0: i32, %arg1: i32) -> (i32, i32) {
    %c0_i32 = arith.constant 0 : i32
    %c0_i32_0 = arith.constant 0 : i32
    %c0_i32_1 = arith.constant 0 : i32
    return %c0_i32, %c0_i32_0 : i32, i32
  }
  func.func @transform_2(%arg0: i32, %arg1: i32) -> (i32, i32, i32) {
    %c0_i32 = arith.constant 0 : i32
    %c0_i32_0 = arith.constant 0 : i32
    return %arg0, %c0_i32, %arg1 : i32, i32, i32
  }
}

</mosaic_0001>

<bundles_post_ra>
// kernel: deform_conv3d_forward.2
= control target key start
LH: loop header
LB: loop body
LE: loop exit
PB: predicated region body
PF: predicated region fallthrough
CT: control target
= control target key end

     0   :  { %8 = vsyncpa [#allocation3], 0  ;;  %s7829_s0 = inlined_call_operand.vmem [shape: f32[2,18,18,4], index: 0, kind: input, shape index: {}]   ;;  %s7830_s1 = inlined_call_operand.hbm [shape: f32[9,4,18], index: 1, kind: input, shape index: {}]   ;;  %s7831_s2 = inlined_call_operand.hbm [shape: f32[1,18], index: 2, kind: input, shape index: {}]   ;;  %s7832_s3 = inlined_call_operand.vmem [shape: f32[2,256,18], index: 3, kind: output, shape index: {}]  }
   0x1   :  { %9 = vsyncpa [#allocation5], 0  ;;  %s5885_s12 = smov 0   ;;  %s5887_s13 = smov 0  }
   0x2   :  { %s5889_s14 = smov 0  }
   0x3 LB: > { %s4471_s15 = sadd.s32 4294967295, %s5859_s14   ;;  %s27_s16 = sadd.s32 1, %s5855_s13  ;;  %s5859_s14 = sphi %s5889_s14, %s15_s14   ;;  %s5855_s13 = sphi %s5887_s13, %s7935_s13   ;;  %s5851_s12 = sphi %s5885_s12, %s7934_s12  }
   0x4   : > { %p29_p0 = scmp.ge.s32.totalorder %s27_s16, 2  ;;  %p4473_p1 = scmp.ge.s32.totalorder %s5859_s14, 1 }
   0x5   : > { %p128_p2 = scmp.lt.s32.totalorder %s5859_s14, 3  ;;  %p5910_p4 = scmp.eq.s32.totalorder %s4471_s15, 0 }
   0x6   : > { %s7937_s16 = smov (%p29_p0, %s27_s16), 0  ;;  %s5861_s19 = smov [#allocation2]  }
   0x7   : > { %p5906_p3 = pnand %p4473_p1, %p128_p2  ;;  %s140_s20 = sshll.u32 %s5861_s19, 4  ;;  %s141_s20 = int_to_ptr.vmem [resolvable:$true] %s140_s20 }
   0x8   : > { %s7872_s18 = scalar_select %p5910_p4, 1, 0 }
   0x9   : > { %s7871_s17 = scalar_select %p5906_p3, 1, 0 }
   0xa   : > { %p5734_p5 = pneg %p5906_p3  ;;  %s5862_s22 = smov [#allocation4]  }
   0xb   : > { %s154_s23 = sshll.u32 %s5862_s22, 4  ;;  %s5773_s26 = scalar_lea.hbm %s7830_s1, 576  ;;  %s5922_s23 = int_to_ptr.vmem [resolvable:$true] %s154_s23 }
   0xc   : > { %p5918_p6 = pnand %p5910_p4, %p5734_p5  ;;  %p5774_p7 = scmp.ne.s32.totalorder %s7830_s1, %s5773_s26 }
   0xd   : > { %p5780_p11 = scmp.lt.u32.totalorder %s5773_s26, %s7830_s1 }
   0xe   : > { %p5775_p8 = pneg %p5918_p6 }
  0x10   : > { %p5776_p9 = pnand %p5775_p8, %p5774_p7 }
  0x12   : > { %p5777_p10 = pneg %p5776_p9 }
  0x14   : > { %p5782_p12 = pnand %p5780_p11, %p5777_p10 }
  0x16   : > { %5785 = shalt.err (!%p5782_p12)
}
  0x17   : > { %s5786_s4 = scalar_lea.vmem %s141_s20, 576  ;;  %p5794_p2 = scmp.lt.s32.totalorder %s141_s20, %s141_s20 }
  0x18   : > { %p5787_p13 = scmp.ne.s32.totalorder %s141_s20, %s5786_s4  ;;  %p5795_p5 = scmp.lt.s32.totalorder %s5786_s4, %s5786_s4 }
  0x1a   : > { %p5789_p0 = pnand %p5787_p13, %p5775_p8  ;;  %p5796_p4 = por %p5795_p5, %p5794_p2 }
  0x1c   : > { %p5790_p1 = pneg %p5789_p0 }
  0x1e   : > { %p5797_p3 = pnand %p5796_p4, %p5790_p1 }
  0x20   : > { %5800 = shalt.err (!%p5797_p3)
}
  0x21   : > { %s5863_s5 = smov 64   ;;  %s5864_s6 = smov 4  }
  0x22   : > { %5737 = dma.hbm_to_vmem [thread:$0]  (!%p5918_p6), %s7830_s1, 576, %s141_s20, [#allocation3], %s5863_s5, %s5863_s5, %s5864_s6  }
  0x23   : > { %s5801_s11 = scalar_lea.hbm %s7831_s2, 16 }
  0x24   : > { %p5802_p7 = scmp.ne.s32.totalorder %s7831_s2, %s5801_s11  ;;  %p5808_p9 = scmp.lt.u32.totalorder %s5801_s11, %s7831_s2 }
  0x26   : > { %p5804_p3 = pnand %p5802_p7, %p5775_p8 }
  0x28   : > { %p5805_p4 = pneg %p5804_p3 }
  0x2a   : > { %p5810_p10 = pnand %p5808_p9, %p5805_p4 }
  0x2c   : > { %5813 = shalt.err (!%p5810_p10)
}
  0x2d   : > { %s5814_s20 = scalar_lea.vmem %s5922_s23, 16  ;;  %s5821_s25 = scalar_lea.vmem %s5922_s23, 32 }
  0x2e   : > { %p5815_p11 = scmp.ne.s32.totalorder %s5922_s23, %s5814_s20  ;;  %p5822_p0 = scmp.lt.s32.totalorder %s5922_s23, %s5922_s23 }
  0x2f   : > { %p5823_p1 = scmp.lt.s32.totalorder %s5821_s25, %s5814_s20 }
  0x30   : > { %p5817_p12 = pnand %p5815_p11, %p5775_p8 }
  0x31   : > { %p5824_p2 = por %p5823_p1, %p5822_p0 }
  0x32   : > { %p5818_p13 = pneg %p5817_p12 }
  0x34   : > { %p5825_p5 = pnand %p5824_p2, %p5818_p13 }
  0x36   : > { %5828 = shalt.err (!%p5825_p5)
}
  0x37   : > { %5740 = dma.hbm_to_vmem [thread:$0]  (!%p5918_p6), %s7831_s2, 16, %s5922_s23, [#allocation5]  }
  0x38   : > { %p7874_p7 = scmp.ne.s32.totalorder %s7871_s17, 0 }
  0x3a   : > { %175 = sbr.rel (%p7874_p7) target bundleno = 588 (0x24c), region = 32 }
  0x41   : > { %p7875_p8 = scmp.ne.s32.totalorder %s7872_s18, 0 }
  0x43   : > { %5842 = dma.done.wait (%p7875_p8), [#allocation3], 576  }
  0x44   : > { %5844 = vsyncadd (%p7875_p8), [#allocation3], 4294966720 }
  0x45   : > { %5846 = dma.done.wait (%p7875_p8), [#allocation5], 16  }
  0x46   : > { %5848 = vsyncadd (%p7875_p8), [#allocation5], 4294967280  ;;  %p207_p3 = scmp.lt.s32.totalorder %s5851_s12, 1  ;;  %vm427_vm0 = vcmask 1043456   ;;  %vm330_vm1 = vcmask 31744   ;;  %vm230_vm2 = vcmask 146432  }
  0x47   : > { %v329_v0 = vld [vmem:[#allocation2] sm:$0xf]  ;;  %v785_v3 = vld [vmem:[#allocation2 + $0x4] sm:$0xf]  ;;  %v1239_v7 = vld [vmem:[#allocation2 + $0x8] sm:$0xf] }
  0x48   : > { %s7939_s12 = smov (!%p207_p3, %s5851_s12), 1  ;;  %5723 = vmatprep.subr.msk.mxu1 %vm427_vm0, %v329_v0  ;;  %5273 = vmatprep.subr.msk.mxu0 %vm427_vm0, %v329_v0  ;;  %v1696_v16 = vld [vmem:[#allocation2 + $0xc] sm:$0xf]  ;;  %v2150_v20 = vld [vmem:[#allocation2 + $0x10] sm:$0xf] }
  0x49   : > { %s5725_s17 = smul.u32 432, %s7939_s12  ;;  %5724 = vmatpush3.msk.msra.mxu1 %vm427_vm0, %v329_v0  ;;  %5274 = vmatpush3.msk.msra.mxu0 %vm427_vm0, %v329_v0  ;;  %v6163_v41 = vld [vmem:[#allocation2 + $0x14] sm:$0xf]  ;;  %v6183_v46 = vld [vmem:[#allocation2 + $0x18] sm:$0xf]  ;;  %s4975_s18 = sshll.u32 %s7939_s12, 8 }
  0x4a   : > { %5323 = vmatprep.subr.msk.mxu1 %vm427_vm0, %v785_v3  ;;  %5373 = vmatprep.subr.msk.mxu0 %vm427_vm0, %v1239_v7  ;;  %s6379_s4 = scalar_lea.vmem %s7832_s3, %s4975_s18 }
  0x4b   : > { %s5990_s28 = scalar_lea.vmem %s7829_s0, %s5725_s17 }
  0x4c   : > { %v5993_v1 = vld [vmem:[%s5990_s28 + $0xc0] sm:$0xff]  ;;  %v5996_v2 = vld [vmem:[%s5990_s28 + $0xc8] sm:$0xff]  ;;  %v6002_v4 = vld [vmem:[%s5990_s28 + $0xd8] sm:$0xff] }
  0x4d   : > { %5299 = vmatprep.mubr.msk.f32.mxu1 %vm330_vm1, %v5993_v1  ;;  %v265_v5 = vld [vmem:[%s5990_s28] sm:$0xff]  ;;  %v266_v6 = vld [vmem:[%s5990_s28 + $0x8] sm:$0xff]  ;;  %v6018_v9 = vld [vmem:[%s5990_s28 + $0xf0] sm:$0xff] }
  0x4e   : > { %5300 = vmatmul.mubr.msk.f32.vlgmr.msra.gmra.mrb[0].mxu1 %vm330_vm1, %v5996_v2  ;;  %v6015_v8 = vld [vmem:[%s5990_s28 + $0xe0] sm:$0xff]  ;;  %5275 = vmatprep.mubr.msk.f32.mxu0 %vm330_vm1, %v265_v5  ;;  %v6023_v10 = vld [vmem:[%s5990_s28 + $0x18] sm:$0xff]  ;;  %v6041_v13 = vld [vmem:[%s5990_s28 + $0x30] sm:$0xff] }
  0x4f   : > { %5324 = vmatpush3.msk.msra.mxu1 %vm427_vm0, %v785_v3  ;;  %5302 = vmatprep.mubr.msk.f32.mxu1 %vm330_vm1, %v6002_v4  ;;  %v6031_v11 = vld [vmem:[%s5990_s28 + $0x20] sm:$0xff]  ;;  %v6036_v12 = vld [vmem:[%s5990_s28 + $0xf8] sm:$0xff]  ;;  %v6044_v14 = vld [vmem:[%s5990_s28 + $0x108] sm:$0xff] }
  0x50   : > { %5276 = vmatmul.mubr.msk.f32.vlgmr.msra.gmra.mrb[0].mxu0 %vm330_vm1, %v266_v6  ;;  %v6053_v15 = vld [vmem:[%s5990_s28 + $0x38] sm:$0xff]  ;;  %v6058_v17 = vld [vmem:[%s5990_s28 + $0x110] sm:$0xff]  ;;  %v6061_v18 = vld [vmem:[%s5990_s28 + $0x48] sm:$0xff]  ;;  %5423 = vmatprep.subr.msk.mxu1 %vm427_vm0, %v1696_v16 }
  0x51   : > { %5374 = vmatpush3.msk.msra.mxu0 %vm427_vm0, %v1239_v7  ;;  %5278 = vmatprep.mubr.msk.f32.mxu0 %vm330_vm1, %v6023_v10  ;;  %v6065_v19 = vld [vmem:[%s5990_s28 + $0x120] sm:$0xff]  ;;  %v6074_v21 = vld [vmem:[%s5990_s28 + $0x50] sm:$0xff]  ;;  %v6079_v22 = vld [vmem:[%s5990_s28 + $0x128] sm:$0xff] }
  0x52   : > { %5303 = vmatmul.mubr.msk.f32.gmra.mrb[2].mxu1 %vm330_vm1, %v6015_v8  ;;  %v6082_v23 = vld [vmem:[%s5990_s28 + $0x60] sm:$0xff]  ;;  %5473 = vmatprep.subr.msk.mxu0 %vm427_vm0, %v2150_v20  ;;  %v6086_v24 = vld [vmem:[%s5990_s28 + $0x138] sm:$0xff]  ;;  %v6095_v25 = vld [vmem:[%s5990_s28 + $0x68] sm:$0xff] }
  0x53   : > { %5305 = vmatprep.mubr.msk.f32.mxu1 %vm330_vm1, %v6018_v9  ;;  %v6100_v26 = vld [vmem:[%s5990_s28 + $0x140] sm:$0xff]  ;;  %v6103_v27 = vld [vmem:[%s5990_s28 + $0x78] sm:$0xff]  ;;  %v6106_v28 = vld [vmem:[%s5990_s28 + $0x150] sm:$0xff] }
  0x54   : > { %5279 = vmatmul.mubr.msk.f32.gmra.mrb[2].mxu0 %vm330_vm1, %v6031_v11  ;;  %v6115_v29 = vld [vmem:[%s5990_s28 + $0x80] sm:$0xff]  ;;  %v6120_v30 = vld [vmem:[%s5990_s28 + $0x158] sm:$0xff]  ;;  %v6123_v31 = vld [vmem:[%s5990_s28 + $0x90] sm:$0xff] }
  0x55   : > { %5281 = vmatprep.mubr.msk.f32.mxu0 %vm330_vm1, %v6041_v13  ;;  %v6126_v32 = vld [vmem:[%s5990_s28 + $0x168] sm:$0xff]  ;;  %v6135_v33 = vld [vmem:[%s5990_s28 + $0x98] sm:$0xff]  ;;  %v6140_v34 = vld [vmem:[%s5990_s28 + $0x170] sm:$0xff] }
  0x56   : > { %5306 = vmatmul.mubr.msk.f32.gmra.mrb[4].mxu1 %vm330_vm1, %v6036_v12  ;;  %7876 = vst [vmem:[#allocation8_spill] sm:$0xff] %v6126_v32  ;;  %7877 = vst [vmem:[#allocation9_spill] sm:$0xff] %v6140_v34  ;;  %v6143_v35 = vld [vmem:[%s5990_s28 + $0xa8] sm:$0xff]  ;;  %v6153_v37 = vld [vmem:[%s5990_s28 + $0xb0] sm:$0xff] }
  0x57   : > { %5308 = vmatprep.mubr.msk.f32.mxu1 %vm330_vm1, %v6044_v14  ;;  %v720_v36 = vld [vmem:[%s5990_s28 + $0x1] sm:$0xff]  ;;  %v721_v38 = vld [vmem:[%s5990_s28 + $0x9] sm:$0xff]  ;;  %v6159_v40 = vld [vmem:[%s5990_s28 + $0x19] sm:$0xff] }
  0x58   : > { %5282 = vmatmul.mubr.msk.f32.gmra.mrb[4].mxu0 %vm330_vm1, %v6053_v15  ;;  %v1174_v39 = vld [vmem:[%s5990_s28 + $0x2] sm:$0xff]  ;;  %v1175_v42 = vld [vmem:[%s5990_s28 + $0xa] sm:$0xff]  ;;  %v6178_v45 = vld [vmem:[%s5990_s28 + $0x1a] sm:$0xff] }
  0x59   : > { %5284 = vmatprep.mubr.msk.f32.mxu0 %vm330_vm1, %v6061_v18  ;;  %v6172_v43 = vld [vmem:[%s5990_s28 + $0x21] sm:$0xff]  ;;  %v6175_v44 = vld [vmem:[%s5990_s28 + $0x31] sm:$0xff]  ;;  %7878 = vst [vmem:[#allocation10_spill] sm:$0xff] %v6178_v45  ;;  %v6194_v48 = vld [vmem:[%s5990_s28 + $0x39] sm:$0xff] }
  0x5a   : > { %5309 = vmatmul.mubr.msk.f32.gmra.mrb[6].mxu1 %vm330_vm1, %v6058_v17  ;;  %v6189_v47 = vld [vmem:[%s5990_s28 + $0x22] sm:$0xff]  ;;  %v6199_v49 = vld [vmem:[%s5990_s28 + $0x32] sm:$0xff]  ;;  %v6213_v51 = vld [vmem:[%s5990_s28 + $0x3a] sm:$0xff] }
  0x5b   : > { %5311 = vmatprep.mubr.msk.f32.mxu1 %vm330_vm1, %v6065_v19  ;;  %7879 = vst [vmem:[#allocation11_spill] sm:$0xff] %v6189_v47  ;;  %7880 = vst [vmem:[#allocation12_spill] sm:$0xff] %v6199_v49  ;;  %v6202_v50 = vld [vmem:[%s5990_s28 + $0x49] sm:$0xff]  ;;  %v6218_v52 = vld [vmem:[%s5990_s28 + $0x51] sm:$0xff] }
  0x5c   : > { %5285 = vmatmul.mubr.msk.f32.gmra.mrb[6].mxu0 %vm330_vm1, %v6074_v21  ;;  %7881 = vst [vmem:[#allocation13_spill] sm:$0xff] %v6213_v51  ;;  %v6221_v53 = vld [vmem:[%s5990_s28 + $0x4a] sm:$0xff]  ;;  %v6224_v54 = vld [vmem:[%s5990_s28 + $0x61] sm:$0xff]  ;;  %v6233_v55 = vld [vmem:[%s5990_s28 + $0x52] sm:$0xff] }
  0x5d   : > { %5287 = vmatprep.mubr.msk.f32.mxu0 %vm330_vm1, %v6082_v23  ;;  %7882 = vst [vmem:[#allocation14_spill] sm:$0xff] %v6221_v53  ;;  %7883 = vst [vmem:[#allocation15_spill] sm:$0xff] %v6233_v55  ;;  %v6238_v56 = vld [vmem:[%s5990_s28 + $0x69] sm:$0xff]  ;;  %v6244_v58 = vld [vmem:[%s5990_s28 + $0x79] sm:$0xff] }
  0x5e   : > { %5312 = vmatmul.mubr.msk.f32.gmra.mrb[8].mxu1 %vm330_vm1, %v6079_v22  ;;  %v6241_v57 = vld [vmem:[%s5990_s28 + $0x62] sm:$0xff]  ;;  %v6253_v59 = vld [vmem:[%s5990_s28 + $0x6a] sm:$0xff]  ;;  %v6261_v61 = vld [vmem:[%s5990_s28 + $0x7a] sm:$0xff] }
  0x5f   : > { %5314 = vmatprep.mubr.msk.f32.mxu1 %vm330_vm1, %v6086_v24  ;;  %7884 = vst [vmem:[#allocation16_spill] sm:$0xff] %v6241_v57  ;;  %7885 = vst [vmem:[#allocation17_spill] sm:$0xff] %v6253_v59  ;;  %v6258_v60 = vld [vmem:[%s5990_s28 + $0x81] sm:$0xff]  ;;  %v6264_v62 = vld [vmem:[%s5990_s28 + $0x91] sm:$0xff] }
  0x60   : > { %5288 = vmatmul.mubr.msk.f32.gmra.mrb[8].mxu0 %vm330_vm1, %v6095_v25  ;;  %7886 = vst [vmem:[#allocation18_spill] sm:$0xff] %v6261_v61  ;;  %v6273_v63 = vld [vmem:[%s5990_s28 + $0x82] sm:$0xff]  ;;  %v6278_v0 = vld [vmem:[%s5990_s28 + $0x99] sm:$0xff]  ;;  %v6298_v7 = vld [vmem:[%s5990_s28 + $0xb1] sm:$0xff] }
  0x61   : > { %5290 = vmatprep.mubr.msk.f32.mxu0 %vm330_vm1, %v6103_v27  ;;  %7887 = vst [vmem:[#allocation19_spill] sm:$0xff] %v6273_v63  ;;  %v6281_v3 = vld [vmem:[%s5990_s28 + $0x92] sm:$0xff]  ;;  %v6284_v5 = vld [vmem:[%s5990_s28 + $0xa9] sm:$0xff]  ;;  %v6293_v6 = vld [vmem:[%s5990_s28 + $0x9a] sm:$0xff] }
  0x62   : > { %5315 = vmatmul.mubr.msk.f32.gmra.mrb[10].mxu1 %vm330_vm1, %v6100_v26  ;;  %7888 = vst [vmem:[#allocation20_spill] sm:$0xff] %v6281_v3  ;;  %7889 = vst [vmem:[#allocation21_spill] sm:$0xff] %v6293_v6 }
  0x63   : > { %5317 = vmatprep.mubr.msk.f32.mxu1 %vm330_vm1, %v6106_v28 }
  0x64   : > { %5291 = vmatmul.mubr.msk.f32.gmra.mrb[10].mxu0 %vm330_vm1, %v6115_v29 }
  0x65   : > { %5293 = vmatprep.mubr.msk.f32.mxu0 %vm330_vm1, %v6123_v31 }
  0x66   : > { %5318 = vmatmul.mubr.msk.f32.gmra.mrb[12].mxu1 %vm330_vm1, %v6120_v30 }
  0x67   : > { %5320 = vmatprep.mubr.msk.f32.mxu1 %vm330_vm1, %v6126_v32  ;;  %v6531_v32 = vld [vmem:[%s5990_s28 + $0x16a] sm:$0xff] }
  0x68   : > { %5294 = vmatmul.mubr.msk.f32.gmra.mrb[12].mxu0 %vm330_vm1, %v6135_v33 }
  0x69   : > { %5296 = vmatprep.mubr.msk.f32.mxu0 %vm330_vm1, %v6143_v35 }
  0x6a   : > { %5321 = vmatmul.mubr.msk.f32.gmra.mrb[14].mxu1 %vm330_vm1, %v6140_v34  ;;  %v6514_v34 = vld [vmem:[%s5990_s28 + $0x169] sm:$0xff] }
  0x6b   : > { %5325 = vmatprep.mubr.msk.f32.mxu1 %vm330_vm1, %v720_v36  ;;  %v6313_v36 = vld [vmem:[%s5990_s28 + $0xb2] sm:$0xff] }
  0x6c   : > { %5297 = vmatmul.mubr.msk.f32.gmra.mrb[14].mxu0 %vm330_vm1, %v6153_v37  ;;  %7891 = vst [vmem:[#allocation23_spill] sm:$0xff] %v6313_v36 }
  0x6d   : > { %5375 = vmatprep.mubr.msk.f32.mxu0 %vm330_vm1, %v1174_v39  ;;  %v6321_v39 = vld [vmem:[%s5990_s28 + $0xc2] sm:$0xff] }
  0x6e   : > { %5326 = vmatmul.mubr.msk.f32.vlgmr.msra.gmra.mrb[16].mxu1 %vm330_vm1, %v721_v38  ;;  %v6318_v38 = vld [vmem:[%s5990_s28 + $0xc9] sm:$0xff]  ;;  %7892 = vst [vmem:[#allocation24_spill] sm:$0xff] %v6321_v39 }
  0x6f   : > { %5424 = vmatpush3.msk.msra.mxu1 %vm427_vm0, %v1696_v16  ;;  %5328 = vmatprep.mubr.msk.f32.mxu1 %vm330_vm1, %v6159_v40  ;;  %v6301_v16 = vld [vmem:[%s5990_s28 + $0xaa] sm:$0xff] }
  0x70   : > { %5523 = vmatprep.subr.msk.mxu1 %vm427_vm0, %v6163_v41  ;;  %5376 = vmatmul.mubr.msk.f32.vlgmr.msra.gmra.mrb[16].mxu0 %vm330_vm1, %v1175_v42  ;;  %7890 = vst [vmem:[#allocation22_spill] sm:$0xff] %v6301_v16  ;;  %v6324_v42 = vld [vmem:[%s5990_s28 + $0xd9] sm:$0xff] }
  0x71   : > { %5474 = vmatpush3.msk.msra.mxu0 %vm427_vm0, %v2150_v20  ;;  %5378 = vmatprep.mubr.msk.f32.mxu0 %vm330_vm1, %v6178_v45  ;;  %v6304_v20 = vld [vmem:[%s5990_s28 + $0xc1] sm:$0xff]  ;;  %v6511_v45 = vld [vmem:[%s5990_s28 + $0x152] sm:$0xff] }
  0x72   : > { %5329 = vmatmul.mubr.msk.f32.gmra.mrb[18].mxu1 %vm330_vm1, %v6172_v43  ;;  %5573 = vmatprep.subr.msk.mxu0 %vm427_vm0, %v6183_v46  ;;  %7904 = vst [vmem:[#allocation36_spill] sm:$0xff] %v6511_v45 }
  0x73   : > { %5331 = vmatprep.mubr.msk.f32.mxu1 %vm330_vm1, %v6175_v44 }
  0x74   : > { %5379 = vmatmul.mubr.msk.f32.gmra.mrb[18].mxu0 %vm330_vm1, %v6189_v47  ;;  %v6494_v47 = vld [vmem:[%s5990_s28 + $0x151] sm:$0xff] }
  0x75   : > { %5381 = vmatprep.mubr.msk.f32.mxu0 %vm330_vm1, %v6199_v49  ;;  %v6491_v49 = vld [vmem:[%s5990_s28 + $0x13a] sm:$0xff] }
  0x76   : > { %5332 = vmatmul.mubr.msk.f32.gmra.mrb[20].mxu1 %vm330_vm1, %v6194_v48  ;;  %7902 = vst [vmem:[#allocation34_spill] sm:$0xff] %v6491_v49 }
  0x77   : > { %5334 = vmatprep.mubr.msk.f32.mxu1 %vm330_vm1, %v6202_v50 }
  0x78   : > { %5382 = vmatmul.mubr.msk.f32.gmra.mrb[20].mxu0 %vm330_vm1, %v6213_v51  ;;  %v6488_v51 = vld [vmem:[%s5990_s28 + $0x141] sm:$0xff] }
  0x79   : > { %5384 = vmatprep.mubr.msk.f32.mxu0 %vm330_vm1, %v6221_v53  ;;  %v6474_v53 = vld [vmem:[%s5990_s28 + $0x139] sm:$0xff] }
  0x7a   : > { %5335 = vmatmul.mubr.msk.f32.gmra.mrb[22].mxu1 %vm330_vm1, %v6218_v52 }
  0x7b   : > { %5337 = vmatprep.mubr.msk.f32.mxu1 %vm330_vm1, %v6224_v54 }
  0x7c   : > { %5385 = vmatmul.mubr.msk.f32.gmra.mrb[22].mxu0 %vm330_vm1, %v6233_v55  ;;  %v6399_v55 = vld [vmem:[%s5990_s28 + $0x112] sm:$0xff] }
  0x7d   : > { %5387 = vmatprep.mubr.msk.f32.mxu0 %vm330_vm1, %v6241_v57  ;;  %v4483_v57 = vld [vmem:[#allocation4] ss:$0 sm:$0xff]  ;;  %7899 = vst [vmem:[#allocation31_spill] sm:$0xff] %v6399_v55 }
  0x7e   : > { %5338 = vmatmul.mubr.msk.f32.gmra.mrb[24].mxu1 %vm330_vm1, %v6238_v56  ;;  %248 = vst.msk [vmem:[%s6379_s4 + $0x88] sm:$0xff] %vm230_vm2, %v4483_v57  ;;  %231 = vst.msk [vmem:[%s6379_s4] sm:$0xff] %vm230_vm2, %v4483_v57 }
  0x7f   : > { %5340 = vmatprep.mubr.msk.f32.mxu1 %vm330_vm1, %v6244_v58  ;;  %232 = vst.msk [vmem:[%s6379_s4 + $0x8] sm:$0xff] %vm230_vm2, %v4483_v57  ;;  %233 = vst.msk [vmem:[%s6379_s4 + $0x10] sm:$0xff] %vm230_vm2, %v4483_v57 }
  0x80   : > { %5388 = vmatmul.mubr.msk.f32.gmra.mrb[24].mxu0 %vm330_vm1, %v6253_v59  ;;  %v6390_v59 = vld [vmem:[%s5990_s28 + $0x121] sm:$0xff]  ;;  %234 = vst.msk [vmem:[%s6379_s4 + $0x18] sm:$0xff] %vm230_vm2, %v4483_v57  ;;  %235 = vst.msk [vmem:[%s6379_s4 + $0x20] sm:$0xff] %vm230_vm2, %v4483_v57 }
  0x81   : > { %5390 = vmatprep.mubr.msk.f32.mxu0 %vm330_vm1, %v6261_v61  ;;  %v6361_v61 = vld [vmem:[%s5990_s28 + $0xf2] sm:$0xff]  ;;  %236 = vst.msk [vmem:[%s6379_s4 + $0x28] sm:$0xff] %vm230_vm2, %v4483_v57  ;;  %237 = vst.msk [vmem:[%s6379_s4 + $0x30] sm:$0xff] %vm230_vm2, %v4483_v57 }
  0x82   : > { %5341 = vmatmul.mubr.msk.f32.gmra.mrb[26].mxu1 %vm330_vm1, %v6258_v60  ;;  %7896 = vst [vmem:[#allocation28_spill] sm:$0xff] %v6361_v61  ;;  %238 = vst.msk [vmem:[%s6379_s4 + $0x38] sm:$0xff] %vm230_vm2, %v4483_v57 }
  0x83   : > { %5343 = vmatprep.mubr.msk.f32.mxu1 %vm330_vm1, %v6264_v62  ;;  %239 = vst.msk [vmem:[%s6379_s4 + $0x40] sm:$0xff] %vm230_vm2, %v4483_v57  ;;  %240 = vst.msk [vmem:[%s6379_s4 + $0x48] sm:$0xff] %vm230_vm2, %v4483_v57 }
  0x84   : > { %5391 = vmatmul.mubr.msk.f32.gmra.mrb[26].mxu0 %vm330_vm1, %v6273_v63  ;;  %v6344_v63 = vld [vmem:[%s5990_s28 + $0xf1] sm:$0xff]  ;;  %241 = vst.msk [vmem:[%s6379_s4 + $0x50] sm:$0xff] %vm230_vm2, %v4483_v57  ;;  %242 = vst.msk [vmem:[%s6379_s4 + $0x58] sm:$0xff] %vm230_vm2, %v4483_v57 }
  0x85   : > { %5393 = vmatprep.mubr.msk.f32.mxu0 %vm330_vm1, %v6281_v3  ;;  %v6341_v3 = vld [vmem:[%s5990_s28 + $0xda] sm:$0xff]  ;;  %243 = vst.msk [vmem:[%s6379_s4 + $0x60] sm:$0xff] %vm230_vm2, %v4483_v57  ;;  %244 = vst.msk [vmem:[%s6379_s4 + $0x68] sm:$0xff] %vm230_vm2, %v4483_v57 }
  0x86   : > { %5344 = vmatmul.mubr.msk.f32.gmra.mrb[28].mxu1 %vm330_vm1, %v6278_v0  ;;  %7894 = vst [vmem:[#allocation26_spill] sm:$0xff] %v6341_v3  ;;  %245 = vst.msk [vmem:[%s6379_s4 + $0x70] sm:$0xff] %vm230_vm2, %v4483_v57 }
  0x87   : > { %5346 = vmatprep.mubr.msk.f32.mxu1 %vm330_vm1, %v6284_v5  ;;  %246 = vst.msk [vmem:[%s6379_s4 + $0x78] sm:$0xff] %vm230_vm2, %v4483_v57  ;;  %247 = vst.msk [vmem:[%s6379_s4 + $0x80] sm:$0xff] %vm230_vm2, %v4483_v57 }
  0x88   : > { %5394 = vmatmul.mubr.msk.f32.gmra.mrb[28].mxu0 %vm330_vm1, %v6293_v6  ;;  %v6338_v6 = vld [vmem:[%s5990_s28 + $0xe1] sm:$0xff]  ;;  %249 = vst.msk [vmem:[%s6379_s4 + $0x90] sm:$0xff] %vm230_vm2, %v4483_v57  ;;  %250 = vst.msk [vmem:[%s6379_s4 + $0x98] sm:$0xff] %vm230_vm2, %v4483_v57 }
  0x89   : > { %5396 = vmatprep.mubr.msk.f32.mxu0 %vm330_vm1, %v6301_v16  ;;  %v6333_v16 = vld [vmem:[%s5990_s28 + $0xca] sm:$0xff]  ;;  %251 = vst.msk [vmem:[%s6379_s4 + $0xa0] sm:$0xff] %vm230_vm2, %v4483_v57  ;;  %252 = vst.msk [vmem:[%s6379_s4 + $0xa8] sm:$0xff] %vm230_vm2, %v4483_v57 }
  0x8a   : > { %5347 = vmatmul.mubr.msk.f32.gmra.mrb[30].mxu1 %vm330_vm1, %v6298_v7  ;;  %7893 = vst [vmem:[#allocation25_spill] sm:$0xff] %v6333_v16  ;;  %253 = vst.msk [vmem:[%s6379_s4 + $0xb0] sm:$0xff] %vm230_vm2, %v4483_v57 }
  0x8b   : > { %5349 = vmatprep.mubr.msk.f32.mxu1 %vm330_vm1, %v6304_v20  ;;  %254 = vst.msk [vmem:[%s6379_s4 + $0xb8] sm:$0xff] %vm230_vm2, %v4483_v57  ;;  %255 = vst.msk [vmem:[%s6379_s4 + $0xc0] sm:$0xff] %vm230_vm2, %v4483_v57 }
  0x8c   : > { %5397 = vmatmul.mubr.msk.f32.gmra.mrb[30].mxu0 %vm330_vm1, %v6313_v36  ;;  %v6358_v36 = vld [vmem:[%s5990_s28 + $0xf9] sm:$0xff]  ;;  %256 = vst.msk [vmem:[%s6379_s4 + $0xc8] sm:$0xff] %vm230_vm2, %v4483_v57  ;;  %257 = vst.msk [vmem:[%s6379_s4 + $0xd0] sm:$0xff] %vm230_vm2, %v4483_v57 }
  0x8d   : > { %5399 = vmatprep.mubr.msk.f32.mxu0 %vm330_vm1, %v6321_v39  ;;  %v6353_v39 = vld [vmem:[%s5990_s28 + $0xe2] sm:$0xff]  ;;  %258 = vst.msk [vmem:[%s6379_s4 + $0xd8] sm:$0xff] %vm230_vm2, %v4483_v57  ;;  %259 = vst.msk [vmem:[%s6379_s4 + $0xe0] sm:$0xff] %vm230_vm2, %v4483_v57 }
  0x8e   : > { %5350 = vmatmul.mubr.msk.f32.gmra.mrb[32].mxu1 %vm330_vm1, %v6318_v38  ;;  %7895 = vst [vmem:[#allocation27_spill] sm:$0xff] %v6353_v39  ;;  %260 = vst.msk [vmem:[%s6379_s4 + $0xe8] sm:$0xff] %vm230_vm2, %v4483_v57 }
  0x8f   : > { %5352 = vmatprep.mubr.msk.f32.mxu1 %vm330_vm1, %v6324_v42  ;;  %261 = vst.msk [vmem:[%s6379_s4 + $0xf0] sm:$0xff] %vm230_vm2, %v4483_v57  ;;  %262 = vst.msk [vmem:[%s6379_s4 + $0xf8] sm:$0xff] %vm230_vm2, %v4483_v57  ;;  %v6483_v57 = vld [vmem:[%s5990_s28 + $0x12a] sm:$0xff] }
  0x90   : > { %5400 = vmatmul.mubr.msk.f32.gmra.mrb[32].mxu0 %vm330_vm1, %v6333_v16  ;;  %v6365_v16 = vld [vmem:[%s5990_s28 + $0x109] sm:$0xff]  ;;  %7901 = vst [vmem:[#allocation33_spill] sm:$0xff] %v6483_v57 }
  0x91   : > { %5402 = vmatprep.mubr.msk.f32.mxu0 %vm330_vm1, %v6341_v3  ;;  %v6374_v3 = vld [vmem:[%s5990_s28 + $0xfa] sm:$0xff] }
  0x92   : > { %5353 = vmatmul.mubr.msk.f32.gmra.mrb[34].mxu1 %vm330_vm1, %v6338_v6  ;;  %7897 = vst [vmem:[#allocation29_spill] sm:$0xff] %v6374_v3 }
  0x93   : > { %5355 = vmatprep.mubr.msk.f32.mxu1 %vm330_vm1, %v6344_v63 }
  0x94   : > { %5403 = vmatmul.mubr.msk.f32.gmra.mrb[34].mxu0 %vm330_vm1, %v6353_v39  ;;  %v6384_v39 = vld [vmem:[%s5990_s28 + $0x111] sm:$0xff] }
  0x95   : > { %5405 = vmatprep.mubr.msk.f32.mxu0 %vm330_vm1, %v6361_v61  ;;  %v6387_v61 = vld [vmem:[%s5990_s28 + $0x10a] sm:$0xff] }
  0x96   : > { %5356 = vmatmul.mubr.msk.f32.gmra.mrb[36].mxu1 %vm330_vm1, %v6358_v36  ;;  %7898 = vst [vmem:[#allocation30_spill] sm:$0xff] %v6387_v61 }
  0x97   : > { %5358 = vmatprep.mubr.msk.f32.mxu1 %vm330_vm1, %v6365_v16 }
  0x98   : > { %5406 = vmatmul.mubr.msk.f32.gmra.mrb[36].mxu0 %vm330_vm1, %v6374_v3  ;;  %v6471_v3 = vld [vmem:[%s5990_s28 + $0x122] sm:$0xff] }
  0x99   : > { %5408 = vmatprep.mubr.msk.f32.mxu0 %vm330_vm1, %v6387_v61  ;;  %v6468_v61 = vld [vmem:[%s5990_s28 + $0x129] sm:$0xff]  ;;  %7900 = vst [vmem:[#allocation32_spill] sm:$0xff] %v6471_v3 }
  0x9a   : > { %5359 = vmatmul.mubr.msk.f32.gmra.mrb[38].mxu1 %vm330_vm1, %v6384_v39 }
  0x9b   : > { %5361 = vmatprep.mubr.msk.f32.mxu1 %vm330_vm1, %v6390_v59 }
  0x9c   : > { %5409 = vmatmul.mubr.msk.f32.gmra.mrb[38].mxu0 %vm330_vm1, %v6399_v55  ;;  %v6508_v55 = vld [vmem:[%s5990_s28 + $0x159] sm:$0xff] }
  0x9d   : > { %5411 = vmatprep.mubr.msk.f32.mxu0 %vm330_vm1, %v6471_v3  ;;  %v6503_v3 = vld [vmem:[%s5990_s28 + $0x142] sm:$0xff] }
  0x9e   : > { %5362 = vmatmul.mubr.msk.f32.gmra.mrb[40].mxu1 %vm330_vm1, %v6468_v61  ;;  %7903 = vst [vmem:[#allocation35_spill] sm:$0xff] %v6503_v3 }
  0x9f   : > { %5364 = vmatprep.mubr.msk.f32.mxu1 %vm330_vm1, %v6474_v53 }
  0xa0   : > { %5412 = vmatmul.mubr.msk.f32.gmra.mrb[40].mxu0 %vm330_vm1, %v6483_v57  ;;  %v6528_v57 = vld [vmem:[%s5990_s28 + $0x171] sm:$0xff] }
  0xa1   : > { %5414 = vmatprep.mubr.msk.f32.mxu0 %vm330_vm1, %v6491_v49  ;;  %v6523_v49 = vld [vmem:[%s5990_s28 + $0x15a] sm:$0xff] }
  0xa2   : > { %5365 = vmatmul.mubr.msk.f32.gmra.mrb[42].mxu1 %vm330_vm1, %v6488_v51 }
  0xa3   : > { %5367 = vmatprep.mubr.msk.f32.mxu1 %vm330_vm1, %v6494_v47 }
  0xa4   : > { %5415 = vmatmul.mubr.msk.f32.gmra.mrb[42].mxu0 %vm330_vm1, %v6503_v3  ;;  %v6540_v3 = vld [vmem:[%s5990_s28 + $0x172] sm:$0xff] }
  0xa5   : > { %5417 = vmatprep.mubr.msk.f32.mxu0 %vm330_vm1, %v6511_v45  ;;  %v6546_v45 = vld [vmem:[#allocation2 + $0x1c] sm:$0xf] }
  0xa6   : > { %5368 = vmatmul.mubr.msk.f32.gmra.mrb[44].mxu1 %vm330_vm1, %v6508_v55 }
  0xa7   : > { %5370 = vmatprep.mubr.msk.f32.mxu1 %vm330_vm1, %v6514_v34 }
  0xa8   : > { %5418 = vmatmul.mubr.msk.f32.gmra.mrb[44].mxu0 %vm330_vm1, %v6523_v49 }
  0xa9   : > { %5420 = vmatprep.mubr.msk.f32.mxu0 %vm330_vm1, %v6531_v32 }
  0xaa   : > { %5371 = vmatmul.mubr.msk.f32.gmra.mrb[46].mxu1 %vm330_vm1, %v6528_v57 }
  0xab   : > { %5425 = vmatprep.mubr.msk.f32.mxu1 %vm330_vm1, %v6023_v10  ;;  %v6560_v10 = vld [vmem:[#allocation2 + $0x20] sm:$0xf] }
  0xac   : > { %5421 = vmatmul.mubr.msk.f32.gmra.mrb[46].mxu0 %vm330_vm1, %v6540_v3 }
  0xad   : > { %5475 = vmatprep.mubr.msk.f32.mxu0 %vm330_vm1, %v6159_v40  ;;  %v6669_v40 = vld [vmem:[%s5990_s28 + $0x180] sm:$0xff] }
  0xae   : > { %5426 = vmatmul.mubr.msk.f32.vlgmr.msra.gmra.mrb[48].mxu1 %vm330_vm1, %v6031_v11  ;;  %v7905_v11 = vld [vmem:[#allocation8_spill] sm:$0xff] }
  0xaf   : > { %5524 = vmatpush3.msk.msra.mxu1 %vm427_vm0, %v6163_v41  ;;  %5428 = vmatprep.mubr.msk.f32.mxu1 %vm330_vm1, %v6041_v13  ;;  %v7906_v41 = vld [vmem:[#allocation9_spill] sm:$0xff] }
  0xb0   : > { %5623 = vmatprep.subr.msk.mxu1 %vm427_vm0, %v6546_v45  ;;  %5476 = vmatmul.mubr.msk.f32.vlgmr.msra.gmra.mrb[48].mxu0 %vm330_vm1, %v6172_v43  ;;  %v6680_v43 = vld [vmem:[%s5990_s28 + $0x188] sm:$0xff] }
  0xb1   : > { %5574 = vmatpush3.msk.msra.mxu0 %vm427_vm0, %v6183_v46  ;;  %5478 = vmatprep.mubr.msk.f32.mxu0 %vm330_vm1, %v6175_v44  ;;  %v4678_v46 = vld [vmem:[%s5990_s28 + $0x181] sm:$0xff] }
  0xb2   : > { %5429 = vmatmul.mubr.msk.f32.gmra.mrb[50].mxu1 %vm330_vm1, %v6053_v15  ;;  %5673 = vmatprep.subr.msk.mxu0 %vm427_vm0, %v6560_v10 }
  0xb3   : > { %5431 = vmatprep.mubr.msk.f32.mxu1 %vm330_vm1, %v6061_v18 }
  0xb4   : > { %5479 = vmatmul.mubr.msk.f32.gmra.mrb[50].mxu0 %vm330_vm1, %v6194_v48 }
  0xb5   : > { %5481 = vmatprep.mubr.msk.f32.mxu0 %vm330_vm1, %v6202_v50 }
  0xb6   : > { %5432 = vmatmul.mubr.msk.f32.gmra.mrb[52].mxu1 %vm330_vm1, %v6074_v21 }
  0xb7   : > { %5434 = vmatprep.mubr.msk.f32.mxu1 %vm330_vm1, %v6082_v23 }
  0xb8   : > { %5482 = vmatmul.mubr.msk.f32.gmra.mrb[52].mxu0 %vm330_vm1, %v6218_v52 }
  0xb9   : > { %5484 = vmatprep.mubr.msk.f32.mxu0 %vm330_vm1, %v6224_v54 }
  0xba   : > { %5435 = vmatmul.mubr.msk.f32.gmra.mrb[54].mxu1 %vm330_vm1, %v6095_v25 }
  0xbb   : > { %5437 = vmatprep.mubr.msk.f32.mxu1 %vm330_vm1, %v6103_v27 }
  0xbc   : > { %5485 = vmatmul.mubr.msk.f32.gmra.mrb[54].mxu0 %vm330_vm1, %v6238_v56 }
  0xbd   : > { %5487 = vmatprep.mubr.msk.f32.mxu0 %vm330_vm1, %v6244_v58 }
  0xbe   : > { %5438 = vmatmul.mubr.msk.f32.gmra.mrb[56].mxu1 %vm330_vm1, %v6115_v29 }
  0xbf   : > { %5440 = vmatprep.mubr.msk.f32.mxu1 %vm330_vm1, %v6123_v31 }
  0xc0   : > { %5488 = vmatmul.mubr.msk.f32.gmra.mrb[56].mxu0 %vm330_vm1, %v6258_v60 }
  0xc1   : > { %5490 = vmatprep.mubr.msk.f32.mxu0 %vm330_vm1, %v6264_v62 }
  0xc2   : > { %5441 = vmatmul.mubr.msk.f32.gmra.mrb[58].mxu1 %vm330_vm1, %v6135_v33 }
  0xc3   : > { %5443 = vmatprep.mubr.msk.f32.mxu1 %vm330_vm1, %v6143_v35 }
  0xc4   : > { %5491 = vmatmul.mubr.msk.f32.gmra.mrb[58].mxu0 %vm330_vm1, %v6278_v0  ;;  %v316_v0 = vld [vmem:[%s6379_s4 + $0x98] sm:$0xff] }
  0xc5   : > { %5493 = vmatprep.mubr.msk.f32.mxu0 %vm330_vm1, %v6284_v5  ;;  %v297_v5 = vld [vmem:[%s6379_s4] sm:$0xff] }
  0xc6   : > { %5444 = vmatmul.mubr.msk.f32.gmra.mrb[60].mxu1 %vm330_vm1, %v6153_v37 }
  0xc7   : > { %5446 = vmatprep.mubr.msk.f32.mxu1 %vm330_vm1, %v5993_v1 }
  0xc8   : > { %5494 = vmatmul.mubr.msk.f32.gmra.mrb[60].mxu0 %vm330_vm1, %v6298_v7 }
  0xc9   : > { %5496 = vmatprep.mubr.msk.f32.mxu0 %vm330_vm1, %v6304_v20 }
  0xca   : > { %5447 = vmatmul.mubr.msk.f32.gmra.mrb[62].mxu1 %vm330_vm1, %v5996_v2 }
  0xcb   : > { %5449 = vmatprep.mubr.msk.f32.mxu1 %vm330_vm1, %v6002_v4 }
  0xcc   : > { %5497 = vmatmul.mubr.msk.f32.gmra.mrb[62].mxu0 %vm330_vm1, %v6318_v38  ;;  %v318_v38 = vld [vmem:[%s6379_s4 + $0xa8] sm:$0xff] }
  0xcd   : > { %5499 = vmatprep.mubr.msk.f32.mxu0 %vm330_vm1, %v6324_v42  ;;  %v300_v42 = vld [vmem:[%s6379_s4 + $0x18] sm:$0xff] }
  0xce   : > { %5450 = vmatmul.mubr.msk.f32.gmra.mrb[64].mxu1 %vm330_vm1, %v6015_v8 }
  0xcf   : > { %5452 = vmatprep.mubr.msk.f32.mxu1 %vm330_vm1, %v6018_v9 }
  0xd0   : > { %5500 = vmatmul.mubr.msk.f32.gmra.mrb[64].mxu0 %vm330_vm1, %v6338_v6  ;;  %v6815_v6 = vld [vmem:[%s5990_s28 + $0x182] sm:$0xff] }
  0xd1   : > { %5502 = vmatprep.mubr.msk.f32.mxu0 %vm330_vm1, %v6344_v63  ;;  %v298_v63 = vld [vmem:[%s6379_s4 + $0x8] sm:$0xff] }
  0xd2   : > { %5453 = vmatmul.mubr.msk.f32.gmra.mrb[66].mxu1 %vm330_vm1, %v6036_v12 }
  0xd3   : > { %5455 = vmatprep.mubr.msk.f32.mxu1 %vm330_vm1, %v6044_v14 }
  0xd4   : > { %5503 = vmatmul.mubr.msk.f32.gmra.mrb[66].mxu0 %vm330_vm1, %v6358_v36 }
  0xd5   : > { %5505 = vmatprep.mubr.msk.f32.mxu0 %vm330_vm1, %v6365_v16 }
  0xd6   : > { %5456 = vmatmul.mubr.msk.f32.gmra.mrb[68].mxu1 %vm330_vm1, %v6058_v17 }
  0xd7   : > { %5458 = vmatprep.mubr.msk.f32.mxu1 %vm330_vm1, %v6065_v19 }
  0xd8   : > { %5506 = vmatmul.mubr.msk.f32.gmra.mrb[68].mxu0 %vm330_vm1, %v6384_v39 }
  0xd9   : > { %5508 = vmatprep.mubr.msk.f32.mxu0 %vm330_vm1, %v6390_v59  ;;  %v7911_v59 = vld [vmem:[#allocation14_spill] sm:$0xff] }
  0xda   : > { %5459 = vmatmul.mubr.msk.f32.gmra.mrb[70].mxu1 %vm330_vm1, %v6079_v22 }
  0xdb   : > { %5461 = vmatprep.mubr.msk.f32.mxu1 %vm330_vm1, %v6086_v24 }
  0xdc   : > { %5509 = vmatmul.mubr.msk.f32.gmra.mrb[70].mxu0 %vm330_vm1, %v6468_v61 }
  0xdd   : > { %5511 = vmatprep.mubr.msk.f32.mxu0 %vm330_vm1, %v6474_v53  ;;  %v7909_v53 = vld [vmem:[#allocation12_spill] sm:$0xff] }
  0xde   : > { %5462 = vmatmul.mubr.msk.f32.gmra.mrb[72].mxu1 %vm330_vm1, %v6100_v26 }
  0xdf   : > { %5464 = vmatprep.mubr.msk.f32.mxu1 %vm330_vm1, %v6106_v28 }
  0xe0   : > { %5512 = vmatmul.mubr.msk.f32.gmra.mrb[72].mxu0 %vm330_vm1, %v6488_v51  ;;  %v7907_v51 = vld [vmem:[#allocation10_spill] sm:$0xff] }
  0xe1   : > { %5514 = vmatprep.mubr.msk.f32.mxu0 %vm330_vm1, %v6494_v47  ;;  %v4679_v47 = vld [vmem:[%s5990_s28 + $0x189] sm:$0xff] }
  0xe2   : > { %5465 = vmatmul.mubr.msk.f32.gmra.mrb[74].mxu1 %vm330_vm1, %v6120_v30 }
  0xe3   : > { %5467 = vmatprep.mubr.msk.f32.mxu1 %vm330_vm1, %v7905_v11 }
  0xe4   : > { %5515 = vmatmul.mubr.msk.f32.gmra.mrb[74].mxu0 %vm330_vm1, %v6508_v55  ;;  %v7910_v55 = vld [vmem:[#allocation13_spill] sm:$0xff] }
  0xe5   : > { %5517 = vmatprep.mubr.msk.f32.mxu0 %vm330_vm1, %v6514_v34  ;;  %v7908_v34 = vld [vmem:[#allocation11_spill] sm:$0xff] }
  0xe6   : > { %5468 = vmatmul.mubr.msk.f32.gmra.mrb[76].mxu1 %vm330_vm1, %v7906_v41 }
  0xe7   : > { %5470 = vmatprep.mubr.msk.f32.mxu1 %vm330_vm1, %v6669_v40 }
  0xe8   : > { %5518 = vmatmul.mubr.msk.f32.gmra.mrb[76].mxu0 %vm330_vm1, %v6528_v57 }
  0xe9   : > { %5520 = vmatprep.mubr.msk.f32.mxu0 %vm330_vm1, %v4678_v46 }
  0xea   : > { %5471 = vmatmul.mubr.msk.f32.gmra.mrb[78].mxu1 %vm330_vm1, %v6680_v43 }
  0xeb   : > { %5525 = vmatprep.mubr.msk.f32.mxu1 %vm330_vm1, %v7907_v51 }
  0xec   : > { %5521 = vmatmul.mubr.msk.f32.gmra.mrb[78].mxu0 %vm330_vm1, %v4679_v47 }
  0xed   : > { %5575 = vmatprep.mubr.msk.f32.mxu0 %vm330_vm1, %v6041_v13  ;;  %v7912_v13 = vld [vmem:[#allocation15_spill] sm:$0xff] }
  0xee   : > { %5526 = vmatmul.mubr.msk.f32.vlgmr.msra.gmra.mrb[80].mxu1 %vm330_vm1, %v7908_v34 }
  0xef   : > { %5624 = vmatpush3.msk.msra.mxu1 %vm427_vm0, %v6546_v45  ;;  %5528 = vmatprep.mubr.msk.f32.mxu1 %vm330_vm1, %v7909_v53  ;;  %v7914_v45 = vld [vmem:[#allocation17_spill] sm:$0xff] }
  0xf0   : > { %5576 = vmatmul.mubr.msk.f32.vlgmr.msra.gmra.mrb[80].mxu0 %vm330_vm1, %v6053_v15  ;;  %v7913_v15 = vld [vmem:[#allocation16_spill] sm:$0xff] }
  0xf1   : > { %5674 = vmatpush3.msk.msra.mxu0 %vm427_vm0, %v6560_v10  ;;  %5578 = vmatprep.mubr.msk.f32.mxu0 %vm330_vm1, %v6061_v18  ;;  %v7915_v18 = vld [vmem:[#allocation18_spill] sm:$0xff]  ;;  %v6830_v10 = vld [vmem:[%s5990_s28 + $0x18a] sm:$0xff] }
  0xf2   : > { %5529 = vmatmul.mubr.msk.f32.gmra.mrb[82].mxu1 %vm330_vm1, %v7910_v55 }
  0xf3   : > { %5531 = vmatprep.mubr.msk.f32.mxu1 %vm330_vm1, %v7911_v59 }
  0xf4   : > { %5579 = vmatmul.mubr.msk.f32.gmra.mrb[82].mxu0 %vm330_vm1, %v6074_v21  ;;  %v7916_v21 = vld [vmem:[#allocation19_spill] sm:$0xff] }
  0xf5   : > { %5581 = vmatprep.mubr.msk.f32.mxu0 %vm330_vm1, %v6082_v23  ;;  %v7917_v23 = vld [vmem:[#allocation20_spill] sm:$0xff] }
  0xf6   : > { %5532 = vmatmul.mubr.msk.f32.gmra.mrb[84].mxu1 %vm330_vm1, %v7912_v13 }
  0xf7   : > { %5534 = vmatprep.mubr.msk.f32.mxu1 %vm330_vm1, %v7913_v15 }
  0xf8   : > { %5582 = vmatmul.mubr.msk.f32.gmra.mrb[84].mxu0 %vm330_vm1, %v6095_v25  ;;  %v7918_v25 = vld [vmem:[#allocation21_spill] sm:$0xff] }
  0xf9   : > { %5584 = vmatprep.mubr.msk.f32.mxu0 %vm330_vm1, %v6103_v27  ;;  %v7919_v27 = vld [vmem:[#allocation22_spill] sm:$0xff] }
  0xfa   : > { %5535 = vmatmul.mubr.msk.f32.gmra.mrb[86].mxu1 %vm330_vm1, %v7914_v45 }
  0xfb   : > { %5537 = vmatprep.mubr.msk.f32.mxu1 %vm330_vm1, %v7915_v18  ;;  %v302_v18 = vld [vmem:[%s6379_s4 + $0x28] sm:$0xff] }
  0xfc   : > { %5585 = vmatmul.mubr.msk.f32.gmra.mrb[86].mxu0 %vm330_vm1, %v6115_v29  ;;  %v7920_v29 = vld [vmem:[#allocation23_spill] sm:$0xff] }
  0xfd   : > { %5587 = vmatprep.mubr.msk.f32.mxu0 %vm330_vm1, %v6123_v31  ;;  %v7921_v31 = vld [vmem:[#allocation24_spill] sm:$0xff] }
  0xfe   : > { %5538 = vmatmul.mubr.msk.f32.gmra.mrb[88].mxu1 %vm330_vm1, %v7916_v21  ;;  %v4809_v21 = vld [vmem:[%s5990_s28 + $0x1a0] sm:$0xff] }
  0xff   : > { %5540 = vmatprep.mubr.msk.f32.mxu1 %vm330_vm1, %v7917_v23 }
 0x100   : > { %5588 = vmatmul.mubr.msk.f32.gmra.mrb[88].mxu0 %vm330_vm1, %v6135_v33  ;;  %v7922_v33 = vld [vmem:[#allocation25_spill] sm:$0xff] }
 0x101   : > { %5590 = vmatprep.mubr.msk.f32.mxu0 %vm330_vm1, %v6143_v35  ;;  %v7923_v35 = vld [vmem:[#allocation26_spill] sm:$0xff] }
 0x102   : > { %5541 = vmatmul.mubr.msk.f32.gmra.mrb[90].mxu1 %vm330_vm1, %v7918_v25  ;;  %v320_v25 = vld [vmem:[%s6379_s4 + $0xb8] sm:$0xff] }
 0x103   : > { %5543 = vmatprep.mubr.msk.f32.mxu1 %vm330_vm1, %v7919_v27  ;;  %v319_v27 = vld [vmem:[%s6379_s4 + $0xb0] sm:$0xff] }
 0x104   : > { %5591 = vmatmul.mubr.msk.f32.gmra.mrb[90].mxu0 %vm330_vm1, %v6153_v37  ;;  %v7924_v37 = vld [vmem:[#allocation27_spill] sm:$0xff] }
 0x105   : > { %5593 = vmatprep.mubr.msk.f32.mxu0 %vm330_vm1, %v5993_v1  ;;  %v7925_v1 = vld [vmem:[#allocation28_spill] sm:$0xff] }
 0x106   : > { %5544 = vmatmul.mubr.msk.f32.gmra.mrb[92].mxu1 %vm330_vm1, %v7920_v29 }
 0x107   : > { %5546 = vmatprep.mubr.msk.f32.mxu1 %vm330_vm1, %v7921_v31 }
 0x108   : > { %5594 = vmatmul.mubr.msk.f32.gmra.mrb[92].mxu0 %vm330_vm1, %v5996_v2  ;;  %v7926_v2 = vld [vmem:[#allocation29_spill] sm:$0xff] }
 0x109   : > { %5596 = vmatprep.mubr.msk.f32.mxu0 %vm330_vm1, %v6002_v4  ;;  %v7927_v4 = vld [vmem:[#allocation30_spill] sm:$0xff] }
 0x10a   : > { %5547 = vmatmul.mubr.msk.f32.gmra.mrb[94].mxu1 %vm330_vm1, %v7922_v33 }
 0x10b   : > { %5549 = vmatprep.mubr.msk.f32.mxu1 %vm330_vm1, %v7923_v35 }
 0x10c   : > { %5597 = vmatmul.mubr.msk.f32.gmra.mrb[94].mxu0 %vm330_vm1, %v6015_v8  ;;  %v7928_v8 = vld [vmem:[#allocation31_spill] sm:$0xff] }
 0x10d   : > { %5599 = vmatprep.mubr.msk.f32.mxu0 %vm330_vm1, %v6018_v9  ;;  %v7929_v9 = vld [vmem:[#allocation32_spill] sm:$0xff] }
 0x10e   : > { %5550 = vmatmul.mubr.msk.f32.gmra.mrb[96].mxu1 %vm330_vm1, %v7924_v37 }
 0x10f   : > { %5552 = vmatprep.mubr.msk.f32.mxu1 %vm330_vm1, %v7925_v1 }
 0x110   : > { %5600 = vmatmul.mubr.msk.f32.gmra.mrb[96].mxu0 %vm330_vm1, %v6036_v12  ;;  %v7930_v12 = vld [vmem:[#allocation33_spill] sm:$0xff] }
 0x111   : > { %5602 = vmatprep.mubr.msk.f32.mxu0 %vm330_vm1, %v6044_v14  ;;  %v7931_v14 = vld [vmem:[#allocation34_spill] sm:$0xff] }
 0x112   : > { %5553 = vmatmul.mubr.msk.f32.gmra.mrb[98].mxu1 %vm330_vm1, %v7926_v2  ;;  %v304_v2 = vld [vmem:[%s6379_s4 + $0x38] sm:$0xff] }
 0x113   : > { %5555 = vmatprep.mubr.msk.f32.mxu1 %vm330_vm1, %v7927_v4 }
 0x114   : > { %5603 = vmatmul.mubr.msk.f32.gmra.mrb[98].mxu0 %vm330_vm1, %v6058_v17  ;;  %v7932_v17 = vld [vmem:[#allocation35_spill] sm:$0xff] }
 0x115   : > { %5605 = vmatprep.mubr.msk.f32.mxu0 %vm330_vm1, %v6065_v19  ;;  %v314_v19 = vld [vmem:[%s6379_s4 + $0x88] sm:$0xff] }
 0x116   : > { %5556 = vmatmul.mubr.msk.f32.gmra.mrb[100].mxu1 %vm330_vm1, %v7928_v8  ;;  %v322_v8 = vld [vmem:[%s6379_s4 + $0xc8] sm:$0xff] }
 0x117   : > { %5558 = vmatprep.mubr.msk.f32.mxu1 %vm330_vm1, %v7929_v9  ;;  %v303_v9 = vld [vmem:[%s6379_s4 + $0x30] sm:$0xff] }
 0x118   : > { %5606 = vmatmul.mubr.msk.f32.gmra.mrb[100].mxu0 %vm330_vm1, %v6079_v22  ;;  %v7933_v22 = vld [vmem:[#allocation36_spill] sm:$0xff] }
 0x119   : > { %5608 = vmatprep.mubr.msk.f32.mxu0 %vm330_vm1, %v6086_v24  ;;  %v313_v24 = vld [vmem:[%s6379_s4 + $0x80] sm:$0xff] }
 0x11a   : > { %5559 = vmatmul.mubr.msk.f32.gmra.mrb[102].mxu1 %vm330_vm1, %v7930_v12  ;;  %v321_v12 = vld [vmem:[%s6379_s4 + $0xc0] sm:$0xff] }
 0x11b   : > { %5561 = vmatprep.mubr.msk.f32.mxu1 %vm330_vm1, %v7931_v14 }
 0x11c   : > { %5609 = vmatmul.mubr.msk.f32.gmra.mrb[102].mxu0 %vm330_vm1, %v6100_v26 }
 0x11d   : > { %5611 = vmatprep.mubr.msk.f32.mxu0 %vm330_vm1, %v6106_v28 }
 0x11e   : > { %5562 = vmatmul.mubr.msk.f32.gmra.mrb[104].mxu1 %vm330_vm1, %v7932_v17 }
 0x11f   : > { %5564 = vmatprep.mubr.msk.f32.mxu1 %vm330_vm1, %v7933_v22 }
 0x120   : > { %5612 = vmatmul.mubr.msk.f32.gmra.mrb[104].mxu0 %vm330_vm1, %v6120_v30  ;;  %v315_v30 = vld [vmem:[%s6379_s4 + $0x90] sm:$0xff] }
 0x121   : > { %v5301_v61 = vpop.f32.mrb[0].mxu1  ;;  %5614 = vmatprep.mubr.msk.f32.mxu0 %vm330_vm1, %v7905_v11  ;;  %v299_v11 = vld [vmem:[%s6379_s4 + $0x10] sm:$0xff] }
 0x122   : > { %v673_v26 = vadd.f32 %v5301_v61, %v314_v19  ;;  %v577_v62 = vpop.f32.mrb[1].mxu1  ;;  %5565 = vmatmul.mubr.msk.f32.gmra.mrb[106].mxu1 %vm330_vm1, %v6523_v49 }
 0x123   : > { %v672_v28 = vadd.f32 %v577_v62, %v313_v24  ;;  %5567 = vmatprep.mubr.msk.f32.mxu1 %vm330_vm1, %v6531_v32  ;;  %v5277_v7 = vpop.f32.mrb[0].mxu0  ;;  %v306_v24 = vld [vmem:[%s6379_s4 + $0x48] sm:$0xff] }
 0x124   : > { %705 = vst.msk [vmem:[%s6379_s4 + $0x88] sm:$0xff] %vm230_vm2, %v673_v26  ;;  %v657_v16 = vadd.f32 %v5277_v7, %v298_v63  ;;  %v497_v20 = vpop.f32.mrb[1].mxu0  ;;  %5615 = vmatmul.mubr.msk.f32.gmra.mrb[106].mxu0 %vm330_vm1, %v7906_v41  ;;  %v4808_v41 = vld [vmem:[%s5990_s28 + $0x198] sm:$0xff]  ;;  %v4912_v62 = vld [vmem:[%s5990_s28 + $0x62] sm:$0xff]  ;;  %v323_v63 = vld [vmem:[%s6379_s4 + $0xd0] sm:$0xff] }
 0x125   : > { %704 = vst.msk [vmem:[%s6379_s4 + $0x80] sm:$0xff] %vm230_vm2, %v672_v28  ;;  %v5304_v49 = vpop.f32.mrb[2].mxu1  ;;  %v656_v39 = vadd.f32 %v497_v20, %v297_v5  ;;  %5617 = vmatprep.mubr.msk.f32.mxu0 %vm330_vm1, %v6669_v40  ;;  %v324_v26 = vld [vmem:[%s6379_s4 + $0xd8] sm:$0xff]  ;;  %v326_v20 = vld [vmem:[%s6379_s4 + $0xe8] sm:$0xff] }
 0x126   : > { %v675_v32 = vadd.f32 %v5304_v49, %v316_v0  ;;  %v587_v36 = vpop.f32.mrb[3].mxu1  ;;  %5568 = vmatmul.mubr.msk.f32.gmra.mrb[108].mxu1 %vm330_vm1, %v6540_v3  ;;  %689 = vst.msk [vmem:[%s6379_s4 + $0x8] sm:$0xff] %vm230_vm2, %v657_v16  ;;  %v317_v3 = vld [vmem:[%s6379_s4 + $0xa0] sm:$0xff]  ;;  %v308_v7 = vld [vmem:[%s6379_s4 + $0x58] sm:$0xff]  ;;  %v4913_v49 = vld [vmem:[%s5990_s28 + $0x6a] sm:$0xff] }
 0x127   : > { %v674_v57 = vadd.f32 %v587_v36, %v315_v30  ;;  %5570 = vmatprep.mubr.msk.f32.mxu1 %vm330_vm1, %v6815_v6  ;;  %688 = vst.msk [vmem:[%s6379_s4] sm:$0xff] %vm230_vm2, %v656_v39  ;;  %v5280_v46 = vpop.f32.mrb[2].mxu0  ;;  %v4851_v36 = vld [vmem:[%s5990_s28 + $0x91] sm:$0xff] }
 0x128   : > { %707 = vst.msk [vmem:[%s6379_s4 + $0x98] sm:$0xff] %vm230_vm2, %v675_v32  ;;  %v659_v47 = vadd.f32 %v5280_v46, %v300_v42  ;;  %v507_v51 = vpop.f32.mrb[3].mxu0  ;;  %5618 = vmatmul.mubr.msk.f32.gmra.mrb[108].mxu0 %vm330_vm1, %v6680_v43  ;;  %v301_v43 = vld [vmem:[%s6379_s4 + $0x20] sm:$0xff]  ;;  %v310_v46 = vld [vmem:[%s6379_s4 + $0x68] sm:$0xff] }
 0x129   : > { %706 = vst.msk [vmem:[%s6379_s4 + $0x90] sm:$0xff] %vm230_vm2, %v674_v57  ;;  %v5307_v40 = vpop.f32.mrb[4].mxu1  ;;  %v658_v45 = vadd.f32 %v507_v51, %v299_v11  ;;  %5620 = vmatprep.mubr.msk.f32.mxu0 %vm330_vm1, %v4808_v41  ;;  %v4914_v32 = vld [vmem:[%s5990_s28 + $0x7a] sm:$0xff] }
 0x12a   : > { %v677_v34 = vadd.f32 %v5307_v40, %v318_v38  ;;  %v597_v15 = vpop.f32.mrb[5].mxu1  ;;  %5571 = vmatmul.mubr.msk.f32.gmra.mrb[110].mxu1 %vm330_vm1, %v6830_v10  ;;  %691 = vst.msk [vmem:[%s6379_s4 + $0x18] sm:$0xff] %vm230_vm2, %v659_v47  ;;  %v328_v41 = vld [vmem:[%s6379_s4 + $0xf8] sm:$0xff]  ;;  %v4915_v40 = vld [vmem:[%s5990_s28 + $0x82] sm:$0xff] }
 0x12b   : > { %v676_v23 = vadd.f32 %v597_v15, %v317_v3  ;;  %5625 = vmatprep.mubr.msk.f32.mxu1 %vm330_vm1, %v6175_v44  ;;  %690 = vst.msk [vmem:[%s6379_s4 + $0x10] sm:$0xff] %vm230_vm2, %v658_v45  ;;  %v5283_v29 = vpop.f32.mrb[4].mxu0  ;;  %v4852_v51 = vld [vmem:[%s5990_s28 + $0x99] sm:$0xff]  ;;  %v4853_v45 = vld [vmem:[%s5990_s28 + $0xa9] sm:$0xff] }
 0x12c   : > { %709 = vst.msk [vmem:[%s6379_s4 + $0xa8] sm:$0xff] %vm230_vm2, %v677_v34  ;;  %v661_v33 = vadd.f32 %v5283_v29, %v302_v18  ;;  %v517_v44 = vpop.f32.mrb[5].mxu0  ;;  %5621 = vmatmul.mubr.msk.f32.gmra.mrb[110].mxu0 %vm330_vm1, %v4809_v21  ;;  %v309_v34 = vld [vmem:[%s6379_s4 + $0x60] sm:$0xff]  ;;  %v4916_v15 = vld [vmem:[%s5990_s28 + $0x92] sm:$0xff] }
 0x12d   : > { %708 = vst.msk [vmem:[%s6379_s4 + $0xa0] sm:$0xff] %vm230_vm2, %v676_v23  ;;  %v5310_v31 = vpop.f32.mrb[6].mxu1  ;;  %v660_v1 = vadd.f32 %v517_v44, %v301_v43  ;;  %5675 = vmatprep.mubr.msk.f32.mxu0 %vm330_vm1, %v7909_v53 }
 0x12e   : > { %v679_v35 = vadd.f32 %v5310_v31, %v320_v25  ;;  %v607_v37 = vpop.f32.mrb[7].mxu1  ;;  %5626 = vmatmul.mubr.msk.f32.vlgmr.msra.gmra.mrb[112].mxu1 %vm330_vm1, %v6194_v48  ;;  %693 = vst.msk [vmem:[%s6379_s4 + $0x28] sm:$0xff] %vm230_vm2, %v661_v33  ;;  %v312_v31 = vld [vmem:[%s6379_s4 + $0x78] sm:$0xff] }
 0x12f   : > { %v678_v4 = vadd.f32 %v607_v37, %v319_v27  ;;  %5628 = vmatprep.mubr.msk.f32.mxu1 %vm330_vm1, %v6202_v50  ;;  %692 = vst.msk [vmem:[%s6379_s4 + $0x20] sm:$0xff] %vm230_vm2, %v660_v1  ;;  %v5286_v48 = vpop.f32.mrb[6].mxu0  ;;  %v4917_v33 = vld [vmem:[%s5990_s28 + $0x9a] sm:$0xff]  ;;  %v311_v37 = vld [vmem:[%s6379_s4 + $0x70] sm:$0xff] }
 0x130   : > { %711 = vst.msk [vmem:[%s6379_s4 + $0xb8] sm:$0xff] %vm230_vm2, %v679_v35  ;;  %v663_v14 = vadd.f32 %v5286_v48, %v304_v2  ;;  %v527_v50 = vpop.f32.mrb[7].mxu0  ;;  %5676 = vmatmul.mubr.msk.f32.vlgmr.msra.gmra.mrb[112].mxu0 %vm330_vm1, %v7910_v55  ;;  %v305_v55 = vld [vmem:[%s6379_s4 + $0x40] sm:$0xff]  ;;  %v4854_v35 = vld [vmem:[%s5990_s28 + $0xb1] sm:$0xff] }
 0x131   : > { %710 = vst.msk [vmem:[%s6379_s4 + $0xb0] sm:$0xff] %vm230_vm2, %v678_v4  ;;  %v5313_v53 = vpop.f32.mrb[8].mxu1  ;;  %v662_v22 = vadd.f32 %v527_v50, %v303_v9  ;;  %5678 = vmatprep.mubr.msk.f32.mxu0 %vm330_vm1, %v7911_v59  ;;  %v4918_v1 = vld [vmem:[%s5990_s28 + $0xaa] sm:$0xff]  ;;  %v4855_v2 = vld [vmem:[%s5990_s28 + $0xc1] sm:$0xff] }
 0x132   : > { %v681_v17 = vadd.f32 %v5313_v53, %v322_v8  ;;  %v617_v19 = vpop.f32.mrb[9].mxu1  ;;  %5629 = vmatmul.mubr.msk.f32.gmra.mrb[114].mxu1 %vm330_vm1, %v6218_v52  ;;  %695 = vst.msk [vmem:[%s6379_s4 + $0x38] sm:$0xff] %vm230_vm2, %v663_v14  ;;  %v753_v8 = vld [vmem:[%s6379_s4 + $0x8] sm:$0xff]  ;;  %v752_v14 = vld [vmem:[%s6379_s4] sm:$0xff] }
 0x133   : > { %v680_v61 = vadd.f32 %v617_v19, %v321_v12  ;;  %5631 = vmatprep.mubr.msk.f32.mxu1 %vm330_vm1, %v6224_v54  ;;  %694 = vst.msk [vmem:[%s6379_s4 + $0x30] sm:$0xff] %vm230_vm2, %v662_v22  ;;  %v5289_v52 = vpop.f32.mrb[8].mxu0  ;;  %v4919_v19 = vld [vmem:[%s5990_s28 + $0xb2] sm:$0xff] }
 0x134   : > { %713 = vst.msk [vmem:[%s6379_s4 + $0xc8] sm:$0xff] %vm230_vm2, %v681_v17  ;;  %v665_v54 = vadd.f32 %v5289_v52, %v306_v24  ;;  %v537_v28 = vpop.f32.mrb[9].mxu0  ;;  %5679 = vmatmul.mubr.msk.f32.gmra.mrb[114].mxu0 %vm330_vm1, %v7912_v13  ;;  %v307_v13 = vld [vmem:[%s6379_s4 + $0x50] sm:$0xff] }
 0x135   : > { %712 = vst.msk [vmem:[%s6379_s4 + $0xc0] sm:$0xff] %vm230_vm2, %v680_v61  ;;  %v5316_v59 = vpop.f32.mrb[10].mxu1  ;;  %v664_v30 = vadd.f32 %v537_v28, %v305_v55  ;;  %5681 = vmatprep.mubr.msk.f32.mxu0 %vm330_vm1, %v4912_v62  ;;  %v4856_v24 = vld [vmem:[%s5990_s28 + $0xc9] sm:$0xff]  ;;  %v755_v62 = vld [vmem:[%s6379_s4 + $0x18] sm:$0xff] }
 0x136   : > { %v683_v0 = vadd.f32 %v5316_v59, %v324_v26  ;;  %v627_v5 = vpop.f32.mrb[11].mxu1  ;;  %5632 = vmatmul.mubr.msk.f32.gmra.mrb[116].mxu1 %vm330_vm1, %v6238_v56  ;;  %697 = vst.msk [vmem:[%s6379_s4 + $0x48] sm:$0xff] %vm230_vm2, %v665_v54  ;;  %v325_v56 = vld [vmem:[%s6379_s4 + $0xe0] sm:$0xff]  ;;  %v754_v54 = vld [vmem:[%s6379_s4 + $0x10] sm:$0xff] }
 0x137   : > { %v682_v16 = vadd.f32 %v627_v5, %v323_v63  ;;  %5634 = vmatprep.mubr.msk.f32.mxu1 %vm330_vm1, %v6244_v58  ;;  %696 = vst.msk [vmem:[%s6379_s4 + $0x40] sm:$0xff] %vm230_vm2, %v664_v30  ;;  %v5292_v38 = vpop.f32.mrb[10].mxu0  ;;  %v4920_v61 = vld [vmem:[%s5990_s28 + $0xc2] sm:$0xff]  ;;  %v4857_v26 = vld [vmem:[%s5990_s28 + $0xd9] sm:$0xff] }
 0x138   : > { %715 = vst.msk [vmem:[%s6379_s4 + $0xd8] sm:$0xff] %vm230_vm2, %v683_v0  ;;  %v667_v58 = vadd.f32 %v5292_v38, %v308_v7  ;;  %v547_v42 = vpop.f32.mrb[11].mxu0  ;;  %5682 = vmatmul.mubr.msk.f32.gmra.mrb[116].mxu0 %vm330_vm1, %v4913_v49  ;;  %v4921_v0 = vld [vmem:[%s5990_s28 + $0xca] sm:$0xff]  ;;  %v4858_v30 = vld [vmem:[%s5990_s28 + $0xe1] sm:$0xff] }
 0x139   : > { %714 = vst.msk [vmem:[%s6379_s4 + $0xd0] sm:$0xff] %vm230_vm2, %v682_v16  ;;  %v5319_v39 = vpop.f32.mrb[12].mxu1  ;;  %v666_v3 = vadd.f32 %v547_v42, %v307_v13  ;;  %5684 = vmatprep.mubr.msk.f32.mxu0 %vm330_vm1, %v4914_v32  ;;  %v4922_v7 = vld [vmem:[%s5990_s28 + $0xda] sm:$0xff]  ;;  %v4859_v49 = vld [vmem:[%s5990_s28 + $0xf1] sm:$0xff] }
 0x13a   : > { %v685_v57 = vadd.f32 %v5319_v39, %v326_v20  ;;  %v637_v11 = vpop.f32.mrb[13].mxu1  ;;  %5635 = vmatmul.mubr.msk.f32.gmra.mrb[118].mxu1 %vm330_vm1, %v6258_v60  ;;  %699 = vst.msk [vmem:[%s6379_s4 + $0x58] sm:$0xff] %vm230_vm2, %v667_v58  ;;  %v327_v60 = vld [vmem:[%s6379_s4 + $0xf0] sm:$0xff]  ;;  %v757_v20 = vld [vmem:[%s6379_s4 + $0x28] sm:$0xff] }
 0x13b   : > { %v684_v47 = vadd.f32 %v637_v11, %v325_v56  ;;  %5637 = vmatprep.mubr.msk.f32.mxu1 %vm330_vm1, %v4851_v36  ;;  %698 = vst.msk [vmem:[%s6379_s4 + $0x50] sm:$0xff] %vm230_vm2, %v666_v3  ;;  %v5295_v18 = vpop.f32.mrb[12].mxu0  ;;  %v756_v36 = vld [vmem:[%s6379_s4 + $0x20] sm:$0xff]  ;;  %v4924_v11 = vld [vmem:[%s5990_s28 + $0xf2] sm:$0xff] }
 0x13c   : > { %717 = vst.msk [vmem:[%s6379_s4 + $0xe8] sm:$0xff] %vm230_vm2, %v685_v57  ;;  %v669_v23 = vadd.f32 %v5295_v18, %v310_v46  ;;  %v557_v25 = vpop.f32.mrb[13].mxu0  ;;  %5685 = vmatmul.mubr.msk.f32.gmra.mrb[118].mxu0 %vm330_vm1, %v4915_v40  ;;  %v4923_v39 = vld [vmem:[%s5990_s28 + $0xe2] sm:$0xff]  ;;  %v4860_v57 = vld [vmem:[%s5990_s28 + $0xf9] sm:$0xff] }
 0x13d   : > { %716 = vst.msk [vmem:[%s6379_s4 + $0xe0] sm:$0xff] %vm230_vm2, %v684_v47  ;;  %v5322_v21 = vpop.f32.mrb[14].mxu1  ;;  %v668_v29 = vadd.f32 %v557_v25, %v309_v34  ;;  %5687 = vmatprep.mubr.msk.f32.mxu0 %vm330_vm1, %v4916_v15  ;;  %v4861_v46 = vld [vmem:[%s5990_s28 + $0x109] sm:$0xff] }
 0x13e   : > { %v687_v43 = vadd.f32 %v5322_v21, %v328_v41  ;;  %v647_v27 = vpop.f32.mrb[15].mxu1  ;;  %5638 = vmatmul.mubr.msk.f32.gmra.mrb[120].mxu1 %vm330_vm1, %v4852_v51  ;;  %701 = vst.msk [vmem:[%s6379_s4 + $0x68] sm:$0xff] %vm230_vm2, %v669_v23  ;;  %v759_v51 = vld [vmem:[%s6379_s4 + $0x38] sm:$0xff] }
 0x13f   : > { %v686_v44 = vadd.f32 %v647_v27, %v327_v60  ;;  %5640 = vmatprep.mubr.msk.f32.mxu1 %vm330_vm1, %v4853_v45  ;;  %700 = vst.msk [vmem:[%s6379_s4 + $0x60] sm:$0xff] %vm230_vm2, %v668_v29  ;;  %v5298_v4 = vpop.f32.mrb[14].mxu0  ;;  %v758_v45 = vld [vmem:[%s6379_s4 + $0x30] sm:$0xff]  ;;  %v4925_v21 = vld [vmem:[%s5990_s28 + $0xfa] sm:$0xff] }
 0x140   : > { %719 = vst.msk [vmem:[%s6379_s4 + $0xf8] sm:$0xff] %vm230_vm2, %v687_v43  ;;  %v671_v12 = vadd.f32 %v5298_v4, %v312_v31  ;;  %v567_v48 = vpop.f32.mrb[15].mxu0  ;;  %5688 = vmatmul.mubr.msk.f32.gmra.mrb[120].mxu0 %vm330_vm1, %v4917_v33  ;;  %v4862_v43 = vld [vmem:[%s5990_s28 + $0x111] sm:$0xff]  ;;  %v4863_v33 = vld [vmem:[%s5990_s28 + $0x121] sm:$0xff] }
 0x141   : > { %718 = vst.msk [vmem:[%s6379_s4 + $0xf0] sm:$0xff] %vm230_vm2, %v686_v44  ;;  %v5327_v9 = vpop.f32.mrb[16].mxu1  ;;  %v670_v17 = vadd.f32 %v567_v48, %v311_v37  ;;  %5690 = vmatprep.mubr.msk.f32.mxu0 %vm330_vm1, %v4918_v1  ;;  %v4926_v27 = vld [vmem:[%s5990_s28 + $0x10a] sm:$0xff] }
 0x142   : > { %v1111_v53 = vadd.f32 %v5327_v9, %v753_v8  ;;  %v951_v50 = vpop.f32.mrb[17].mxu1  ;;  %5641 = vmatmul.mubr.msk.f32.gmra.mrb[122].mxu1 %vm330_vm1, %v4854_v35  ;;  %703 = vst.msk [vmem:[%s6379_s4 + $0x78] sm:$0xff] %vm230_vm2, %v671_v12  ;;  %v761_v37 = vld [vmem:[%s6379_s4 + $0x48] sm:$0xff]  ;;  %v760_v8 = vld [vmem:[%s6379_s4 + $0x40] sm:$0xff]  ;;  %v4927_v12 = vld [vmem:[%s5990_s28 + $0x112] sm:$0xff] }
 0x143   : > { %v1110_v22 = vadd.f32 %v951_v50, %v752_v14  ;;  %5643 = vmatprep.mubr.msk.f32.mxu1 %vm330_vm1, %v4855_v2  ;;  %702 = vst.msk [vmem:[%s6379_s4 + $0x70] sm:$0xff] %vm230_vm2, %v670_v17  ;;  %v5377_v55 = vpop.f32.mrb[16].mxu0  ;;  %v4864_v14 = vld [vmem:[%s5990_s28 + $0x129] sm:$0xff] }
 0x144   : > { %1143 = vst.msk [vmem:[%s6379_s4 + $0x8] sm:$0xff] %vm230_vm2, %v1111_v53  ;;  %v1405_v52 = vpop.f32.mrb[17].mxu0  ;;  %5691 = vmatmul.mubr.msk.f32.gmra.mrb[122].mxu0 %vm330_vm1, %v4919_v19  ;;  %v4928_v50 = vld [vmem:[%s5990_s28 + $0x122] sm:$0xff] }
 0x145   : > { %1142 = vst.msk [vmem:[%s6379_s4] sm:$0xff] %vm230_vm2, %v1110_v22  ;;  %v5330_v63 = vpop.f32.mrb[18].mxu1  ;;  %5693 = vmatprep.mubr.msk.f32.mxu0 %vm330_vm1, %v4920_v61  ;;  %v4865_v22 = vld [vmem:[%s5990_s28 + $0x139] sm:$0xff] }
 0x146   : > { %v1113_v59 = vadd.f32 %v5330_v63, %v755_v62  ;;  %v961_v28 = vpop.f32.mrb[19].mxu1  ;;  %5644 = vmatmul.mubr.msk.f32.gmra.mrb[124].mxu1 %vm330_vm1, %v4856_v24 }
 0x147   : > { %v1112_v5 = vadd.f32 %v961_v28, %v754_v54  ;;  %5646 = vmatprep.mubr.msk.f32.mxu1 %vm330_vm1, %v4857_v26  ;;  %v5380_v16 = vpop.f32.mrb[18].mxu0  ;;  %v763_v26 = vld [vmem:[%s6379_s4 + $0x58] sm:$0xff]  ;;  %v4929_v54 = vld [vmem:[%s5990_s28 + $0x12a] sm:$0xff] }
 0x148   : > { %1145 = vst.msk [vmem:[%s6379_s4 + $0x18] sm:$0xff] %vm230_vm2, %v1113_v59  ;;  %v1415_v32 = vpop.f32.mrb[19].mxu0  ;;  %5694 = vmatmul.mubr.msk.f32.gmra.mrb[124].mxu0 %vm330_vm1, %v4921_v0 }
 0x149   : > { %1144 = vst.msk [vmem:[%s6379_s4 + $0x10] sm:$0xff] %vm230_vm2, %v1112_v5  ;;  %v5333_v13 = vpop.f32.mrb[20].mxu1  ;;  %5696 = vmatprep.mubr.msk.f32.mxu0 %vm330_vm1, %v4922_v7  ;;  %v4866_v5 = vld [vmem:[%s5990_s28 + $0x141] sm:$0xff] }
 0x14a   : > { %v1115_v56 = vadd.f32 %v5333_v13, %v757_v20  ;;  %v971_v38 = vpop.f32.mrb[21].mxu1  ;;  %5647 = vmatmul.mubr.msk.f32.gmra.mrb[126].mxu1 %vm330_vm1, %v4858_v30  ;;  %v4930_v30 = vld [vmem:[%s5990_s28 + $0x13a] sm:$0xff] }
 0x14b   : > { %v1114_v58 = vadd.f32 %v971_v38, %v756_v36  ;;  %v1207_v42 = vld [vmem:[%s6379_s4 + $0x8] sm:$0xff]  ;;  %5649 = vmatprep.mubr.msk.f32.mxu1 %vm330_vm1, %v4859_v49  ;;  %v5383_v40 = vpop.f32.mrb[20].mxu0 }
 0x14c   : > { %1147 = vst.msk [vmem:[%s6379_s4 + $0x28] sm:$0xff] %vm230_vm2, %v1115_v56  ;;  %v1565_v41 = vadd.f32 %v5377_v55, %v1207_v42  ;;  %v1206_v3 = vld [vmem:[%s6379_s4] sm:$0xff]  ;;  %v1425_v15 = vpop.f32.mrb[21].mxu0  ;;  %5697 = vmatmul.mubr.msk.f32.gmra.mrb[126].mxu0 %vm330_vm1, %v4923_v39 }
 0x14d   : > { %1146 = vst.msk [vmem:[%s6379_s4 + $0x20] sm:$0xff] %vm230_vm2, %v1114_v58  ;;  %v1564_v47 = vadd.f32 %v1405_v52, %v1206_v3  ;;  %v5336_v34 = vpop.f32.mrb[22].mxu1  ;;  %5699 = vmatprep.mubr.msk.f32.mxu0 %vm330_vm1, %v4924_v11  ;;  %v762_v52 = vld [vmem:[%s6379_s4 + $0x50] sm:$0xff]  ;;  %v764_v39 = vld [vmem:[%s6379_s4 + $0x60] sm:$0xff] }
 0x14e   : > { %1597 = vst.msk [vmem:[%s6379_s4 + $0x8] sm:$0xff] %vm230_vm2, %v1565_v41  ;;  %v1117_v60 = vadd.f32 %v5336_v34, %v759_v51  ;;  %v981_v18 = vpop.f32.mrb[23].mxu1  ;;  %5650 = vmatmul.mubr.msk.f32.gmra.mrb[128].mxu1 %vm330_vm1, %v4860_v57  ;;  %v4931_v42 = vld [vmem:[%s5990_s28 + $0x142] sm:$0xff]  ;;  %v4868_v41 = vld [vmem:[%s5990_s28 + $0x159] sm:$0xff] }
 0x14f   : > { %1596 = vst.msk [vmem:[%s6379_s4] sm:$0xff] %vm230_vm2, %v1564_v47  ;;  %v1116_v23 = vadd.f32 %v981_v18, %v758_v45  ;;  %v1209_v25 = vld [vmem:[%s6379_s4 + $0x18] sm:$0xff]  ;;  %5652 = vmatprep.mubr.msk.f32.mxu1 %vm330_vm1, %v4861_v46  ;;  %v5386_v44 = vpop.f32.mrb[22].mxu0  ;;  %v4869_v47 = vld [vmem:[%s5990_s28 + $0x169] sm:$0xff] }
 0x150   : > { %1149 = vst.msk [vmem:[%s6379_s4 + $0x38] sm:$0xff] %vm230_vm2, %v1117_v60  ;;  %v1567_v29 = vadd.f32 %v5380_v16, %v1209_v25  ;;  %v1208_v31 = vld [vmem:[%s6379_s4 + $0x10] sm:$0xff]  ;;  %v1435_v2 = vpop.f32.mrb[23].mxu0  ;;  %5700 = vmatmul.mubr.msk.f32.gmra.mrb[128].mxu0 %vm330_vm1, %v4925_v21  ;;  %v4933_v25 = vld [vmem:[%s5990_s28 + $0x15a] sm:$0xff] }
 0x151   : > { %1148 = vst.msk [vmem:[%s6379_s4 + $0x30] sm:$0xff] %vm230_vm2, %v1116_v23  ;;  %v1566_v35 = vadd.f32 %v1415_v32, %v1208_v31  ;;  %v5339_v1 = vpop.f32.mrb[24].mxu1  ;;  %5702 = vmatprep.mubr.msk.f32.mxu0 %vm330_vm1, %v4926_v27  ;;  %v4867_v16 = vld [vmem:[%s5990_s28 + $0x151] sm:$0xff]  ;;  %v765_v32 = vld [vmem:[%s6379_s4 + $0x68] sm:$0xff] }
 0x152   : > { %1599 = vst.msk [vmem:[%s6379_s4 + $0x18] sm:$0xff] %vm230_vm2, %v1567_v29  ;;  %v1119_v4 = vadd.f32 %v5339_v1, %v761_v37  ;;  %v991_v9 = vpop.f32.mrb[25].mxu1  ;;  %5653 = vmatmul.mubr.msk.f32.gmra.mrb[130].mxu1 %vm330_vm1, %v4862_v43  ;;  %v4932_v3 = vld [vmem:[%s5990_s28 + $0x152] sm:$0xff]  ;;  %v4934_v31 = vld [vmem:[%s5990_s28 + $0x16a] sm:$0xff] }
 0x153   : > { %1598 = vst.msk [vmem:[%s6379_s4 + $0x10] sm:$0xff] %vm230_vm2, %v1566_v35  ;;  %v1118_v48 = vadd.f32 %v991_v9, %v760_v8  ;;  %v1211_v53 = vld [vmem:[%s6379_s4 + $0x28] sm:$0xff]  ;;  %5655 = vmatprep.mubr.msk.f32.mxu1 %vm330_vm1, %v4863_v33  ;;  %v5389_v24 = vpop.f32.mrb[24].mxu0  ;;  %v766_v21 = vld [vmem:[%s6379_s4 + $0x70] sm:$0xff] }
 0x154   : > { %1151 = vst.msk [vmem:[%s6379_s4 + $0x48] sm:$0xff] %vm230_vm2, %v1119_v4  ;;  %v1569_v17 = vadd.f32 %v5383_v40, %v1211_v53  ;;  %v1210_v19 = vld [vmem:[%s6379_s4 + $0x20] sm:$0xff]  ;;  %v1445_v62 = vpop.f32.mrb[25].mxu0  ;;  %5703 = vmatmul.mubr.msk.f32.gmra.mrb[130].mxu0 %vm330_vm1, %v4927_v12  ;;  %v4870_v29 = vld [vmem:[%s5990_s28 + $0x171] sm:$0xff] }
 0x155   : > { %1150 = vst.msk [vmem:[%s6379_s4 + $0x40] sm:$0xff] %vm230_vm2, %v1118_v48  ;;  %v1568_v61 = vadd.f32 %v1425_v15, %v1210_v19  ;;  %v5342_v55 = vpop.f32.mrb[26].mxu1  ;;  %5705 = vmatprep.mubr.msk.f32.mxu0 %vm330_vm1, %v4928_v50  ;;  %v767_v15 = vld [vmem:[%s6379_s4 + $0x78] sm:$0xff]  ;;  %v4871_v35 = vld [vmem:[%s5990_s28 + $0x181] sm:$0xff] }
 0x156   : > { %1601 = vst.msk [vmem:[%s6379_s4 + $0x28] sm:$0xff] %vm230_vm2, %v1569_v17  ;;  %v1121_v63 = vadd.f32 %v5342_v55, %v763_v26  ;;  %v1001_v59 = vpop.f32.mrb[27].mxu1  ;;  %5656 = vmatmul.mubr.msk.f32.gmra.mrb[132].mxu1 %vm330_vm1, %v4864_v14  ;;  %v768_v12 = vld [vmem:[%s6379_s4 + $0x80] sm:$0xff]  ;;  %v4935_v53 = vld [vmem:[%s5990_s28 + $0x172] sm:$0xff]  ;;  %v4872_v17 = vld [vmem:[%s5990_s28 + $0x189] sm:$0xff] }
 0x157   : > { %1600 = vst.msk [vmem:[%s6379_s4 + $0x20] sm:$0xff] %vm230_vm2, %v1568_v61  ;;  %v1120_v28 = vadd.f32 %v1001_v59, %v762_v52  ;;  %v1213_v0 = vld [vmem:[%s6379_s4 + $0x38] sm:$0xff]  ;;  %5658 = vmatprep.mubr.msk.f32.mxu1 %vm330_vm1, %v4865_v22  ;;  %v5392_v20 = vpop.f32.mrb[26].mxu0  ;;  %v770_v59 = vld [vmem:[%s6379_s4 + $0x90] sm:$0xff] }
 0x158   : > { %1153 = vst.msk [vmem:[%s6379_s4 + $0x58] sm:$0xff] %vm230_vm2, %v1121_v63  ;;  %v1571_v7 = vadd.f32 %v5386_v44, %v1213_v0  ;;  %v1212_v49 = vld [vmem:[%s6379_s4 + $0x30] sm:$0xff]  ;;  %v1455_v36 = vpop.f32.mrb[27].mxu0  ;;  %5706 = vmatmul.mubr.msk.f32.gmra.mrb[132].mxu0 %vm330_vm1, %v4929_v54  ;;  %v771_v55 = vld [vmem:[%s6379_s4 + $0x98] sm:$0xff] }
 0x159   : > { %1152 = vst.msk [vmem:[%s6379_s4 + $0x50] sm:$0xff] %vm230_vm2, %v1120_v28  ;;  %v1570_v13 = vadd.f32 %v1435_v2, %v1212_v49  ;;  %v5345_v56 = vpop.f32.mrb[28].mxu1  ;;  %5708 = vmatprep.mubr.msk.f32.mxu0 %vm330_vm1, %v4930_v30  ;;  %v769_v2 = vld [vmem:[%s6379_s4 + $0x88] sm:$0xff]  ;;  %v4938_v30 = vld [vmem:[%s5990_s28 + $0x19a] sm:$0xff] }
 0x15a   : > { %1603 = vst.msk [vmem:[%s6379_s4 + $0x38] sm:$0xff] %vm230_vm2, %v1571_v7  ;;  %v1123_v38 = vadd.f32 %v5345_v56, %v765_v32  ;;  %v1011_v58 = vpop.f32.mrb[29].mxu1  ;;  %5659 = vmatmul.mubr.msk.f32.gmra.mrb[134].mxu1 %vm330_vm1, %v4866_v5  ;;  %v4874_v5 = vld [vmem:[%s5990_s28 + $0x1a1] sm:$0xff] }
 0x15b   : > { %1602 = vst.msk [vmem:[%s6379_s4 + $0x30] sm:$0xff] %vm230_vm2, %v1570_v13  ;;  %v1122_v57 = vadd.f32 %v1011_v58, %v764_v39  ;;  %v1215_v11 = vld [vmem:[%s6379_s4 + $0x48] sm:$0xff]  ;;  %5661 = vmatprep.mubr.msk.f32.mxu1 %vm330_vm1, %v4867_v16  ;;  %v5395_v51 = vpop.f32.mrb[28].mxu0 }
 0x15c   : > { %1155 = vst.msk [vmem:[%s6379_s4 + $0x68] sm:$0xff] %vm230_vm2, %v1123_v38  ;;  %v1573_v46 = vadd.f32 %v5389_v24, %v1215_v11  ;;  %v1214_v40 = vld [vmem:[%s6379_s4 + $0x40] sm:$0xff]  ;;  %v1465_v45 = vpop.f32.mrb[29].mxu0  ;;  %5709 = vmatmul.mubr.msk.f32.gmra.mrb[134].mxu0 %vm330_vm1, %v4931_v42 }
 0x15d   : > { %1154 = vst.msk [vmem:[%s6379_s4 + $0x60] sm:$0xff] %vm230_vm2, %v1122_v57  ;;  %v1572_v34 = vadd.f32 %v1445_v62, %v1214_v40  ;;  %v5348_v60 = vpop.f32.mrb[30].mxu1  ;;  %5711 = vmatprep.mubr.msk.f32.mxu0 %vm330_vm1, %v4932_v3  ;;  %v4873_v24 = vld [vmem:[%s5990_s28 + $0x199] sm:$0xff]  ;;  %v4939_v39 = vld [vmem:[%s5990_s28 + $0x1a2] sm:$0xff] }
 0x15e   : > { %1605 = vst.msk [vmem:[%s6379_s4 + $0x48] sm:$0xff] %vm230_vm2, %v1573_v46  ;;  %v1125_v18 = vadd.f32 %v5348_v60, %v767_v15  ;;  %v1021_v23 = vpop.f32.mrb[31].mxu1  ;;  %5662 = vmatmul.mubr.msk.f32.gmra.mrb[136].mxu1 %vm330_vm1, %v4868_v41  ;;  %v775_v3 = vld [vmem:[%s6379_s4 + $0xb8] sm:$0xff] }
 0x15f   : > { %1604 = vst.msk [vmem:[%s6379_s4 + $0x40] sm:$0xff] %vm230_vm2, %v1572_v34  ;;  %v1124_v43 = vadd.f32 %v1021_v23, %v766_v21  ;;  %v1217_v27 = vld [vmem:[%s6379_s4 + $0x58] sm:$0xff]  ;;  %5664 = vmatprep.mubr.msk.f32.mxu1 %vm330_vm1, %v4869_v47  ;;  %v5398_v37 = vpop.f32.mrb[30].mxu0 }
 0x160   : > { %1157 = vst.msk [vmem:[%s6379_s4 + $0x78] sm:$0xff] %vm230_vm2, %v1125_v18  ;;  %v1575_v33 = vadd.f32 %v5392_v20, %v1217_v27  ;;  %v1216_v44 = vld [vmem:[%s6379_s4 + $0x50] sm:$0xff]  ;;  %v1475_v8 = vpop.f32.mrb[31].mxu0  ;;  %5712 = vmatmul.mubr.msk.f32.gmra.mrb[136].mxu0 %vm330_vm1, %v4933_v25  ;;  %v773_v20 = vld [vmem:[%s6379_s4 + $0xa8] sm:$0xff] }
 0x161   : > { %1156 = vst.msk [vmem:[%s6379_s4 + $0x70] sm:$0xff] %vm230_vm2, %v1124_v43  ;;  %v1574_v1 = vadd.f32 %v1455_v36, %v1216_v44  ;;  %v5351_v4 = vpop.f32.mrb[32].mxu1  ;;  %5714 = vmatprep.mubr.msk.f32.mxu0 %vm330_vm1, %v4934_v31  ;;  %v772_v36 = vld [vmem:[%s6379_s4 + $0xa0] sm:$0xff]  ;;  %v777_v25 = vld [vmem:[%s6379_s4 + $0xc8] sm:$0xff] }
 0x162   : > { %1607 = vst.msk [vmem:[%s6379_s4 + $0x58] sm:$0xff] %vm230_vm2, %v1575_v33  ;;  %v1127_v9 = vadd.f32 %v5351_v4, %v769_v2  ;;  %v1031_v48 = vpop.f32.mrb[33].mxu1  ;;  %5665 = vmatmul.mubr.msk.f32.gmra.mrb[138].mxu1 %vm330_vm1, %v4870_v29  ;;  %v776_v31 = vld [vmem:[%s6379_s4 + $0xc0] sm:$0xff] }
 0x163   : > { %1606 = vst.msk [vmem:[%s6379_s4 + $0x50] sm:$0xff] %vm230_vm2, %v1574_v1  ;;  %v1126_v14 = vadd.f32 %v1031_v48, %v768_v12  ;;  %v1219_v50 = vld [vmem:[%s6379_s4 + $0x68] sm:$0xff]  ;;  %5667 = vmatprep.mubr.msk.f32.mxu1 %vm330_vm1, %v4871_v35  ;;  %v5401_v61 = vpop.f32.mrb[32].mxu0 }
 0x164   : > { %1159 = vst.msk [vmem:[%s6379_s4 + $0x88] sm:$0xff] %vm230_vm2, %v1127_v9  ;;  %v1577_v19 = vadd.f32 %v5395_v51, %v1219_v50  ;;  %v1218_v22 = vld [vmem:[%s6379_s4 + $0x60] sm:$0xff]  ;;  %v1485_v63 = vpop.f32.mrb[33].mxu0  ;;  %5715 = vmatmul.mubr.msk.f32.gmra.mrb[138].mxu0 %vm330_vm1, %v4935_v53  ;;  %v774_v51 = vld [vmem:[%s6379_s4 + $0xb0] sm:$0xff] }
 0x165   : > { %1158 = vst.msk [vmem:[%s6379_s4 + $0x80] sm:$0xff] %vm230_vm2, %v1126_v14  ;;  %v1576_v26 = vadd.f32 %v1465_v45, %v1218_v22  ;;  %v5354_v62 = vpop.f32.mrb[34].mxu1  ;;  %5717 = vmatprep.mubr.msk.f32.mxu0 %vm330_vm1, %v6815_v6  ;;  %v778_v53 = vld [vmem:[%s6379_s4 + $0xd0] sm:$0xff] }
 0x166   : > { %1609 = vst.msk [vmem:[%s6379_s4 + $0x68] sm:$0xff] %vm230_vm2, %v1577_v19  ;;  %v1129_v52 = vadd.f32 %v5354_v62, %v771_v55  ;;  %v1041_v54 = vpop.f32.mrb[35].mxu1  ;;  %5668 = vmatmul.mubr.msk.f32.gmra.mrb[140].mxu1 %vm330_vm1, %v4872_v17 }
 0x167   : > { %1608 = vst.msk [vmem:[%s6379_s4 + $0x60] sm:$0xff] %vm230_vm2, %v1576_v26  ;;  %v1128_v28 = vadd.f32 %v1041_v54, %v770_v59  ;;  %v1221_v0 = vld [vmem:[%s6379_s4 + $0x78] sm:$0xff]  ;;  %5670 = vmatprep.mubr.msk.f32.mxu1 %vm330_vm1, %v4873_v24  ;;  %v5404_v16 = vpop.f32.mrb[34].mxu0  ;;  %v781_v26 = vld [vmem:[%s6379_s4 + $0xe8] sm:$0xff] }
 0x168   : > { %1161 = vst.msk [vmem:[%s6379_s4 + $0x98] sm:$0xff] %vm230_vm2, %v1129_v52  ;;  %v1579_v7 = vadd.f32 %v5398_v37, %v1221_v0  ;;  %v1220_v49 = vld [vmem:[%s6379_s4 + $0x70] sm:$0xff]  ;;  %v1495_v32 = vpop.f32.mrb[35].mxu0  ;;  %5718 = vmatmul.mubr.msk.f32.gmra.mrb[140].mxu0 %vm330_vm1, %v6830_v10  ;;  %v780_v52 = vld [vmem:[%s6379_s4 + $0xe0] sm:$0xff] }
 0x169   : > { %1160 = vst.msk [vmem:[%s6379_s4 + $0x90] sm:$0xff] %vm230_vm2, %v1128_v28  ;;  %v1578_v6 = vadd.f32 %v1475_v8, %v1220_v49  ;;  %v5357_v13 = vpop.f32.mrb[36].mxu1  ;;  %5720 = vmatprep.mubr.msk.f32.mxu0 %vm330_vm1, %v4938_v30  ;;  %v779_v8 = vld [vmem:[%s6379_s4 + $0xd8] sm:$0xff] }
 0x16a   : > { %1611 = vst.msk [vmem:[%s6379_s4 + $0x78] sm:$0xff] %vm230_vm2, %v1579_v7  ;;  %v1131_v56 = vadd.f32 %v5357_v13, %v773_v20  ;;  %v1051_v38 = vpop.f32.mrb[37].mxu1  ;;  %5671 = vmatmul.mubr.msk.f32.gmra.mrb[142].mxu1 %vm330_vm1, %v4874_v5  ;;  %v783_v49 = vld [vmem:[%s6379_s4 + $0xf8] sm:$0xff]  ;;  %v782_v13 = vld [vmem:[%s6379_s4 + $0xf0] sm:$0xff] }
 0x16b   : > { %1610 = vst.msk [vmem:[%s6379_s4 + $0x70] sm:$0xff] %vm230_vm2, %v1578_v6  ;;  %v1130_v58 = vadd.f32 %v1051_v38, %v772_v36  ;;  %v1223_v42 = vld [vmem:[%s6379_s4 + $0x88] sm:$0xff]  ;;  %v5407_v11 = vpop.f32.mrb[36].mxu0 }
 0x16c   : > { %1163 = vst.msk [vmem:[%s6379_s4 + $0xa8] sm:$0xff] %vm230_vm2, %v1131_v56  ;;  %v1581_v10 = vadd.f32 %v5401_v61, %v1223_v42  ;;  %v1222_v57 = vld [vmem:[%s6379_s4 + $0x80] sm:$0xff]  ;;  %v1505_v40 = vpop.f32.mrb[37].mxu0  ;;  %5721 = vmatmul.mubr.msk.f32.gmra.mrb[142].mxu0 %vm330_vm1, %v4939_v39 }
 0x16d   : > { %1162 = vst.msk [vmem:[%s6379_s4 + $0xa0] sm:$0xff] %vm230_vm2, %v1130_v58  ;;  %v1580_v41 = vadd.f32 %v1485_v63, %v1222_v57  ;;  %v5360_v46 = vpop.f32.mrb[38].mxu1 }
 0x16e   : > { %1613 = vst.msk [vmem:[%s6379_s4 + $0x88] sm:$0xff] %vm230_vm2, %v1581_v10  ;;  %v1133_v47 = vadd.f32 %v5360_v46, %v775_v3  ;;  %v1061_v34 = vpop.f32.mrb[39].mxu1  ;;  %v1664_v10 = vld [vmem:[%s6379_s4 + $0x8] sm:$0xff]  ;;  %v1663_v3 = vld [vmem:[%s6379_s4] sm:$0xff] }
 0x16f   : > { %1612 = vst.msk [vmem:[%s6379_s4 + $0x80] sm:$0xff] %vm230_vm2, %v1580_v41  ;;  %v1132_v15 = vadd.f32 %v1061_v34, %v774_v51  ;;  %v1225_v60 = vld [vmem:[%s6379_s4 + $0x98] sm:$0xff]  ;;  %v5410_v21 = vpop.f32.mrb[38].mxu0 }
 0x170   : > { %1165 = vst.msk [vmem:[%s6379_s4 + $0xb8] sm:$0xff] %vm230_vm2, %v1133_v47  ;;  %v1583_v45 = vadd.f32 %v5404_v16, %v1225_v60  ;;  %v1224_v18 = vld [vmem:[%s6379_s4 + $0x90] sm:$0xff]  ;;  %v1515_v27 = vpop.f32.mrb[39].mxu0 }
 0x171   : > { %1164 = vst.msk [vmem:[%s6379_s4 + $0xb0] sm:$0xff] %vm230_vm2, %v1132_v15  ;;  %v1582_v23 = vadd.f32 %v1495_v32, %v1224_v18  ;;  %v5363_v43 = vpop.f32.mrb[40].mxu1 }
 0x172   : > { %1615 = vst.msk [vmem:[%s6379_s4 + $0x98] sm:$0xff] %vm230_vm2, %v1583_v45  ;;  %v1135_v29 = vadd.f32 %v5363_v43, %v777_v25  ;;  %v1071_v33 = vpop.f32.mrb[41].mxu1  ;;  %v1666_v45 = vld [vmem:[%s6379_s4 + $0x18] sm:$0xff]  ;;  %v1665_v25 = vld [vmem:[%s6379_s4 + $0x10] sm:$0xff] }
 0x173   : > { %1614 = vst.msk [vmem:[%s6379_s4 + $0x90] sm:$0xff] %vm230_vm2, %v1582_v23  ;;  %v1134_v44 = vadd.f32 %v1071_v33, %v776_v31  ;;  %v1227_v35 = vld [vmem:[%s6379_s4 + $0xa8] sm:$0xff]  ;;  %v5413_v2 = vpop.f32.mrb[40].mxu0 }
 0x174   : > { %1167 = vst.msk [vmem:[%s6379_s4 + $0xc8] sm:$0xff] %vm230_vm2, %v1135_v29  ;;  %v1585_v37 = vadd.f32 %v5407_v11, %v1227_v35  ;;  %v1226_v1 = vld [vmem:[%s6379_s4 + $0xa0] sm:$0xff]  ;;  %v1525_v12 = vpop.f32.mrb[41].mxu0 }
 0x175   : > { %1166 = vst.msk [vmem:[%s6379_s4 + $0xc0] sm:$0xff] %vm230_vm2, %v1134_v44  ;;  %v1584_v4 = vadd.f32 %v1505_v40, %v1226_v1  ;;  %v5366_v9 = vpop.f32.mrb[42].mxu1 }
 0x176   : > { %1617 = vst.msk [vmem:[%s6379_s4 + $0xa8] sm:$0xff] %vm230_vm2, %v1585_v37  ;;  %v1137_v48 = vadd.f32 %v5366_v9, %v779_v8  ;;  %v1081_v14 = vpop.f32.mrb[43].mxu1  ;;  %v1668_v37 = vld [vmem:[%s6379_s4 + $0x28] sm:$0xff]  ;;  %v1667_v8 = vld [vmem:[%s6379_s4 + $0x20] sm:$0xff] }
 0x177   : > { %1616 = vst.msk [vmem:[%s6379_s4 + $0xa0] sm:$0xff] %vm230_vm2, %v1584_v4  ;;  %v1136_v50 = vadd.f32 %v1081_v14, %v778_v53  ;;  %v1229_v17 = vld [vmem:[%s6379_s4 + $0xb8] sm:$0xff]  ;;  %v5416_v24 = vpop.f32.mrb[42].mxu0 }
 0x178   : > { %1169 = vst.msk [vmem:[%s6379_s4 + $0xd8] sm:$0xff] %vm230_vm2, %v1137_v48  ;;  %v1587_v19 = vadd.f32 %v5410_v21, %v1229_v17  ;;  %v1228_v22 = vld [vmem:[%s6379_s4 + $0xb0] sm:$0xff]  ;;  %v1535_v62 = vpop.f32.mrb[43].mxu0 }
 0x179   : > { %1168 = vst.msk [vmem:[%s6379_s4 + $0xd0] sm:$0xff] %vm230_vm2, %v1136_v50  ;;  %v1586_v61 = vadd.f32 %v1515_v27, %v1228_v22  ;;  %v5369_v55 = vpop.f32.mrb[44].mxu1 }
 0x17a   : > { %1619 = vst.msk [vmem:[%s6379_s4 + $0xb8] sm:$0xff] %vm230_vm2, %v1587_v19  ;;  %v1139_v63 = vadd.f32 %v5369_v55, %v781_v26  ;;  %v1091_v59 = vpop.f32.mrb[45].mxu1  ;;  %v1670_v19 = vld [vmem:[%s6379_s4 + $0x38] sm:$0xff]  ;;  %v1669_v26 = vld [vmem:[%s6379_s4 + $0x30] sm:$0xff] }
 0x17b   : > { %1618 = vst.msk [vmem:[%s6379_s4 + $0xb0] sm:$0xff] %vm230_vm2, %v1586_v61  ;;  %v1138_v54 = vadd.f32 %v1091_v59, %v780_v52  ;;  %v1231_v28 = vld [vmem:[%s6379_s4 + $0xc8] sm:$0xff]  ;;  %v5419_v30 = vpop.f32.mrb[44].mxu0 }
 0x17c   : > { %1171 = vst.msk [vmem:[%s6379_s4 + $0xe8] sm:$0xff] %vm230_vm2, %v1139_v63  ;;  %v1589_v0 = vadd.f32 %v5413_v2, %v1231_v28  ;;  %v1230_v5 = vld [vmem:[%s6379_s4 + $0xc0] sm:$0xff]  ;;  %v1545_v6 = vpop.f32.mrb[45].mxu0 }
 0x17d   : > { %1170 = vst.msk [vmem:[%s6379_s4 + $0xe0] sm:$0xff] %vm230_vm2, %v1138_v54  ;;  %v1588_v7 = vadd.f32 %v1525_v12, %v1230_v5  ;;  %v5372_v16 = vpop.f32.mrb[46].mxu1 }
 0x17e   : > { %1621 = vst.msk [vmem:[%s6379_s4 + $0xc8] sm:$0xff] %vm230_vm2, %v1589_v0  ;;  %v1141_v20 = vadd.f32 %v5372_v16, %v783_v49  ;;  %v1101_v32 = vpop.f32.mrb[47].mxu1  ;;  %v1672_v0 = vld [vmem:[%s6379_s4 + $0x48] sm:$0xff]  ;;  %v1671_v49 = vld [vmem:[%s6379_s4 + $0x40] sm:$0xff] }
 0x17f   : > { %1620 = vst.msk [vmem:[%s6379_s4 + $0xc0] sm:$0xff] %vm230_vm2, %v1588_v7  ;;  %v1140_v56 = vadd.f32 %v1101_v32, %v782_v13  ;;  %v1233_v36 = vld [vmem:[%s6379_s4 + $0xd8] sm:$0xff]  ;;  %v5422_v58 = vpop.f32.mrb[46].mxu0 }
 0x180   : > { %1173 = vst.msk [vmem:[%s6379_s4 + $0xf8] sm:$0xff] %vm230_vm2, %v1141_v20  ;;  %v1591_v38 = vadd.f32 %v5416_v24, %v1233_v36  ;;  %v1232_v39 = vld [vmem:[%s6379_s4 + $0xd0] sm:$0xff]  ;;  %v1555_v11 = vpop.f32.mrb[47].mxu0 }
 0x181   : > { %1172 = vst.msk [vmem:[%s6379_s4 + $0xf0] sm:$0xff] %vm230_vm2, %v1140_v56  ;;  %v1590_v42 = vadd.f32 %v1535_v62, %v1232_v39  ;;  %v5427_v57 = vpop.f32.mrb[48].mxu1 }
 0x182   : > { %1623 = vst.msk [vmem:[%s6379_s4 + $0xd8] sm:$0xff] %vm230_vm2, %v1591_v38  ;;  %v2022_v41 = vadd.f32 %v5427_v57, %v1664_v10  ;;  %v1862_v46 = vpop.f32.mrb[49].mxu1  ;;  %v1674_v38 = vld [vmem:[%s6379_s4 + $0x58] sm:$0xff]  ;;  %v1673_v10 = vld [vmem:[%s6379_s4 + $0x50] sm:$0xff] }
 0x183   : > { %1622 = vst.msk [vmem:[%s6379_s4 + $0xd0] sm:$0xff] %vm230_vm2, %v1590_v42  ;;  %v2021_v40 = vadd.f32 %v1862_v46, %v1663_v3  ;;  %v1235_v47 = vld [vmem:[%s6379_s4 + $0xe8] sm:$0xff]  ;;  %v5477_v15 = vpop.f32.mrb[48].mxu0 }
 0x184   : > { %2054 = vst.msk [vmem:[%s6379_s4 + $0x8] sm:$0xff] %vm230_vm2, %v2022_v41  ;;  %v1593_v51 = vadd.f32 %v5419_v30, %v1235_v47  ;;  %v1234_v34 = vld [vmem:[%s6379_s4 + $0xe0] sm:$0xff]  ;;  %v2316_v21 = vpop.f32.mrb[49].mxu0 }
 0x185   : > { %2053 = vst.msk [vmem:[%s6379_s4] sm:$0xff] %vm230_vm2, %v2021_v40  ;;  %v1592_v60 = vadd.f32 %v1545_v6, %v1234_v34  ;;  %v5430_v18 = vpop.f32.mrb[50].mxu1 }
 0x186   : > { %1625 = vst.msk [vmem:[%s6379_s4 + $0xe8] sm:$0xff] %vm230_vm2, %v1593_v51  ;;  %v2024_v23 = vadd.f32 %v5430_v18, %v1666_v45  ;;  %v1872_v43 = vpop.f32.mrb[51].mxu1  ;;  %v1676_v51 = vld [vmem:[%s6379_s4 + $0x68] sm:$0xff]  ;;  %v1675_v45 = vld [vmem:[%s6379_s4 + $0x60] sm:$0xff] }
 0x187   : > { %1624 = vst.msk [vmem:[%s6379_s4 + $0xe0] sm:$0xff] %vm230_vm2, %v1592_v60  ;;  %v2023_v27 = vadd.f32 %v1872_v43, %v1665_v25  ;;  %v1237_v29 = vld [vmem:[%s6379_s4 + $0xf8] sm:$0xff]  ;;  %v5480_v44 = vpop.f32.mrb[50].mxu0 }
 0x188   : > { %2056 = vst.msk [vmem:[%s6379_s4 + $0x18] sm:$0xff] %vm230_vm2, %v2024_v23  ;;  %v1595_v31 = vadd.f32 %v5422_v58, %v1237_v29  ;;  %v1236_v33 = vld [vmem:[%s6379_s4 + $0xf0] sm:$0xff]  ;;  %v2326_v2 = vpop.f32.mrb[51].mxu0 }
 0x189   : > { %2055 = vst.msk [vmem:[%s6379_s4 + $0x10] sm:$0xff] %vm230_vm2, %v2023_v27  ;;  %v1594_v35 = vadd.f32 %v1555_v11, %v1236_v33  ;;  %v5433_v1 = vpop.f32.mrb[52].mxu1 }
 0x18a   : > { %1627 = vst.msk [vmem:[%s6379_s4 + $0xf8] sm:$0xff] %vm230_vm2, %v1595_v31  ;;  %v2026_v4 = vadd.f32 %v5433_v1, %v1668_v37  ;;  %v1882_v9 = vpop.f32.mrb[53].mxu1  ;;  %v1678_v31 = vld [vmem:[%s6379_s4 + $0x78] sm:$0xff]  ;;  %v1677_v37 = vld [vmem:[%s6379_s4 + $0x70] sm:$0xff] }
 0x18b   : > { %1626 = vst.msk [vmem:[%s6379_s4 + $0xf0] sm:$0xff] %vm230_vm2, %v1594_v35  ;;  %v2025_v12 = vadd.f32 %v1882_v9, %v1667_v8  ;;  %v2118_v48 = vld [vmem:[%s6379_s4 + $0x8] sm:$0xff]  ;;  %v5483_v50 = vpop.f32.mrb[52].mxu0 }
 0x18c   : > { %2058 = vst.msk [vmem:[%s6379_s4 + $0x28] sm:$0xff] %vm230_vm2, %v2026_v4  ;;  %v2476_v53 = vadd.f32 %v5477_v15, %v2118_v48  ;;  %v2117_v14 = vld [vmem:[%s6379_s4] sm:$0xff]  ;;  %v2336_v24 = vpop.f32.mrb[53].mxu0 }
 0x18d   : > { %2057 = vst.msk [vmem:[%s6379_s4 + $0x20] sm:$0xff] %vm230_vm2, %v2025_v12  ;;  %v2475_v17 = vadd.f32 %v2316_v21, %v2117_v14  ;;  %v5436_v22 = vpop.f32.mrb[54].mxu1 }
 0x18e   : > { %2508 = vst.msk [vmem:[%s6379_s4 + $0x8] sm:$0xff] %vm230_vm2, %v2476_v53  ;;  %v2028_v61 = vadd.f32 %v5436_v22, %v1670_v19  ;;  %v1892_v55 = vpop.f32.mrb[55].mxu1  ;;  %v1680_v53 = vld [vmem:[%s6379_s4 + $0x88] sm:$0xff]  ;;  %v1679_v19 = vld [vmem:[%s6379_s4 + $0x80] sm:$0xff] }
 0x18f   : > { %2507 = vst.msk [vmem:[%s6379_s4] sm:$0xff] %vm230_vm2, %v2475_v17  ;;  %v2027_v62 = vadd.f32 %v1892_v55, %v1669_v26  ;;  %v2120_v63 = vld [vmem:[%s6379_s4 + $0x18] sm:$0xff]  ;;  %v5486_v54 = vpop.f32.mrb[54].mxu0 }
 0x190   : > { %2060 = vst.msk [vmem:[%s6379_s4 + $0x38] sm:$0xff] %vm230_vm2, %v2028_v61  ;;  %v2478_v52 = vadd.f32 %v5480_v44, %v2120_v63  ;;  %v2119_v59 = vld [vmem:[%s6379_s4 + $0x10] sm:$0xff]  ;;  %v2346_v30 = vpop.f32.mrb[55].mxu0 }
 0x191   : > { %2059 = vst.msk [vmem:[%s6379_s4 + $0x30] sm:$0xff] %vm230_vm2, %v2027_v62  ;;  %v2477_v28 = vadd.f32 %v2326_v2, %v2119_v59  ;;  %v5439_v5 = vpop.f32.mrb[56].mxu1 }
 0x192   : > { %2510 = vst.msk [vmem:[%s6379_s4 + $0x18] sm:$0xff] %vm230_vm2, %v2478_v52  ;;  %v2030_v7 = vadd.f32 %v5439_v5, %v1672_v0  ;;  %v1902_v16 = vpop.f32.mrb[57].mxu1  ;;  %v1682_v52 = vld [vmem:[%s6379_s4 + $0x98] sm:$0xff]  ;;  %v1681_v0 = vld [vmem:[%s6379_s4 + $0x90] sm:$0xff] }
 0x193   : > { %2509 = vst.msk [vmem:[%s6379_s4 + $0x10] sm:$0xff] %vm230_vm2, %v2477_v28  ;;  %v2029_v6 = vadd.f32 %v1902_v16, %v1671_v49  ;;  %v2122_v20 = vld [vmem:[%s6379_s4 + $0x28] sm:$0xff]  ;;  %v5489_v56 = vpop.f32.mrb[56].mxu0 }
 0x194   : > { %2062 = vst.msk [vmem:[%s6379_s4 + $0x48] sm:$0xff] %vm230_vm2, %v2030_v7  ;;  %v2480_v13 = vadd.f32 %v5483_v50, %v2122_v20  ;;  %v2121_v32 = vld [vmem:[%s6379_s4 + $0x20] sm:$0xff]  ;;  %v2356_v58 = vpop.f32.mrb[57].mxu0 }
 0x195   : > { %2061 = vst.msk [vmem:[%s6379_s4 + $0x40] sm:$0xff] %vm230_vm2, %v2029_v6  ;;  %v2479_v36 = vadd.f32 %v2336_v24, %v2121_v32  ;;  %v5442_v39 = vpop.f32.mrb[58].mxu1 }
 0x196   : > { %2512 = vst.msk [vmem:[%s6379_s4 + $0x28] sm:$0xff] %vm230_vm2, %v2480_v13  ;;  %v2032_v42 = vadd.f32 %v5442_v39, %v1674_v38  ;;  %v1912_v57 = vpop.f32.mrb[59].mxu1  ;;  %v1684_v13 = vld [vmem:[%s6379_s4 + $0xa8] sm:$0xff]  ;;  %v1683_v38 = vld [vmem:[%s6379_s4 + $0xa0] sm:$0xff] }
 0x197   : > { %2511 = vst.msk [vmem:[%s6379_s4 + $0x20] sm:$0xff] %vm230_vm2, %v2479_v36  ;;  %v2031_v11 = vadd.f32 %v1912_v57, %v1673_v10  ;;  %v2124_v41 = vld [vmem:[%s6379_s4 + $0x38] sm:$0xff]  ;;  %v5492_v40 = vpop.f32.mrb[58].mxu0 }
 0x198   : > { %2064 = vst.msk [vmem:[%s6379_s4 + $0x58] sm:$0xff] %vm230_vm2, %v2032_v42  ;;  %v2482_v3 = vadd.f32 %v5486_v54, %v2124_v41  ;;  %v2123_v46 = vld [vmem:[%s6379_s4 + $0x30] sm:$0xff]  ;;  %v2366_v15 = vpop.f32.mrb[59].mxu0 }
 0x199   : > { %2063 = vst.msk [vmem:[%s6379_s4 + $0x50] sm:$0xff] %vm230_vm2, %v2031_v11  ;;  %v2481_v47 = vadd.f32 %v2346_v30, %v2123_v46  ;;  %v5445_v34 = vpop.f32.mrb[60].mxu1 }
 0x19a   : > { %2514 = vst.msk [vmem:[%s6379_s4 + $0x38] sm:$0xff] %vm230_vm2, %v2482_v3  ;;  %v2034_v60 = vadd.f32 %v5445_v34, %v1676_v51  ;;  %v1922_v18 = vpop.f32.mrb[61].mxu1  ;;  %v1686_v3 = vld [vmem:[%s6379_s4 + $0xb8] sm:$0xff]  ;;  %v1685_v51 = vld [vmem:[%s6379_s4 + $0xb0] sm:$0xff] }
 0x19b   : > { %2513 = vst.msk [vmem:[%s6379_s4 + $0x30] sm:$0xff] %vm230_vm2, %v2481_v47  ;;  %v2033_v21 = vadd.f32 %v1922_v18, %v1675_v45  ;;  %v2126_v23 = vld [vmem:[%s6379_s4 + $0x48] sm:$0xff]  ;;  %v5495_v27 = vpop.f32.mrb[60].mxu0 }
 0x19c   : > { %2066 = vst.msk [vmem:[%s6379_s4 + $0x68] sm:$0xff] %vm230_vm2, %v2034_v60  ;;  %v2484_v25 = vadd.f32 %v5489_v56, %v2126_v23  ;;  %v2125_v43 = vld [vmem:[%s6379_s4 + $0x40] sm:$0xff]  ;;  %v2376_v44 = vpop.f32.mrb[61].mxu0 }
 0x19d   : > { %2065 = vst.msk [vmem:[%s6379_s4 + $0x60] sm:$0xff] %vm230_vm2, %v2033_v21  ;;  %v2483_v29 = vadd.f32 %v2356_v58, %v2125_v43  ;;  %v5448_v33 = vpop.f32.mrb[62].mxu1 }
 0x19e   : > { %2516 = vst.msk [vmem:[%s6379_s4 + $0x48] sm:$0xff] %vm230_vm2, %v2484_v25  ;;  %v2036_v35 = vadd.f32 %v5448_v33, %v1678_v31  ;;  %v1932_v1 = vpop.f32.mrb[63].mxu1  ;;  %v1688_v25 = vld [vmem:[%s6379_s4 + $0xc8] sm:$0xff]  ;;  %v1687_v31 = vld [vmem:[%s6379_s4 + $0xc0] sm:$0xff] }
 0x19f   : > { %2515 = vst.msk [vmem:[%s6379_s4 + $0x40] sm:$0xff] %vm230_vm2, %v2483_v29  ;;  %v2035_v2 = vadd.f32 %v1932_v1, %v1677_v37  ;;  %v2128_v4 = vld [vmem:[%s6379_s4 + $0x58] sm:$0xff]  ;;  %v5498_v12 = vpop.f32.mrb[62].mxu0 }
 0x1a0   : > { %2068 = vst.msk [vmem:[%s6379_s4 + $0x78] sm:$0xff] %vm230_vm2, %v2036_v35  ;;  %v2486_v8 = vadd.f32 %v5492_v40, %v2128_v4  ;;  %v2127_v9 = vld [vmem:[%s6379_s4 + $0x50] sm:$0xff]  ;;  %v2386_v50 = vpop.f32.mrb[63].mxu0 }
 0x1a1   : > { %2067 = vst.msk [vmem:[%s6379_s4 + $0x70] sm:$0xff] %vm230_vm2, %v2035_v2  ;;  %v2485_v48 = vadd.f32 %v2366_v15, %v2127_v9  ;;  %v5451_v14 = vpop.f32.mrb[64].mxu1 }
 0x1a2   : > { %2518 = vst.msk [vmem:[%s6379_s4 + $0x58] sm:$0xff] %vm230_vm2, %v2486_v8  ;;  %v2038_v17 = vadd.f32 %v5451_v14, %v1680_v53  ;;  %v1942_v22 = vpop.f32.mrb[65].mxu1  ;;  %v1690_v8 = vld [vmem:[%s6379_s4 + $0xd8] sm:$0xff]  ;;  %v1689_v53 = vld [vmem:[%s6379_s4 + $0xd0] sm:$0xff] }
 0x1a3   : > { %2517 = vst.msk [vmem:[%s6379_s4 + $0x50] sm:$0xff] %vm230_vm2, %v2485_v48  ;;  %v2037_v24 = vadd.f32 %v1942_v22, %v1679_v19  ;;  %v2130_v61 = vld [vmem:[%s6379_s4 + $0x68] sm:$0xff]  ;;  %v5501_v62 = vpop.f32.mrb[64].mxu0 }
 0x1a4   : > { %2070 = vst.msk [vmem:[%s6379_s4 + $0x88] sm:$0xff] %vm230_vm2, %v2038_v17  ;;  %v2488_v26 = vadd.f32 %v5495_v27, %v2130_v61  ;;  %v2129_v55 = vld [vmem:[%s6379_s4 + $0x60] sm:$0xff]  ;;  %v2396_v54 = vpop.f32.mrb[65].mxu0 }
 0x1a5   : > { %2069 = vst.msk [vmem:[%s6379_s4 + $0x80] sm:$0xff] %vm230_vm2, %v2037_v24  ;;  %v2487_v63 = vadd.f32 %v2376_v44, %v2129_v55  ;;  %v5454_v59 = vpop.f32.mrb[66].mxu1 }
 0x1a6   : > { %2520 = vst.msk [vmem:[%s6379_s4 + $0x68] sm:$0xff] %vm230_vm2, %v2488_v26  ;;  %v2040_v28 = vadd.f32 %v5454_v59, %v1682_v52  ;;  %v1952_v5 = vpop.f32.mrb[67].mxu1  ;;  %v1692_v26 = vld [vmem:[%s6379_s4 + $0xe8] sm:$0xff]  ;;  %v1691_v52 = vld [vmem:[%s6379_s4 + $0xe0] sm:$0xff] }
 0x1a7   : > { %2519 = vst.msk [vmem:[%s6379_s4 + $0x60] sm:$0xff] %vm230_vm2, %v2487_v63  ;;  %v2039_v30 = vadd.f32 %v1952_v5, %v1681_v0  ;;  %v2132_v7 = vld [vmem:[%s6379_s4 + $0x78] sm:$0xff]  ;;  %v5504_v6 = vpop.f32.mrb[66].mxu0 }
 0x1a8   : > { %2072 = vst.msk [vmem:[%s6379_s4 + $0x98] sm:$0xff] %vm230_vm2, %v2040_v28  ;;  %v2490_v49 = vadd.f32 %v5498_v12, %v2132_v7  ;;  %v2131_v16 = vld [vmem:[%s6379_s4 + $0x70] sm:$0xff]  ;;  %v2406_v56 = vpop.f32.mrb[67].mxu0 }
 0x1a9   : > { %2071 = vst.msk [vmem:[%s6379_s4 + $0x90] sm:$0xff] %vm230_vm2, %v2039_v30  ;;  %v2489_v20 = vadd.f32 %v2386_v50, %v2131_v16  ;;  %v5457_v32 = vpop.f32.mrb[68].mxu1 }
 0x1aa   : > { %2522 = vst.msk [vmem:[%s6379_s4 + $0x78] sm:$0xff] %vm230_vm2, %v2490_v49  ;;  %v2042_v36 = vadd.f32 %v5457_v32, %v1684_v13  ;;  %v1962_v39 = vpop.f32.mrb[69].mxu1  ;;  %v1694_v49 = vld [vmem:[%s6379_s4 + $0xf8] sm:$0xff]  ;;  %v1693_v13 = vld [vmem:[%s6379_s4 + $0xf0] sm:$0xff] }
 0x1ab   : > { %2521 = vst.msk [vmem:[%s6379_s4 + $0x70] sm:$0xff] %vm230_vm2, %v2489_v20  ;;  %v2041_v58 = vadd.f32 %v1962_v39, %v1683_v38  ;;  %v2134_v42 = vld [vmem:[%s6379_s4 + $0x88] sm:$0xff]  ;;  %v5507_v11 = vpop.f32.mrb[68].mxu0 }
 0x1ac   : > { %2074 = vst.msk [vmem:[%s6379_s4 + $0xa8] sm:$0xff] %vm230_vm2, %v2042_v36  ;;  %v2492_v10 = vadd.f32 %v5501_v62, %v2134_v42  ;;  %v2133_v57 = vld [vmem:[%s6379_s4 + $0x80] sm:$0xff]  ;;  %v2416_v40 = vpop.f32.mrb[69].mxu0 }
 0x1ad   : > { %2073 = vst.msk [vmem:[%s6379_s4 + $0xa0] sm:$0xff] %vm230_vm2, %v2041_v58  ;;  %v2491_v41 = vadd.f32 %v2396_v54, %v2133_v57  ;;  %v5460_v46 = vpop.f32.mrb[70].mxu1 }
 0x1ae   : > { %2524 = vst.msk [vmem:[%s6379_s4 + $0x88] sm:$0xff] %vm230_vm2, %v2492_v10  ;;  %v2044_v47 = vadd.f32 %v5460_v46, %v1686_v3  ;;  %v1972_v34 = vpop.f32.mrb[71].mxu1  ;;  %v2572_v10 = vld [vmem:[%s6379_s4 + $0x8] sm:$0xff]  ;;  %v2571_v3 = vld [vmem:[%s6379_s4] sm:$0xff] }
 0x1af   : > { %2523 = vst.msk [vmem:[%s6379_s4 + $0x80] sm:$0xff] %vm230_vm2, %v2491_v41  ;;  %v2043_v15 = vadd.f32 %v1972_v34, %v1685_v51  ;;  %v2136_v60 = vld [vmem:[%s6379_s4 + $0x98] sm:$0xff]  ;;  %v5510_v21 = vpop.f32.mrb[70].mxu0 }
 0x1b0   : > { %2076 = vst.msk [vmem:[%s6379_s4 + $0xb8] sm:$0xff] %vm230_vm2, %v2044_v47  ;;  %v2494_v45 = vadd.f32 %v5504_v6, %v2136_v60  ;;  %v2135_v18 = vld [vmem:[%s6379_s4 + $0x90] sm:$0xff]  ;;  %v2426_v27 = vpop.f32.mrb[71].mxu0 }
 0x1b1   : > { %2075 = vst.msk [vmem:[%s6379_s4 + $0xb0] sm:$0xff] %vm230_vm2, %v2043_v15  ;;  %v2493_v23 = vadd.f32 %v2406_v56, %v2135_v18  ;;  %v5463_v43 = vpop.f32.mrb[72].mxu1 }
 0x1b2   : > { %2526 = vst.msk [vmem:[%s6379_s4 + $0x98] sm:$0xff] %vm230_vm2, %v2494_v45  ;;  %v2046_v29 = vadd.f32 %v5463_v43, %v1688_v25  ;;  %v1982_v33 = vpop.f32.mrb[73].mxu1  ;;  %v2574_v45 = vld [vmem:[%s6379_s4 + $0x18] sm:$0xff]  ;;  %v2573_v25 = vld [vmem:[%s6379_s4 + $0x10] sm:$0xff] }
 0x1b3   : > { %2525 = vst.msk [vmem:[%s6379_s4 + $0x90] sm:$0xff] %vm230_vm2, %v2493_v23  ;;  %v2045_v44 = vadd.f32 %v1982_v33, %v1687_v31  ;;  %v2138_v35 = vld [vmem:[%s6379_s4 + $0xa8] sm:$0xff]  ;;  %v5513_v2 = vpop.f32.mrb[72].mxu0 }
 0x1b4   : > { %2078 = vst.msk [vmem:[%s6379_s4 + $0xc8] sm:$0xff] %vm230_vm2, %v2046_v29  ;;  %v2496_v37 = vadd.f32 %v5507_v11, %v2138_v35  ;;  %v2137_v1 = vld [vmem:[%s6379_s4 + $0xa0] sm:$0xff]  ;;  %v2436_v12 = vpop.f32.mrb[73].mxu0 }
 0x1b5   : > { %2077 = vst.msk [vmem:[%s6379_s4 + $0xc0] sm:$0xff] %vm230_vm2, %v2045_v44  ;;  %v2495_v4 = vadd.f32 %v2416_v40, %v2137_v1  ;;  %v5466_v9 = vpop.f32.mrb[74].mxu1 }
 0x1b6   : > { %2528 = vst.msk [vmem:[%s6379_s4 + $0xa8] sm:$0xff] %vm230_vm2, %v2496_v37  ;;  %v2048_v48 = vadd.f32 %v5466_v9, %v1690_v8  ;;  %v1992_v14 = vpop.f32.mrb[75].mxu1  ;;  %v2576_v37 = vld [vmem:[%s6379_s4 + $0x28] sm:$0xff]  ;;  %v2575_v8 = vld [vmem:[%s6379_s4 + $0x20] sm:$0xff] }
 0x1b7   : > { %2527 = vst.msk [vmem:[%s6379_s4 + $0xa0] sm:$0xff] %vm230_vm2, %v2495_v4  ;;  %v2047_v50 = vadd.f32 %v1992_v14, %v1689_v53  ;;  %v2140_v17 = vld [vmem:[%s6379_s4 + $0xb8] sm:$0xff]  ;;  %v5516_v24 = vpop.f32.mrb[74].mxu0 }
 0x1b8   : > { %2080 = vst.msk [vmem:[%s6379_s4 + $0xd8] sm:$0xff] %vm230_vm2, %v2048_v48  ;;  %v2498_v19 = vadd.f32 %v5510_v21, %v2140_v17  ;;  %v2139_v22 = vld [vmem:[%s6379_s4 + $0xb0] sm:$0xff]  ;;  %v2446_v62 = vpop.f32.mrb[75].mxu0 }
 0x1b9   : > { %2079 = vst.msk [vmem:[%s6379_s4 + $0xd0] sm:$0xff] %vm230_vm2, %v2047_v50  ;;  %v2497_v61 = vadd.f32 %v2426_v27, %v2139_v22  ;;  %v5469_v55 = vpop.f32.mrb[76].mxu1 }
 0x1ba   : > { %2530 = vst.msk [vmem:[%s6379_s4 + $0xb8] sm:$0xff] %vm230_vm2, %v2498_v19  ;;  %v2050_v63 = vadd.f32 %v5469_v55, %v1692_v26  ;;  %v2002_v59 = vpop.f32.mrb[77].mxu1  ;;  %v2578_v19 = vld [vmem:[%s6379_s4 + $0x38] sm:$0xff]  ;;  %v2577_v26 = vld [vmem:[%s6379_s4 + $0x30] sm:$0xff] }
 0x1bb   : > { %2529 = vst.msk [vmem:[%s6379_s4 + $0xb0] sm:$0xff] %vm230_vm2, %v2497_v61  ;;  %v2049_v54 = vadd.f32 %v2002_v59, %v1691_v52  ;;  %v2142_v28 = vld [vmem:[%s6379_s4 + $0xc8] sm:$0xff]  ;;  %v5519_v30 = vpop.f32.mrb[76].mxu0 }
 0x1bc   : > { %2082 = vst.msk [vmem:[%s6379_s4 + $0xe8] sm:$0xff] %vm230_vm2, %v2050_v63  ;;  %v2500_v0 = vadd.f32 %v5513_v2, %v2142_v28  ;;  %v2141_v5 = vld [vmem:[%s6379_s4 + $0xc0] sm:$0xff]  ;;  %v2456_v6 = vpop.f32.mrb[77].mxu0 }
 0x1bd   : > { %2081 = vst.msk [vmem:[%s6379_s4 + $0xe0] sm:$0xff] %vm230_vm2, %v2049_v54  ;;  %v2499_v7 = vadd.f32 %v2436_v12, %v2141_v5  ;;  %v5472_v16 = vpop.f32.mrb[78].mxu1 }
 0x1be   : > { %2532 = vst.msk [vmem:[%s6379_s4 + $0xc8] sm:$0xff] %vm230_vm2, %v2500_v0  ;;  %v2052_v20 = vadd.f32 %v5472_v16, %v1694_v49  ;;  %v2012_v32 = vpop.f32.mrb[79].mxu1  ;;  %v2580_v0 = vld [vmem:[%s6379_s4 + $0x48] sm:$0xff]  ;;  %v2579_v49 = vld [vmem:[%s6379_s4 + $0x40] sm:$0xff] }
 0x1bf   : > { %2531 = vst.msk [vmem:[%s6379_s4 + $0xc0] sm:$0xff] %vm230_vm2, %v2499_v7  ;;  %v2051_v56 = vadd.f32 %v2012_v32, %v1693_v13  ;;  %v2144_v36 = vld [vmem:[%s6379_s4 + $0xd8] sm:$0xff]  ;;  %v5522_v58 = vpop.f32.mrb[78].mxu0 }
 0x1c0   : > { %2084 = vst.msk [vmem:[%s6379_s4 + $0xf8] sm:$0xff] %vm230_vm2, %v2052_v20  ;;  %v2502_v38 = vadd.f32 %v5516_v24, %v2144_v36  ;;  %v2143_v39 = vld [vmem:[%s6379_s4 + $0xd0] sm:$0xff]  ;;  %v2466_v11 = vpop.f32.mrb[79].mxu0 }
 0x1c1   : > { %2083 = vst.msk [vmem:[%s6379_s4 + $0xf0] sm:$0xff] %vm230_vm2, %v2051_v56  ;;  %v2501_v42 = vadd.f32 %v2446_v62, %v2143_v39  ;;  %v5527_v57 = vpop.f32.mrb[80].mxu1 }
 0x1c2   : > { %2534 = vst.msk [vmem:[%s6379_s4 + $0xd8] sm:$0xff] %vm230_vm2, %v2502_v38  ;;  %v2930_v41 = vadd.f32 %v5527_v57, %v2572_v10  ;;  %v2770_v46 = vpop.f32.mrb[81].mxu1  ;;  %v2582_v38 = vld [vmem:[%s6379_s4 + $0x58] sm:$0xff]  ;;  %v2581_v10 = vld [vmem:[%s6379_s4 + $0x50] sm:$0xff] }
 0x1c3   : > { %2533 = vst.msk [vmem:[%s6379_s4 + $0xd0] sm:$0xff] %vm230_vm2, %v2501_v42  ;;  %v2929_v40 = vadd.f32 %v2770_v46, %v2571_v3  ;;  %v2146_v47 = vld [vmem:[%s6379_s4 + $0xe8] sm:$0xff]  ;;  %v5577_v15 = vpop.f32.mrb[80].mxu0 }
 0x1c4   : > { %2962 = vst.msk [vmem:[%s6379_s4 + $0x8] sm:$0xff] %vm230_vm2, %v2930_v41  ;;  %v2504_v51 = vadd.f32 %v5519_v30, %v2146_v47  ;;  %v2145_v34 = vld [vmem:[%s6379_s4 + $0xe0] sm:$0xff]  ;;  %v3227_v21 = vpop.f32.mrb[81].mxu0 }
 0x1c5   : > { %2961 = vst.msk [vmem:[%s6379_s4] sm:$0xff] %vm230_vm2, %v2929_v40  ;;  %v2503_v60 = vadd.f32 %v2456_v6, %v2145_v34  ;;  %v5530_v18 = vpop.f32.mrb[82].mxu1 }
 0x1c6   : > { %2536 = vst.msk [vmem:[%s6379_s4 + $0xe8] sm:$0xff] %vm230_vm2, %v2504_v51  ;;  %v2932_v23 = vadd.f32 %v5530_v18, %v2574_v45  ;;  %v2780_v43 = vpop.f32.mrb[83].mxu1  ;;  %v2584_v51 = vld [vmem:[%s6379_s4 + $0x68] sm:$0xff]  ;;  %v2583_v45 = vld [vmem:[%s6379_s4 + $0x60] sm:$0xff] }
 0x1c7   : > { %2535 = vst.msk [vmem:[%s6379_s4 + $0xe0] sm:$0xff] %vm230_vm2, %v2503_v60  ;;  %v2931_v27 = vadd.f32 %v2780_v43, %v2573_v25  ;;  %v2148_v29 = vld [vmem:[%s6379_s4 + $0xf8] sm:$0xff]  ;;  %v5580_v44 = vpop.f32.mrb[82].mxu0 }
 0x1c8   : > { %2964 = vst.msk [vmem:[%s6379_s4 + $0x18] sm:$0xff] %vm230_vm2, %v2932_v23  ;;  %v2506_v31 = vadd.f32 %v5522_v58, %v2148_v29  ;;  %v2147_v33 = vld [vmem:[%s6379_s4 + $0xf0] sm:$0xff]  ;;  %v3237_v2 = vpop.f32.mrb[83].mxu0 }
 0x1c9   : > { %2963 = vst.msk [vmem:[%s6379_s4 + $0x10] sm:$0xff] %vm230_vm2, %v2931_v27  ;;  %v2505_v35 = vadd.f32 %v2466_v11, %v2147_v33  ;;  %v5533_v1 = vpop.f32.mrb[84].mxu1 }
 0x1ca   : > { %2538 = vst.msk [vmem:[%s6379_s4 + $0xf8] sm:$0xff] %vm230_vm2, %v2506_v31  ;;  %v2934_v4 = vadd.f32 %v5533_v1, %v2576_v37  ;;  %v2790_v9 = vpop.f32.mrb[85].mxu1  ;;  %v2586_v31 = vld [vmem:[%s6379_s4 + $0x78] sm:$0xff]  ;;  %v2585_v37 = vld [vmem:[%s6379_s4 + $0x70] sm:$0xff] }
 0x1cb   : > { %2537 = vst.msk [vmem:[%s6379_s4 + $0xf0] sm:$0xff] %vm230_vm2, %v2505_v35  ;;  %v2933_v12 = vadd.f32 %v2790_v9, %v2575_v8  ;;  %v3029_v48 = vld [vmem:[%s6379_s4 + $0x8] sm:$0xff]  ;;  %v5583_v50 = vpop.f32.mrb[84].mxu0 }
 0x1cc   : > { %2966 = vst.msk [vmem:[%s6379_s4 + $0x28] sm:$0xff] %vm230_vm2, %v2934_v4  ;;  %v3387_v53 = vadd.f32 %v5577_v15, %v3029_v48  ;;  %v3028_v14 = vld [vmem:[%s6379_s4] sm:$0xff]  ;;  %v3247_v24 = vpop.f32.mrb[85].mxu0 }
 0x1cd   : > { %2965 = vst.msk [vmem:[%s6379_s4 + $0x20] sm:$0xff] %vm230_vm2, %v2933_v12  ;;  %v3386_v17 = vadd.f32 %v3227_v21, %v3028_v14  ;;  %v5536_v22 = vpop.f32.mrb[86].mxu1 }
 0x1ce   : > { %3419 = vst.msk [vmem:[%s6379_s4 + $0x8] sm:$0xff] %vm230_vm2, %v3387_v53  ;;  %v2936_v61 = vadd.f32 %v5536_v22, %v2578_v19  ;;  %v2800_v55 = vpop.f32.mrb[87].mxu1  ;;  %v2588_v53 = vld [vmem:[%s6379_s4 + $0x88] sm:$0xff]  ;;  %v2587_v19 = vld [vmem:[%s6379_s4 + $0x80] sm:$0xff] }
 0x1cf   : > { %3418 = vst.msk [vmem:[%s6379_s4] sm:$0xff] %vm230_vm2, %v3386_v17  ;;  %v2935_v62 = vadd.f32 %v2800_v55, %v2577_v26  ;;  %v3031_v63 = vld [vmem:[%s6379_s4 + $0x18] sm:$0xff]  ;;  %v5586_v54 = vpop.f32.mrb[86].mxu0 }
 0x1d0   : > { %2968 = vst.msk [vmem:[%s6379_s4 + $0x38] sm:$0xff] %vm230_vm2, %v2936_v61  ;;  %v3389_v52 = vadd.f32 %v5580_v44, %v3031_v63  ;;  %v3030_v59 = vld [vmem:[%s6379_s4 + $0x10] sm:$0xff]  ;;  %v3257_v30 = vpop.f32.mrb[87].mxu0 }
 0x1d1   : > { %2967 = vst.msk [vmem:[%s6379_s4 + $0x30] sm:$0xff] %vm230_vm2, %v2935_v62  ;;  %v3388_v28 = vadd.f32 %v3237_v2, %v3030_v59  ;;  %v5539_v5 = vpop.f32.mrb[88].mxu1 }
 0x1d2   : > { %3421 = vst.msk [vmem:[%s6379_s4 + $0x18] sm:$0xff] %vm230_vm2, %v3389_v52  ;;  %v2938_v7 = vadd.f32 %v5539_v5, %v2580_v0  ;;  %v2810_v16 = vpop.f32.mrb[89].mxu1  ;;  %v2590_v52 = vld [vmem:[%s6379_s4 + $0x98] sm:$0xff]  ;;  %v2589_v0 = vld [vmem:[%s6379_s4 + $0x90] sm:$0xff] }
 0x1d3   : > { %3420 = vst.msk [vmem:[%s6379_s4 + $0x10] sm:$0xff] %vm230_vm2, %v3388_v28  ;;  %v2937_v6 = vadd.f32 %v2810_v16, %v2579_v49  ;;  %v3033_v20 = vld [vmem:[%s6379_s4 + $0x28] sm:$0xff]  ;;  %v5589_v56 = vpop.f32.mrb[88].mxu0 }
 0x1d4   : > { %2970 = vst.msk [vmem:[%s6379_s4 + $0x48] sm:$0xff] %vm230_vm2, %v2938_v7  ;;  %v3391_v13 = vadd.f32 %v5583_v50, %v3033_v20  ;;  %v3032_v32 = vld [vmem:[%s6379_s4 + $0x20] sm:$0xff]  ;;  %v3267_v58 = vpop.f32.mrb[89].mxu0 }
 0x1d5   : > { %2969 = vst.msk [vmem:[%s6379_s4 + $0x40] sm:$0xff] %vm230_vm2, %v2937_v6  ;;  %v3390_v36 = vadd.f32 %v3247_v24, %v3032_v32  ;;  %v5542_v39 = vpop.f32.mrb[90].mxu1 }
 0x1d6   : > { %3423 = vst.msk [vmem:[%s6379_s4 + $0x28] sm:$0xff] %vm230_vm2, %v3391_v13  ;;  %v2940_v42 = vadd.f32 %v5542_v39, %v2582_v38  ;;  %v2820_v57 = vpop.f32.mrb[91].mxu1  ;;  %v2592_v13 = vld [vmem:[%s6379_s4 + $0xa8] sm:$0xff]  ;;  %v2591_v38 = vld [vmem:[%s6379_s4 + $0xa0] sm:$0xff] }
 0x1d7   : > { %3422 = vst.msk [vmem:[%s6379_s4 + $0x20] sm:$0xff] %vm230_vm2, %v3390_v36  ;;  %v2939_v11 = vadd.f32 %v2820_v57, %v2581_v10  ;;  %v3035_v41 = vld [vmem:[%s6379_s4 + $0x38] sm:$0xff]  ;;  %v5592_v40 = vpop.f32.mrb[90].mxu0 }
 0x1d8   : > { %2972 = vst.msk [vmem:[%s6379_s4 + $0x58] sm:$0xff] %vm230_vm2, %v2940_v42  ;;  %v3393_v3 = vadd.f32 %v5586_v54, %v3035_v41  ;;  %v3034_v46 = vld [vmem:[%s6379_s4 + $0x30] sm:$0xff]  ;;  %v3277_v15 = vpop.f32.mrb[91].mxu0 }
 0x1d9   : > { %2971 = vst.msk [vmem:[%s6379_s4 + $0x50] sm:$0xff] %vm230_vm2, %v2939_v11  ;;  %v3392_v47 = vadd.f32 %v3257_v30, %v3034_v46  ;;  %v5545_v34 = vpop.f32.mrb[92].mxu1 }
 0x1da   : > { %3425 = vst.msk [vmem:[%s6379_s4 + $0x38] sm:$0xff] %vm230_vm2, %v3393_v3  ;;  %v2942_v60 = vadd.f32 %v5545_v34, %v2584_v51  ;;  %v2830_v18 = vpop.f32.mrb[93].mxu1  ;;  %v2594_v3 = vld [vmem:[%s6379_s4 + $0xb8] sm:$0xff]  ;;  %v2593_v51 = vld [vmem:[%s6379_s4 + $0xb0] sm:$0xff] }
 0x1db   : > { %3424 = vst.msk [vmem:[%s6379_s4 + $0x30] sm:$0xff] %vm230_vm2, %v3392_v47  ;;  %v2941_v21 = vadd.f32 %v2830_v18, %v2583_v45  ;;  %v3037_v23 = vld [vmem:[%s6379_s4 + $0x48] sm:$0xff]  ;;  %v5595_v27 = vpop.f32.mrb[92].mxu0 }
 0x1dc   : > { %2974 = vst.msk [vmem:[%s6379_s4 + $0x68] sm:$0xff] %vm230_vm2, %v2942_v60  ;;  %v3395_v25 = vadd.f32 %v5589_v56, %v3037_v23  ;;  %v3036_v43 = vld [vmem:[%s6379_s4 + $0x40] sm:$0xff]  ;;  %v3287_v44 = vpop.f32.mrb[93].mxu0 }
 0x1dd   : > { %2973 = vst.msk [vmem:[%s6379_s4 + $0x60] sm:$0xff] %vm230_vm2, %v2941_v21  ;;  %v3394_v29 = vadd.f32 %v3267_v58, %v3036_v43  ;;  %v5548_v33 = vpop.f32.mrb[94].mxu1 }
 0x1de   : > { %3427 = vst.msk [vmem:[%s6379_s4 + $0x48] sm:$0xff] %vm230_vm2, %v3395_v25  ;;  %v2944_v35 = vadd.f32 %v5548_v33, %v2586_v31  ;;  %v2840_v1 = vpop.f32.mrb[95].mxu1  ;;  %v2596_v25 = vld [vmem:[%s6379_s4 + $0xc8] sm:$0xff]  ;;  %v2595_v31 = vld [vmem:[%s6379_s4 + $0xc0] sm:$0xff] }
 0x1df   : > { %3426 = vst.msk [vmem:[%s6379_s4 + $0x40] sm:$0xff] %vm230_vm2, %v3394_v29  ;;  %v2943_v2 = vadd.f32 %v2840_v1, %v2585_v37  ;;  %v3039_v4 = vld [vmem:[%s6379_s4 + $0x58] sm:$0xff]  ;;  %v5598_v12 = vpop.f32.mrb[94].mxu0 }
 0x1e0   : > { %2976 = vst.msk [vmem:[%s6379_s4 + $0x78] sm:$0xff] %vm230_vm2, %v2944_v35  ;;  %v3397_v8 = vadd.f32 %v5592_v40, %v3039_v4  ;;  %v3038_v9 = vld [vmem:[%s6379_s4 + $0x50] sm:$0xff]  ;;  %v3297_v50 = vpop.f32.mrb[95].mxu0 }
 0x1e1   : > { %2975 = vst.msk [vmem:[%s6379_s4 + $0x70] sm:$0xff] %vm230_vm2, %v2943_v2  ;;  %v3396_v48 = vadd.f32 %v3277_v15, %v3038_v9  ;;  %v5551_v14 = vpop.f32.mrb[96].mxu1 }
 0x1e2   : > { %3429 = vst.msk [vmem:[%s6379_s4 + $0x58] sm:$0xff] %vm230_vm2, %v3397_v8  ;;  %v2946_v17 = vadd.f32 %v5551_v14, %v2588_v53  ;;  %v2850_v22 = vpop.f32.mrb[97].mxu1  ;;  %v2598_v8 = vld [vmem:[%s6379_s4 + $0xd8] sm:$0xff]  ;;  %v2597_v53 = vld [vmem:[%s6379_s4 + $0xd0] sm:$0xff] }
 0x1e3   : > { %3428 = vst.msk [vmem:[%s6379_s4 + $0x50] sm:$0xff] %vm230_vm2, %v3396_v48  ;;  %v2945_v24 = vadd.f32 %v2850_v22, %v2587_v19  ;;  %v3041_v61 = vld [vmem:[%s6379_s4 + $0x68] sm:$0xff]  ;;  %v5601_v62 = vpop.f32.mrb[96].mxu0 }
 0x1e4   : > { %2978 = vst.msk [vmem:[%s6379_s4 + $0x88] sm:$0xff] %vm230_vm2, %v2946_v17  ;;  %v3399_v26 = vadd.f32 %v5595_v27, %v3041_v61  ;;  %v3040_v55 = vld [vmem:[%s6379_s4 + $0x60] sm:$0xff]  ;;  %v3307_v54 = vpop.f32.mrb[97].mxu0 }
 0x1e5   : > { %2977 = vst.msk [vmem:[%s6379_s4 + $0x80] sm:$0xff] %vm230_vm2, %v2945_v24  ;;  %v3398_v63 = vadd.f32 %v3287_v44, %v3040_v55  ;;  %v5554_v59 = vpop.f32.mrb[98].mxu1 }
 0x1e6   : > { %3431 = vst.msk [vmem:[%s6379_s4 + $0x68] sm:$0xff] %vm230_vm2, %v3399_v26  ;;  %v2948_v28 = vadd.f32 %v5554_v59, %v2590_v52  ;;  %v2860_v5 = vpop.f32.mrb[99].mxu1  ;;  %v2600_v26 = vld [vmem:[%s6379_s4 + $0xe8] sm:$0xff]  ;;  %v2599_v52 = vld [vmem:[%s6379_s4 + $0xe0] sm:$0xff] }
 0x1e7   : > { %3430 = vst.msk [vmem:[%s6379_s4 + $0x60] sm:$0xff] %vm230_vm2, %v3398_v63  ;;  %v2947_v30 = vadd.f32 %v2860_v5, %v2589_v0  ;;  %v3043_v7 = vld [vmem:[%s6379_s4 + $0x78] sm:$0xff]  ;;  %v5604_v6 = vpop.f32.mrb[98].mxu0 }
 0x1e8   : > { %2980 = vst.msk [vmem:[%s6379_s4 + $0x98] sm:$0xff] %vm230_vm2, %v2948_v28  ;;  %v3401_v49 = vadd.f32 %v5598_v12, %v3043_v7  ;;  %v3042_v16 = vld [vmem:[%s6379_s4 + $0x70] sm:$0xff]  ;;  %v3317_v56 = vpop.f32.mrb[99].mxu0 }
 0x1e9   : > { %2979 = vst.msk [vmem:[%s6379_s4 + $0x90] sm:$0xff] %vm230_vm2, %v2947_v30  ;;  %v3400_v20 = vadd.f32 %v3297_v50, %v3042_v16  ;;  %v5557_v32 = vpop.f32.mrb[100].mxu1 }
 0x1ea   : > { %3433 = vst.msk [vmem:[%s6379_s4 + $0x78] sm:$0xff] %vm230_vm2, %v3401_v49  ;;  %v2950_v36 = vadd.f32 %v5557_v32, %v2592_v13  ;;  %v2870_v39 = vpop.f32.mrb[101].mxu1  ;;  %v2602_v49 = vld [vmem:[%s6379_s4 + $0xf8] sm:$0xff]  ;;  %v2601_v13 = vld [vmem:[%s6379_s4 + $0xf0] sm:$0xff] }
 0x1eb   : > { %3432 = vst.msk [vmem:[%s6379_s4 + $0x70] sm:$0xff] %vm230_vm2, %v3400_v20  ;;  %v2949_v58 = vadd.f32 %v2870_v39, %v2591_v38  ;;  %v3045_v42 = vld [vmem:[%s6379_s4 + $0x88] sm:$0xff]  ;;  %v5607_v11 = vpop.f32.mrb[100].mxu0 }
 0x1ec   : > { %2982 = vst.msk [vmem:[%s6379_s4 + $0xa8] sm:$0xff] %vm230_vm2, %v2950_v36  ;;  %v3403_v10 = vadd.f32 %v5601_v62, %v3045_v42  ;;  %v3044_v57 = vld [vmem:[%s6379_s4 + $0x80] sm:$0xff]  ;;  %v3327_v40 = vpop.f32.mrb[101].mxu0 }
 0x1ed   : > { %2981 = vst.msk [vmem:[%s6379_s4 + $0xa0] sm:$0xff] %vm230_vm2, %v2949_v58  ;;  %v3402_v41 = vadd.f32 %v3307_v54, %v3044_v57  ;;  %v5560_v46 = vpop.f32.mrb[102].mxu1 }
 0x1ee   : > { %3435 = vst.msk [vmem:[%s6379_s4 + $0x88] sm:$0xff] %vm230_vm2, %v3403_v10  ;;  %v2952_v47 = vadd.f32 %v5560_v46, %v2594_v3  ;;  %v2880_v34 = vpop.f32.mrb[103].mxu1  ;;  %v3483_v10 = vld [vmem:[%s6379_s4 + $0x8] sm:$0xff]  ;;  %v3482_v3 = vld [vmem:[%s6379_s4] sm:$0xff] }
 0x1ef   : > { %3434 = vst.msk [vmem:[%s6379_s4 + $0x80] sm:$0xff] %vm230_vm2, %v3402_v41  ;;  %v2951_v15 = vadd.f32 %v2880_v34, %v2593_v51  ;;  %v3047_v60 = vld [vmem:[%s6379_s4 + $0x98] sm:$0xff]  ;;  %v5610_v21 = vpop.f32.mrb[102].mxu0 }
 0x1f0   : > { %2984 = vst.msk [vmem:[%s6379_s4 + $0xb8] sm:$0xff] %vm230_vm2, %v2952_v47  ;;  %v3405_v45 = vadd.f32 %v5604_v6, %v3047_v60  ;;  %v3046_v18 = vld [vmem:[%s6379_s4 + $0x90] sm:$0xff]  ;;  %v3337_v27 = vpop.f32.mrb[103].mxu0 }
 0x1f1   : > { %2983 = vst.msk [vmem:[%s6379_s4 + $0xb0] sm:$0xff] %vm230_vm2, %v2951_v15  ;;  %v3404_v23 = vadd.f32 %v3317_v56, %v3046_v18  ;;  %v5563_v43 = vpop.f32.mrb[104].mxu1 }
 0x1f2   : > { %3437 = vst.msk [vmem:[%s6379_s4 + $0x98] sm:$0xff] %vm230_vm2, %v3405_v45  ;;  %v2954_v29 = vadd.f32 %v5563_v43, %v2596_v25  ;;  %v2890_v33 = vpop.f32.mrb[105].mxu1  ;;  %v3485_v45 = vld [vmem:[%s6379_s4 + $0x18] sm:$0xff]  ;;  %v3484_v25 = vld [vmem:[%s6379_s4 + $0x10] sm:$0xff] }
 0x1f3   : > { %3436 = vst.msk [vmem:[%s6379_s4 + $0x90] sm:$0xff] %vm230_vm2, %v3404_v23  ;;  %v2953_v44 = vadd.f32 %v2890_v33, %v2595_v31  ;;  %v3049_v35 = vld [vmem:[%s6379_s4 + $0xa8] sm:$0xff]  ;;  %v5613_v2 = vpop.f32.mrb[104].mxu0 }
 0x1f4   : > { %2986 = vst.msk [vmem:[%s6379_s4 + $0xc8] sm:$0xff] %vm230_vm2, %v2954_v29  ;;  %v3407_v37 = vadd.f32 %v5607_v11, %v3049_v35  ;;  %v3048_v1 = vld [vmem:[%s6379_s4 + $0xa0] sm:$0xff]  ;;  %v3347_v12 = vpop.f32.mrb[105].mxu0 }
 0x1f5   : > { %2985 = vst.msk [vmem:[%s6379_s4 + $0xc0] sm:$0xff] %vm230_vm2, %v2953_v44  ;;  %v3406_v4 = vadd.f32 %v3327_v40, %v3048_v1  ;;  %v5566_v9 = vpop.f32.mrb[106].mxu1 }
 0x1f6   : > { %3439 = vst.msk [vmem:[%s6379_s4 + $0xa8] sm:$0xff] %vm230_vm2, %v3407_v37  ;;  %v2956_v48 = vadd.f32 %v5566_v9, %v2598_v8  ;;  %v2900_v14 = vpop.f32.mrb[107].mxu1  ;;  %v3487_v37 = vld [vmem:[%s6379_s4 + $0x28] sm:$0xff]  ;;  %v3486_v8 = vld [vmem:[%s6379_s4 + $0x20] sm:$0xff] }
 0x1f7   : > { %3438 = vst.msk [vmem:[%s6379_s4 + $0xa0] sm:$0xff] %vm230_vm2, %v3406_v4  ;;  %v2955_v50 = vadd.f32 %v2900_v14, %v2597_v53  ;;  %v3051_v17 = vld [vmem:[%s6379_s4 + $0xb8] sm:$0xff]  ;;  %v5616_v24 = vpop.f32.mrb[106].mxu0 }
 0x1f8   : > { %2988 = vst.msk [vmem:[%s6379_s4 + $0xd8] sm:$0xff] %vm230_vm2, %v2956_v48  ;;  %v3409_v19 = vadd.f32 %v5610_v21, %v3051_v17  ;;  %v3050_v22 = vld [vmem:[%s6379_s4 + $0xb0] sm:$0xff]  ;;  %v3357_v62 = vpop.f32.mrb[107].mxu0 }
 0x1f9   : > { %2987 = vst.msk [vmem:[%s6379_s4 + $0xd0] sm:$0xff] %vm230_vm2, %v2955_v50  ;;  %v3408_v61 = vadd.f32 %v3337_v27, %v3050_v22  ;;  %v5569_v55 = vpop.f32.mrb[108].mxu1 }
 0x1fa   : > { %3441 = vst.msk [vmem:[%s6379_s4 + $0xb8] sm:$0xff] %vm230_vm2, %v3409_v19  ;;  %v2958_v63 = vadd.f32 %v5569_v55, %v2600_v26  ;;  %v2910_v59 = vpop.f32.mrb[109].mxu1  ;;  %v3489_v19 = vld [vmem:[%s6379_s4 + $0x38] sm:$0xff]  ;;  %v3488_v26 = vld [vmem:[%s6379_s4 + $0x30] sm:$0xff] }
 0x1fb   : > { %3440 = vst.msk [vmem:[%s6379_s4 + $0xb0] sm:$0xff] %vm230_vm2, %v3408_v61  ;;  %v2957_v54 = vadd.f32 %v2910_v59, %v2599_v52  ;;  %v3053_v28 = vld [vmem:[%s6379_s4 + $0xc8] sm:$0xff]  ;;  %v5619_v30 = vpop.f32.mrb[108].mxu0 }
 0x1fc   : > { %2990 = vst.msk [vmem:[%s6379_s4 + $0xe8] sm:$0xff] %vm230_vm2, %v2958_v63  ;;  %v3411_v0 = vadd.f32 %v5613_v2, %v3053_v28  ;;  %v3052_v5 = vld [vmem:[%s6379_s4 + $0xc0] sm:$0xff]  ;;  %v3367_v6 = vpop.f32.mrb[109].mxu0 }
 0x1fd   : > { %2989 = vst.msk [vmem:[%s6379_s4 + $0xe0] sm:$0xff] %vm230_vm2, %v2957_v54  ;;  %v3410_v7 = vadd.f32 %v3347_v12, %v3052_v5  ;;  %v5572_v16 = vpop.f32.mrb[110].mxu1 }
 0x1fe   : > { %3443 = vst.msk [vmem:[%s6379_s4 + $0xc8] sm:$0xff] %vm230_vm2, %v3411_v0  ;;  %v2960_v20 = vadd.f32 %v5572_v16, %v2602_v49  ;;  %v2920_v32 = vpop.f32.mrb[111].mxu1  ;;  %v3491_v0 = vld [vmem:[%s6379_s4 + $0x48] sm:$0xff]  ;;  %v3490_v49 = vld [vmem:[%s6379_s4 + $0x40] sm:$0xff] }
 0x1ff   : > { %3442 = vst.msk [vmem:[%s6379_s4 + $0xc0] sm:$0xff] %vm230_vm2, %v3410_v7  ;;  %v2959_v56 = vadd.f32 %v2920_v32, %v2601_v13  ;;  %v3055_v36 = vld [vmem:[%s6379_s4 + $0xd8] sm:$0xff]  ;;  %v5622_v58 = vpop.f32.mrb[110].mxu0 }
 0x200   : > { %2992 = vst.msk [vmem:[%s6379_s4 + $0xf8] sm:$0xff] %vm230_vm2, %v2960_v20  ;;  %v3413_v38 = vadd.f32 %v5616_v24, %v3055_v36  ;;  %v3054_v39 = vld [vmem:[%s6379_s4 + $0xd0] sm:$0xff]  ;;  %v3377_v11 = vpop.f32.mrb[111].mxu0 }
 0x201   : > { %2991 = vst.msk [vmem:[%s6379_s4 + $0xf0] sm:$0xff] %vm230_vm2, %v2959_v56  ;;  %v3412_v42 = vadd.f32 %v3357_v62, %v3054_v39  ;;  %v5627_v57 = vpop.f32.mrb[112].mxu1 }
 0x202   : > { %3445 = vst.msk [vmem:[%s6379_s4 + $0xd8] sm:$0xff] %vm230_vm2, %v3413_v38  ;;  %v3841_v41 = vadd.f32 %v5627_v57, %v3483_v10  ;;  %v3681_v46 = vpop.f32.mrb[113].mxu1  ;;  %v3493_v38 = vld [vmem:[%s6379_s4 + $0x58] sm:$0xff]  ;;  %v3492_v10 = vld [vmem:[%s6379_s4 + $0x50] sm:$0xff] }
 0x203   : > { %3444 = vst.msk [vmem:[%s6379_s4 + $0xd0] sm:$0xff] %vm230_vm2, %v3412_v42  ;;  %v3840_v40 = vadd.f32 %v3681_v46, %v3482_v3  ;;  %v3057_v47 = vld [vmem:[%s6379_s4 + $0xe8] sm:$0xff]  ;;  %v5677_v15 = vpop.f32.mrb[112].mxu0 }
 0x204   : > { %3873 = vst.msk [vmem:[%s6379_s4 + $0x8] sm:$0xff] %vm230_vm2, %v3841_v41  ;;  %v3415_v51 = vadd.f32 %v5619_v30, %v3057_v47  ;;  %v3056_v34 = vld [vmem:[%s6379_s4 + $0xe0] sm:$0xff]  ;;  %v4135_v21 = vpop.f32.mrb[113].mxu0 }
 0x205   : > { %3872 = vst.msk [vmem:[%s6379_s4] sm:$0xff] %vm230_vm2, %v3840_v40  ;;  %v3414_v60 = vadd.f32 %v3367_v6, %v3056_v34  ;;  %v5630_v18 = vpop.f32.mrb[114].mxu1 }
 0x206   : > { %3447 = vst.msk [vmem:[%s6379_s4 + $0xe8] sm:$0xff] %vm230_vm2, %v3415_v51  ;;  %v3843_v23 = vadd.f32 %v5630_v18, %v3485_v45  ;;  %v3691_v43 = vpop.f32.mrb[115].mxu1  ;;  %v3495_v51 = vld [vmem:[%s6379_s4 + $0x68] sm:$0xff]  ;;  %v3494_v45 = vld [vmem:[%s6379_s4 + $0x60] sm:$0xff] }
 0x207   : > { %3446 = vst.msk [vmem:[%s6379_s4 + $0xe0] sm:$0xff] %vm230_vm2, %v3414_v60  ;;  %v3842_v27 = vadd.f32 %v3691_v43, %v3484_v25  ;;  %v3059_v29 = vld [vmem:[%s6379_s4 + $0xf8] sm:$0xff]  ;;  %v5680_v44 = vpop.f32.mrb[114].mxu0 }
 0x208   : > { %3875 = vst.msk [vmem:[%s6379_s4 + $0x18] sm:$0xff] %vm230_vm2, %v3843_v23  ;;  %v3417_v31 = vadd.f32 %v5622_v58, %v3059_v29  ;;  %v3058_v33 = vld [vmem:[%s6379_s4 + $0xf0] sm:$0xff]  ;;  %v4145_v2 = vpop.f32.mrb[115].mxu0 }
 0x209   : > { %3874 = vst.msk [vmem:[%s6379_s4 + $0x10] sm:$0xff] %vm230_vm2, %v3842_v27  ;;  %v3416_v35 = vadd.f32 %v3377_v11, %v3058_v33  ;;  %v5633_v1 = vpop.f32.mrb[116].mxu1 }
 0x20a   : > { %3449 = vst.msk [vmem:[%s6379_s4 + $0xf8] sm:$0xff] %vm230_vm2, %v3417_v31  ;;  %v3845_v4 = vadd.f32 %v5633_v1, %v3487_v37  ;;  %v3701_v9 = vpop.f32.mrb[117].mxu1  ;;  %v3497_v31 = vld [vmem:[%s6379_s4 + $0x78] sm:$0xff]  ;;  %v3496_v37 = vld [vmem:[%s6379_s4 + $0x70] sm:$0xff] }
 0x20b   : > { %3448 = vst.msk [vmem:[%s6379_s4 + $0xf0] sm:$0xff] %vm230_vm2, %v3416_v35  ;;  %v3844_v12 = vadd.f32 %v3701_v9, %v3486_v8  ;;  %v3937_v48 = vld [vmem:[%s6379_s4 + $0x8] sm:$0xff]  ;;  %v5683_v50 = vpop.f32.mrb[116].mxu0 }
 0x20c   : > { %3877 = vst.msk [vmem:[%s6379_s4 + $0x28] sm:$0xff] %vm230_vm2, %v3845_v4  ;;  %v4295_v53 = vadd.f32 %v5677_v15, %v3937_v48  ;;  %v3936_v14 = vld [vmem:[%s6379_s4] sm:$0xff]  ;;  %v4155_v24 = vpop.f32.mrb[117].mxu0 }
 0x20d   : > { %3876 = vst.msk [vmem:[%s6379_s4 + $0x20] sm:$0xff] %vm230_vm2, %v3844_v12  ;;  %v4294_v17 = vadd.f32 %v4135_v21, %v3936_v14  ;;  %v5636_v22 = vpop.f32.mrb[118].mxu1 }
 0x20e   : > { %4327 = vst.msk [vmem:[%s6379_s4 + $0x8] sm:$0xff] %vm230_vm2, %v4295_v53  ;;  %v3847_v61 = vadd.f32 %v5636_v22, %v3489_v19  ;;  %v3711_v55 = vpop.f32.mrb[119].mxu1  ;;  %v3499_v53 = vld [vmem:[%s6379_s4 + $0x88] sm:$0xff]  ;;  %v3498_v19 = vld [vmem:[%s6379_s4 + $0x80] sm:$0xff] }
 0x20f   : > { %4326 = vst.msk [vmem:[%s6379_s4] sm:$0xff] %vm230_vm2, %v4294_v17  ;;  %v3846_v62 = vadd.f32 %v3711_v55, %v3488_v26  ;;  %v3939_v63 = vld [vmem:[%s6379_s4 + $0x18] sm:$0xff]  ;;  %v5686_v54 = vpop.f32.mrb[118].mxu0 }
 0x210   : > { %3879 = vst.msk [vmem:[%s6379_s4 + $0x38] sm:$0xff] %vm230_vm2, %v3847_v61  ;;  %v4297_v52 = vadd.f32 %v5680_v44, %v3939_v63  ;;  %v3938_v59 = vld [vmem:[%s6379_s4 + $0x10] sm:$0xff]  ;;  %v4165_v30 = vpop.f32.mrb[119].mxu0 }
 0x211   : > { %3878 = vst.msk [vmem:[%s6379_s4 + $0x30] sm:$0xff] %vm230_vm2, %v3846_v62  ;;  %v4296_v28 = vadd.f32 %v4145_v2, %v3938_v59  ;;  %v5639_v5 = vpop.f32.mrb[120].mxu1 }
 0x212   : > { %4329 = vst.msk [vmem:[%s6379_s4 + $0x18] sm:$0xff] %vm230_vm2, %v4297_v52  ;;  %v3849_v7 = vadd.f32 %v5639_v5, %v3491_v0  ;;  %v3721_v16 = vpop.f32.mrb[121].mxu1  ;;  %v3501_v52 = vld [vmem:[%s6379_s4 + $0x98] sm:$0xff]  ;;  %v3500_v0 = vld [vmem:[%s6379_s4 + $0x90] sm:$0xff] }
 0x213   : > { %4328 = vst.msk [vmem:[%s6379_s4 + $0x10] sm:$0xff] %vm230_vm2, %v4296_v28  ;;  %v3848_v6 = vadd.f32 %v3721_v16, %v3490_v49  ;;  %v3941_v20 = vld [vmem:[%s6379_s4 + $0x28] sm:$0xff]  ;;  %v5689_v56 = vpop.f32.mrb[120].mxu0 }
 0x214   : > { %3881 = vst.msk [vmem:[%s6379_s4 + $0x48] sm:$0xff] %vm230_vm2, %v3849_v7  ;;  %v4299_v13 = vadd.f32 %v5683_v50, %v3941_v20  ;;  %v3940_v32 = vld [vmem:[%s6379_s4 + $0x20] sm:$0xff]  ;;  %v4175_v58 = vpop.f32.mrb[121].mxu0 }
 0x215   : > { %3880 = vst.msk [vmem:[%s6379_s4 + $0x40] sm:$0xff] %vm230_vm2, %v3848_v6  ;;  %v4298_v36 = vadd.f32 %v4155_v24, %v3940_v32  ;;  %v5642_v39 = vpop.f32.mrb[122].mxu1 }
 0x216   : > { %4331 = vst.msk [vmem:[%s6379_s4 + $0x28] sm:$0xff] %vm230_vm2, %v4299_v13  ;;  %v3851_v42 = vadd.f32 %v5642_v39, %v3493_v38  ;;  %v3731_v57 = vpop.f32.mrb[123].mxu1  ;;  %v3503_v13 = vld [vmem:[%s6379_s4 + $0xa8] sm:$0xff]  ;;  %v3502_v38 = vld [vmem:[%s6379_s4 + $0xa0] sm:$0xff] }
 0x217   : > { %4330 = vst.msk [vmem:[%s6379_s4 + $0x20] sm:$0xff] %vm230_vm2, %v4298_v36  ;;  %v3850_v11 = vadd.f32 %v3731_v57, %v3492_v10  ;;  %v3943_v41 = vld [vmem:[%s6379_s4 + $0x38] sm:$0xff]  ;;  %v5692_v40 = vpop.f32.mrb[122].mxu0 }
 0x218   : > { %3883 = vst.msk [vmem:[%s6379_s4 + $0x58] sm:$0xff] %vm230_vm2, %v3851_v42  ;;  %v4301_v3 = vadd.f32 %v5686_v54, %v3943_v41  ;;  %v3942_v46 = vld [vmem:[%s6379_s4 + $0x30] sm:$0xff]  ;;  %v4185_v15 = vpop.f32.mrb[123].mxu0 }
 0x219   : > { %3882 = vst.msk [vmem:[%s6379_s4 + $0x50] sm:$0xff] %vm230_vm2, %v3850_v11  ;;  %v4300_v47 = vadd.f32 %v4165_v30, %v3942_v46  ;;  %v5645_v34 = vpop.f32.mrb[124].mxu1 }
 0x21a   : > { %4333 = vst.msk [vmem:[%s6379_s4 + $0x38] sm:$0xff] %vm230_vm2, %v4301_v3  ;;  %v3853_v60 = vadd.f32 %v5645_v34, %v3495_v51  ;;  %v3741_v18 = vpop.f32.mrb[125].mxu1  ;;  %v3505_v3 = vld [vmem:[%s6379_s4 + $0xb8] sm:$0xff]  ;;  %v3504_v51 = vld [vmem:[%s6379_s4 + $0xb0] sm:$0xff] }
 0x21b   : > { %4332 = vst.msk [vmem:[%s6379_s4 + $0x30] sm:$0xff] %vm230_vm2, %v4300_v47  ;;  %v3852_v21 = vadd.f32 %v3741_v18, %v3494_v45  ;;  %v3945_v23 = vld [vmem:[%s6379_s4 + $0x48] sm:$0xff]  ;;  %v5695_v27 = vpop.f32.mrb[124].mxu0 }
 0x21c   : > { %3885 = vst.msk [vmem:[%s6379_s4 + $0x68] sm:$0xff] %vm230_vm2, %v3853_v60  ;;  %v4303_v25 = vadd.f32 %v5689_v56, %v3945_v23  ;;  %v3944_v43 = vld [vmem:[%s6379_s4 + $0x40] sm:$0xff]  ;;  %v4195_v44 = vpop.f32.mrb[125].mxu0 }
 0x21d   : > { %3884 = vst.msk [vmem:[%s6379_s4 + $0x60] sm:$0xff] %vm230_vm2, %v3852_v21  ;;  %v4302_v29 = vadd.f32 %v4175_v58, %v3944_v43  ;;  %v5648_v33 = vpop.f32.mrb[126].mxu1 }
 0x21e   : > { %4335 = vst.msk [vmem:[%s6379_s4 + $0x48] sm:$0xff] %vm230_vm2, %v4303_v25  ;;  %v3855_v35 = vadd.f32 %v5648_v33, %v3497_v31  ;;  %v3751_v1 = vpop.f32.mrb[127].mxu1  ;;  %v3507_v25 = vld [vmem:[%s6379_s4 + $0xc8] sm:$0xff]  ;;  %v3506_v31 = vld [vmem:[%s6379_s4 + $0xc0] sm:$0xff] }
 0x21f   : > { %4334 = vst.msk [vmem:[%s6379_s4 + $0x40] sm:$0xff] %vm230_vm2, %v4302_v29  ;;  %v3854_v2 = vadd.f32 %v3751_v1, %v3496_v37  ;;  %v3947_v4 = vld [vmem:[%s6379_s4 + $0x58] sm:$0xff]  ;;  %v5698_v12 = vpop.f32.mrb[126].mxu0 }
 0x220   : > { %3887 = vst.msk [vmem:[%s6379_s4 + $0x78] sm:$0xff] %vm230_vm2, %v3855_v35  ;;  %v4305_v8 = vadd.f32 %v5692_v40, %v3947_v4  ;;  %v3946_v9 = vld [vmem:[%s6379_s4 + $0x50] sm:$0xff]  ;;  %v4205_v50 = vpop.f32.mrb[127].mxu0 }
 0x221   : > { %3886 = vst.msk [vmem:[%s6379_s4 + $0x70] sm:$0xff] %vm230_vm2, %v3854_v2  ;;  %v4304_v48 = vadd.f32 %v4185_v15, %v3946_v9  ;;  %v5651_v14 = vpop.f32.mrb[128].mxu1 }
 0x222   : > { %4337 = vst.msk [vmem:[%s6379_s4 + $0x58] sm:$0xff] %vm230_vm2, %v4305_v8  ;;  %v3857_v17 = vadd.f32 %v5651_v14, %v3499_v53  ;;  %v3761_v22 = vpop.f32.mrb[129].mxu1  ;;  %v3509_v8 = vld [vmem:[%s6379_s4 + $0xd8] sm:$0xff]  ;;  %v3508_v53 = vld [vmem:[%s6379_s4 + $0xd0] sm:$0xff] }
 0x223   : > { %4336 = vst.msk [vmem:[%s6379_s4 + $0x50] sm:$0xff] %vm230_vm2, %v4304_v48  ;;  %v3856_v24 = vadd.f32 %v3761_v22, %v3498_v19  ;;  %v3949_v61 = vld [vmem:[%s6379_s4 + $0x68] sm:$0xff]  ;;  %v5701_v62 = vpop.f32.mrb[128].mxu0 }
 0x224   : > { %3889 = vst.msk [vmem:[%s6379_s4 + $0x88] sm:$0xff] %vm230_vm2, %v3857_v17  ;;  %v4307_v26 = vadd.f32 %v5695_v27, %v3949_v61  ;;  %v3948_v55 = vld [vmem:[%s6379_s4 + $0x60] sm:$0xff]  ;;  %v4215_v54 = vpop.f32.mrb[129].mxu0 }
 0x225   : > { %3888 = vst.msk [vmem:[%s6379_s4 + $0x80] sm:$0xff] %vm230_vm2, %v3856_v24  ;;  %v4306_v63 = vadd.f32 %v4195_v44, %v3948_v55  ;;  %v5654_v59 = vpop.f32.mrb[130].mxu1 }
 0x226   : > { %4339 = vst.msk [vmem:[%s6379_s4 + $0x68] sm:$0xff] %vm230_vm2, %v4307_v26  ;;  %v3859_v28 = vadd.f32 %v5654_v59, %v3501_v52  ;;  %v3771_v5 = vpop.f32.mrb[131].mxu1  ;;  %v3511_v26 = vld [vmem:[%s6379_s4 + $0xe8] sm:$0xff]  ;;  %v3510_v52 = vld [vmem:[%s6379_s4 + $0xe0] sm:$0xff] }
 0x227   : > { %4338 = vst.msk [vmem:[%s6379_s4 + $0x60] sm:$0xff] %vm230_vm2, %v4306_v63  ;;  %v3858_v30 = vadd.f32 %v3771_v5, %v3500_v0  ;;  %v3951_v7 = vld [vmem:[%s6379_s4 + $0x78] sm:$0xff]  ;;  %v5704_v6 = vpop.f32.mrb[130].mxu0 }
 0x228   : > { %3891 = vst.msk [vmem:[%s6379_s4 + $0x98] sm:$0xff] %vm230_vm2, %v3859_v28  ;;  %v4309_v49 = vadd.f32 %v5698_v12, %v3951_v7  ;;  %v3950_v16 = vld [vmem:[%s6379_s4 + $0x70] sm:$0xff]  ;;  %v4225_v56 = vpop.f32.mrb[131].mxu0 }
 0x229   : > { %3890 = vst.msk [vmem:[%s6379_s4 + $0x90] sm:$0xff] %vm230_vm2, %v3858_v30  ;;  %v4308_v20 = vadd.f32 %v4205_v50, %v3950_v16  ;;  %v5657_v32 = vpop.f32.mrb[132].mxu1 }
 0x22a   : > { %4341 = vst.msk [vmem:[%s6379_s4 + $0x78] sm:$0xff] %vm230_vm2, %v4309_v49  ;;  %v3861_v36 = vadd.f32 %v5657_v32, %v3503_v13  ;;  %v3781_v39 = vpop.f32.mrb[133].mxu1  ;;  %v3513_v49 = vld [vmem:[%s6379_s4 + $0xf8] sm:$0xff]  ;;  %v3512_v13 = vld [vmem:[%s6379_s4 + $0xf0] sm:$0xff] }
 0x22b   : > { %4340 = vst.msk [vmem:[%s6379_s4 + $0x70] sm:$0xff] %vm230_vm2, %v4308_v20  ;;  %v3860_v58 = vadd.f32 %v3781_v39, %v3502_v38  ;;  %v3953_v42 = vld [vmem:[%s6379_s4 + $0x88] sm:$0xff]  ;;  %v5707_v11 = vpop.f32.mrb[132].mxu0 }
 0x22c   : > { %3893 = vst.msk [vmem:[%s6379_s4 + $0xa8] sm:$0xff] %vm230_vm2, %v3861_v36  ;;  %v4311_v10 = vadd.f32 %v5701_v62, %v3953_v42  ;;  %v3952_v57 = vld [vmem:[%s6379_s4 + $0x80] sm:$0xff]  ;;  %v4235_v40 = vpop.f32.mrb[133].mxu0 }
 0x22d   : > { %3892 = vst.msk [vmem:[%s6379_s4 + $0xa0] sm:$0xff] %vm230_vm2, %v3860_v58  ;;  %v4310_v41 = vadd.f32 %v4215_v54, %v3952_v57  ;;  %v5660_v46 = vpop.f32.mrb[134].mxu1 }
 0x22e   : > { %4343 = vst.msk [vmem:[%s6379_s4 + $0x88] sm:$0xff] %vm230_vm2, %v4311_v10  ;;  %v3863_v47 = vadd.f32 %v5660_v46, %v3505_v3  ;;  %v3791_v34 = vpop.f32.mrb[135].mxu1 }
 0x22f   : > { %4342 = vst.msk [vmem:[%s6379_s4 + $0x80] sm:$0xff] %vm230_vm2, %v4310_v41  ;;  %v3862_v15 = vadd.f32 %v3791_v34, %v3504_v51  ;;  %v3955_v60 = vld [vmem:[%s6379_s4 + $0x98] sm:$0xff]  ;;  %v5710_v21 = vpop.f32.mrb[134].mxu0 }
 0x230   : > { %3895 = vst.msk [vmem:[%s6379_s4 + $0xb8] sm:$0xff] %vm230_vm2, %v3863_v47  ;;  %v4313_v45 = vadd.f32 %v5704_v6, %v3955_v60  ;;  %v3954_v18 = vld [vmem:[%s6379_s4 + $0x90] sm:$0xff]  ;;  %v4245_v27 = vpop.f32.mrb[135].mxu0 }
 0x231   : > { %3894 = vst.msk [vmem:[%s6379_s4 + $0xb0] sm:$0xff] %vm230_vm2, %v3862_v15  ;;  %v4312_v23 = vadd.f32 %v4225_v56, %v3954_v18  ;;  %v5663_v43 = vpop.f32.mrb[136].mxu1 }
 0x232   : > { %4345 = vst.msk [vmem:[%s6379_s4 + $0x98] sm:$0xff] %vm230_vm2, %v4313_v45  ;;  %v3865_v29 = vadd.f32 %v5663_v43, %v3507_v25  ;;  %v3801_v33 = vpop.f32.mrb[137].mxu1 }
 0x233   : > { %4344 = vst.msk [vmem:[%s6379_s4 + $0x90] sm:$0xff] %vm230_vm2, %v4312_v23  ;;  %v3864_v44 = vadd.f32 %v3801_v33, %v3506_v31  ;;  %v3957_v35 = vld [vmem:[%s6379_s4 + $0xa8] sm:$0xff]  ;;  %v5713_v2 = vpop.f32.mrb[136].mxu0 }
 0x234   : > { %3897 = vst.msk [vmem:[%s6379_s4 + $0xc8] sm:$0xff] %vm230_vm2, %v3865_v29  ;;  %v4315_v37 = vadd.f32 %v5707_v11, %v3957_v35  ;;  %v3956_v1 = vld [vmem:[%s6379_s4 + $0xa0] sm:$0xff]  ;;  %v4255_v12 = vpop.f32.mrb[137].mxu0 }
 0x235   : > { %3896 = vst.msk [vmem:[%s6379_s4 + $0xc0] sm:$0xff] %vm230_vm2, %v3864_v44  ;;  %v4314_v4 = vadd.f32 %v4235_v40, %v3956_v1  ;;  %v5666_v9 = vpop.f32.mrb[138].mxu1 }
 0x236   : > { %4347 = vst.msk [vmem:[%s6379_s4 + $0xa8] sm:$0xff] %vm230_vm2, %v4315_v37  ;;  %v3867_v48 = vadd.f32 %v5666_v9, %v3509_v8  ;;  %v3811_v14 = vpop.f32.mrb[139].mxu1 }
 0x237   : > { %4346 = vst.msk [vmem:[%s6379_s4 + $0xa0] sm:$0xff] %vm230_vm2, %v4314_v4  ;;  %v3866_v50 = vadd.f32 %v3811_v14, %v3508_v53  ;;  %v3959_v17 = vld [vmem:[%s6379_s4 + $0xb8] sm:$0xff]  ;;  %v5716_v24 = vpop.f32.mrb[138].mxu0 }
 0x238   : > { %3899 = vst.msk [vmem:[%s6379_s4 + $0xd8] sm:$0xff] %vm230_vm2, %v3867_v48  ;;  %v4317_v19 = vadd.f32 %v5710_v21, %v3959_v17  ;;  %v3958_v22 = vld [vmem:[%s6379_s4 + $0xb0] sm:$0xff]  ;;  %v4265_v62 = vpop.f32.mrb[139].mxu0 }
 0x239   : > { %3898 = vst.msk [vmem:[%s6379_s4 + $0xd0] sm:$0xff] %vm230_vm2, %v3866_v50  ;;  %v4316_v61 = vadd.f32 %v4245_v27, %v3958_v22  ;;  %v5669_v55 = vpop.f32.mrb[140].mxu1 }
 0x23a   : > { %4349 = vst.msk [vmem:[%s6379_s4 + $0xb8] sm:$0xff] %vm230_vm2, %v4317_v19  ;;  %v3869_v63 = vadd.f32 %v5669_v55, %v3511_v26  ;;  %v3821_v59 = vpop.f32.mrb[141].mxu1 }
 0x23b   : > { %4348 = vst.msk [vmem:[%s6379_s4 + $0xb0] sm:$0xff] %vm230_vm2, %v4316_v61  ;;  %v3868_v54 = vadd.f32 %v3821_v59, %v3510_v52  ;;  %v3961_v28 = vld [vmem:[%s6379_s4 + $0xc8] sm:$0xff]  ;;  %v5719_v30 = vpop.f32.mrb[140].mxu0 }
 0x23c   : > { %3901 = vst.msk [vmem:[%s6379_s4 + $0xe8] sm:$0xff] %vm230_vm2, %v3869_v63  ;;  %v4319_v0 = vadd.f32 %v5713_v2, %v3961_v28  ;;  %v3960_v5 = vld [vmem:[%s6379_s4 + $0xc0] sm:$0xff]  ;;  %v4275_v6 = vpop.f32.mrb[141].mxu0 }
 0x23d   : > { %3900 = vst.msk [vmem:[%s6379_s4 + $0xe0] sm:$0xff] %vm230_vm2, %v3868_v54  ;;  %v4318_v7 = vadd.f32 %v4255_v12, %v3960_v5  ;;  %v5672_v16 = vpop.f32.mrb[142].mxu1 }
 0x23e   : > { %4351 = vst.msk [vmem:[%s6379_s4 + $0xc8] sm:$0xff] %vm230_vm2, %v4319_v0  ;;  %v3871_v20 = vadd.f32 %v5672_v16, %v3513_v49  ;;  %v3831_v32 = vpop.f32.mrb[143].mxu1 }
 0x23f   : > { %4350 = vst.msk [vmem:[%s6379_s4 + $0xc0] sm:$0xff] %vm230_vm2, %v4318_v7  ;;  %v3870_v56 = vadd.f32 %v3831_v32, %v3512_v13  ;;  %v3963_v36 = vld [vmem:[%s6379_s4 + $0xd8] sm:$0xff]  ;;  %v5722_v58 = vpop.f32.mrb[142].mxu0 }
 0x240   : > { %3903 = vst.msk [vmem:[%s6379_s4 + $0xf8] sm:$0xff] %vm230_vm2, %v3871_v20  ;;  %v4321_v38 = vadd.f32 %v5716_v24, %v3963_v36  ;;  %v3962_v39 = vld [vmem:[%s6379_s4 + $0xd0] sm:$0xff]  ;;  %v4285_v10 = vpop.f32.mrb[143].mxu0 }
 0x241   : > { %3902 = vst.msk [vmem:[%s6379_s4 + $0xf0] sm:$0xff] %vm230_vm2, %v3870_v56  ;;  %v4320_v42 = vadd.f32 %v4265_v62, %v3962_v39 }
 0x242   : > { %4353 = vst.msk [vmem:[%s6379_s4 + $0xd8] sm:$0xff] %vm230_vm2, %v4321_v38 }
 0x243   : > { %4352 = vst.msk [vmem:[%s6379_s4 + $0xd0] sm:$0xff] %vm230_vm2, %v4320_v42  ;;  %v3965_v57 = vld [vmem:[%s6379_s4 + $0xe8] sm:$0xff] }
 0x244   : > { %v4323_v11 = vadd.f32 %v5719_v30, %v3965_v57  ;;  %v3964_v41 = vld [vmem:[%s6379_s4 + $0xe0] sm:$0xff] }
 0x245   : > { %v4322_v3 = vadd.f32 %v4275_v6, %v3964_v41 }
 0x246   : > { %4355 = vst.msk [vmem:[%s6379_s4 + $0xe8] sm:$0xff] %vm230_vm2, %v4323_v11 }
 0x247   : > { %4354 = vst.msk [vmem:[%s6379_s4 + $0xe0] sm:$0xff] %vm230_vm2, %v4322_v3  ;;  %v3967_v46 = vld [vmem:[%s6379_s4 + $0xf8] sm:$0xff] }
 0x248   : > { %v4325_v40 = vadd.f32 %v5722_v58, %v3967_v46  ;;  %v3966_v47 = vld [vmem:[%s6379_s4 + $0xf0] sm:$0xff] }
 0x249   : > { %v4324_v51 = vadd.f32 %v4285_v10, %v3966_v47 }
 0x24a   : > { %4357 = vst.msk [vmem:[%s6379_s4 + $0xf8] sm:$0xff] %vm230_vm2, %v4325_v40 }
 0x24b   : > { %4356 = vst.msk [vmem:[%s6379_s4 + $0xf0] sm:$0xff] %vm230_vm2, %v4324_v51 }
 0x24c PF: > { %s15_s14 = sadd.s32 1, %s5859_s14   ;;  %s7934_s12 = smov %s5855_s13 }
 0x24d   : > { %p12_p6 = scmp.ge.s32.totalorder %s15_s14, 4   ;;  %s7935_s13 = smov %s7937_s16 }
 0x24f   :  { %14 = sbr.rel (!%p12_p6) target bundleno = 3 (0x3), region = 82 }
 0x256   :  { %4388 = vsyncpa [#allocation3], 1 }
 0x257   :  { %4390 = vsyncpa [#allocation3 + $0x1], 1 }
 0x258   :  { %4391 = vsyncpa [#allocation5], 1 }

// kernel: deform_conv3d_forward.3
= control target key start
LH: loop header
LB: loop body
LE: loop exit
PB: predicated region body
PF: predicated region fallthrough
CT: control target
= control target key end

     0   :  { %s452_s9 = smov 0   ;;  %s454_s10 = smov 0   ;;  %s488_s0 = inlined_call_operand.vmem [shape: bf16[2,36,256], index: 0, kind: input, shape index: {}]   ;;  %s489_s1 = inlined_call_operand.vmem [shape: bf16[4,36], index: 1, kind: input, shape index: {}]   ;;  %s490_s2 = inlined_call_operand.vmem [shape: f32[2,4,256], index: 2, kind: output, shape index: {}]  }
   0x1   :  { %s456_s11 = smov 0  }
   0x2 LB: > { %s24_s12 = sadd.s32 1, %s430_s10  ;;  %p363_p0 = scmp.ge.s32.totalorder %s434_s11, 1  ;;  %s434_s11 = sphi %s456_s11, %s12_s11   ;;  %s430_s10 = sphi %s454_s10, %s492_s10   ;;  %s426_s9 = sphi %s452_s9, %s491_s9  }
   0x3   : > { %p26_p1 = scmp.ge.s32.totalorder %s24_s12, 2  ;;  %p133_p2 = scmp.lt.s32.totalorder %s434_s11, 3 }
   0x5   : > { %s494_s12 = smov (%p26_p1, %s24_s12), 0  ;;  %p134_p3 = pnand %p363_p0, %p133_p2 }
   0x6   : > { %p164_p4 = scmp.lt.s32.totalorder (!%p134_p3), %s426_s9, 1  ;;  %v436_v0 = vmov (!%p134_p3), 0   ;;  %vm219_vm0 = vcmask (!%p134_p3), 1041408   ;;  %v184_v9 = vld [vmem:[%s489_s1] sm:$0x3] (!%p134_p3)  ;;  %vm215_vm1 = vcmask (!%p134_p3), 293888  }
   0x7   : > { %137 = sbr.rel (%p134_p3) target bundleno = 247 (0xf7), region = 28  ;;  %258 = vmatprep.mubr.bf16.mxu0 (!%p134_p3), %v436_v0 }
   0xe   : > { %s496_s9 = smov (!%p164_p4, %s426_s9), 1 }
   0xf   : > { %s378_s13 = smul.u32 40, %s496_s9  ;;  %s377_s19 = sshll.u32 %s496_s9, 3 }
  0x10   : > { %s181_s22 = scalar_lea.vmem %s490_s2, %s377_s19 }
  0x11   : > { %s171_s16 = scalar_lea.vmem %s488_s0, %s378_s13 }
  0x12   : > { %v404_v1 = vld [vmem:[%s171_s16 + $0x4] ss:$8 sps:$4 sm:$0xff]   ;;  %v406_v2 = vld [vmem:[%s171_s16] ss:$8 sps:$4 sm:$0xff]   ;;  %v407_v3 = vld [vmem:[%s171_s16 + $0x14] ss:$8 sps:$4 sm:$0xff]  }
  0x13   : > { %226 = vmatprep.subr.bf16.mxu0 %v404_v1  ;;  %v189_v4 = vld [vmem:[%s171_s16 + $0x20] sm:$0x33]  ;;  %v409_v5 = vld [vmem:[%s171_s16 + $0x10] ss:$8 sps:$4 sm:$0xff]  }
  0x14   : > { %227 = vmatpush1.bf16.msra.mxu0 %v406_v2  ;;  %v372_v6 = vcombine.high %v189_v4, %v189_v4  ;;  %v371_v7 = vcombine.low %v189_v4, %v189_v4 }
  0x15   : > { %228 = vmatprep.subr.bf16.mxu0 %v407_v3 }
  0x16   : > { %v221_v8 = vsel %vm219_vm0, %v371_v7, 0 }
  0x18   : > { %229 = vmatpush1.bf16.msra.mxu0 %v409_v5 }
  0x19   : > { %373 = vmatprep.subr.msk.bf16.mxu0 %vm219_vm0, %v372_v6 }
  0x1c   : > { %231 = vmatpush1.bf16.msra.mxu0 %v221_v8 }
  0x1f   : > { %374 = vmatmul.mubr.msk.bf16.vlgmr.msra.gmra.mrb[0].mxu0 %vm215_vm1, %v184_v9 }
  0xf2   : > { %v260_v10 = vpop.f32.mrb[0].mxu0 }
  0xf3   : > { %v262_v11 = vpop.f32.mrb[1].mxu0 }
  0xf4   : > { %v269_v12 = vcombine.low %v260_v10, %v262_v11  ;;  %v264_v13 = vpop.f32.mrb[2].mxu0 }
  0xf5   : > { %v265_v14 = vpop.f32.mrb[3].mxu0 }
  0xf6   : > { %271 = vst [vmem:[%s181_s22] sm:$0xff] %v269_v12 }
  0xf7 PF: > { %s12_s11 = sadd.s32 1, %s434_s11   ;;  %s491_s9 = smov %s430_s10 }
  0xf8   : > { %p9_p5 = scmp.ge.s32.totalorder %s12_s11, 4   ;;  %s492_s10 = smov %s494_s12 }
  0xfa   :  { %11 = sbr.rel (!%p9_p5) target bundleno = 2 (0x2), region = 58 }

</bundles_post_ra>
